<compile_context>
chip_gen: v7x
topology: tpu7x:2x2x1
jax: 0.10.0
libtpu: 0.0.40
codegen_flags: <defaults>
</compile_context>

<pallas_src>
import functools

import numpy as np

import jax
import jax.numpy as jnp
from jax.experimental import pallas as pl
from jax.experimental.pallas import tpu as pltpu


# ----------------------------------------------------------------------------
# In-kernel helpers.  Activations live in a (C, N*H*W) layout: channels on the
# sublane axis, batch+space flattened on the lane axis.
# ----------------------------------------------------------------------------

def _prelu(y, alpha):
    return jnp.where(y >= 0.0, y, alpha * y)


def _conv3x3_stacked(x, w_ref, masks, deltas, alpha):
    """3x3 'same' conv (+bias, +optional PReLU) as ONE stacked-K matmul.

    x:      (Cin, L) with L = N*H*W (batch folded onto lanes).
    w_ref:  (Cout, 9*Cin + 1) packed weight; last column is the bias.
    masks:  list of 9 (1, L) {0,1} tap-validity masks (host precomputed).
    deltas: 9 static flat lane offsets dy*W + dx (row-major over (dy, dx)).
    """
    L = x.shape[1]
    taps = []
    for k, d in enumerate(deltas):
        if d == 0:
            taps.append(x)
        else:
            # Circular lane roll; every wrapped / out-of-image lane is zeroed by the
            # mask, which makes this identical to zero padding.
            xr = pltpu.roll(x, shift=(-d) % L, axis=1)
            taps.append(xr * masks[k])
    taps.append(jnp.ones((1, L), jnp.float32))            # bias row
    x_stk = jnp.concatenate(taps, axis=0)                 # (9*Cin + 1, L)
    y = jnp.dot(w_ref[...], x_stk, preferred_element_type=jnp.float32)
    return y if alpha is None else _prelu(y, alpha)


def _deconv2x2_stacked(x, wd_ref, pc_ref, alpha, cout):
    """ConvTranspose(k=2, s=2) + bias + PReLU as TWO matmuls.

    x:      (Cin, L) coarse activations, L = N*Hc*Wc.
    wd_ref: (4*Cout, Cin + 1) stacked per-phase channel weights, bias in last column.
    pc_ref: (4*L, 4*L) fused 0/1 permutation scattering the 4 phase blocks into the
            interleaved (2Hc, 2Wc) flat layout per image.
    Returns (Cout, 4*L) fine-resolution activations.
    """
    L = x.shape[1]
    x_aug = jnp.concatenate([x, jnp.ones((1, L), jnp.float32)], axis=0)  # (Cin+1, L)
    y = jnp.dot(wd_ref[...], x_aug, preferred_element_type=jnp.float32)  # (4*Cout, L)
    yc = jnp.concatenate([y[ab * cout:(ab + 1) * cout, :] for ab in range(4)],
                         axis=1)                                         # (Cout, 4*L)
    up = jnp.dot(yc, pc_ref[...], preferred_element_type=jnp.float32)    # (Cout, 4*L)
    return _prelu(up, alpha)


# ----------------------------------------------------------------------------
# The single fused decoder kernel (no grid: one invocation does everything).
# ----------------------------------------------------------------------------

def _fused_decoder_kernel(*refs, n_levels, level_dims):
    it = iter(refs)
    alphas_ref = next(it)                                    # SMEM (3*n_levels,)
    x_ref = next(it)                                         # (C_deep, L_deep)
    skip_refs = [next(it) for _ in range(n_levels)]          # coarse -> fine
    lvl_refs = [tuple(next(it) for _ in range(5)) for _ in range(n_levels)]
    wout_ref = next(it)                                      # (8, 9*c0 + 1), rows >= dim are 0
    o_ref = next(it)                                         # (8, L_fine)

    x = x_ref[...]
    masks = deltas = None
    for li in range(n_levels):
        H, W, L, cout_d = level_dims[li]                     # resolution AFTER this deconv
        wd_ref, pc_ref, wc1_ref, wc2_ref, m_ref = lvl_refs[li]
        a_d = alphas_ref[3 * li + 0]
        a_c1 = alphas_ref[3 * li + 1]
        a_c2 = alphas_ref[3 * li + 2]

        up = _deconv2x2_stacked(x, wd_ref, pc_ref, a_d, cout_d)
        # torch.cat([deconv(x), skip], dim=1) folded into conv1's stacked K:
        x_cat = jnp.concatenate([up, skip_refs[li][...]], axis=0)

        m = m_ref[...]                                       # (9, L)
        masks = [m[k:k + 1, :] for k in range(9)]
        deltas = tuple(dy * W + dx for dy in (-1, 0, 1) for dx in (-1, 0, 1))
        x = _conv3x3_stacked(x_cat, wc1_ref, masks, deltas, a_c1)
        x = _conv3x3_stacked(x, wc2_ref, masks, deltas, a_c2)

    # out_conv (bias-free, output channels zero-padded to 8 for an unmasked store)
    y = _conv3x3_stacked(x, wout_ref, masks, deltas, None)
    o_ref[...] = y.astype(o_ref.dtype)


# ----------------------------------------------------------------------------
# Host-side packing (all jnp ops on parameter values so it works under jit;
# shape-only constants built with numpy).
# ----------------------------------------------------------------------------

def _to_cl(x_nchw):
    """NCHW -> (C, N*H*W); lane index = n*H*W + h*W + w (pure layout plumbing)."""
    n, c, h, w = x_nchw.shape
    return jnp.transpose(x_nchw, (1, 0, 2, 3)).reshape(c, n * h * w).astype(jnp.float32)


def _pack_conv3_w_stacked(w_hwio, bias, cout_pad=None):
    """HWIO (3,3,Cin,Cout) -> (Cout[, padded], 9*Cin + 1) with bias in the last column."""
    kh, kw, cin, cout = w_hwio.shape
    w = w_hwio.astype(jnp.float32).reshape(kh * kw, cin, cout)
    w = jnp.transpose(w, (2, 0, 1)).reshape(cout, kh * kw * cin)
    b = (jnp.zeros((cout, 1), jnp.float32) if bias is None
         else bias.astype(jnp.float32).reshape(cout, 1))
    w = jnp.concatenate([w, b], axis=1)
    if cout_pad is not None and cout_pad > cout:
        w = jnp.concatenate(
            [w, jnp.zeros((cout_pad - cout, w.shape[1]), jnp.float32)], axis=0)
    return w


def _pack_deconv_w_stacked(w_t, bias):
    """ConvTranspose weight (Cin, Cout, 2, 2) -> (4*Cout, Cin + 1); bias in last column."""
    cin, cout = w_t.shape[0], w_t.shape[1]
    w4 = jnp.transpose(w_t.astype(jnp.float32), (2, 3, 1, 0)).reshape(4, cout, cin)
    b = jnp.broadcast_to(bias.astype(jnp.float32).reshape(1, cout, 1), (4, cout, 1))
    return jnp.concatenate([w4, b], axis=2).reshape(4 * cout, cin + 1)


def _pixel_shuffle_perm(N, Hc, Wc):
    """Fused 0/1 permutation (4*N*Hc*Wc, N*2Hc*2Wc): phase block (a,b) at coarse (n,h,w)
    -> interleaved fine position (n, 2h+a, 2w+b)."""
    HWc = Hc * Wc
    Lc = N * HWc
    Hf, Wf = 2 * Hc, 2 * Wc
    HWf = Hf * Wf
    P = np.zeros((4 * Lc, N * HWf), np.float32)
    for ab in range(4):
        a, b = ab // 2, ab % 2
        for n in range(N):
            for h in range(Hc):
                for w in range(Wc):
                    P[ab * Lc + n * HWc + h * Wc + w,
                      n * HWf + (2 * h + a) * Wf + (2 * w + b)] = 1.0
    return jnp.asarray(P)


def _make_tap_masks(N, H, W):
    """(9, N*H*W) {0,1} masks: 1 where tap (dy, dx) stays inside its own image."""
    HW = H * W
    q = np.arange(N * HW)
    p = q % HW
    row = p // W
    col = p % W
    masks = []
    for dy in (-1, 0, 1):
        for dx in (-1, 0, 1):
            ok = (row + dy >= 0) & (row + dy < H) & (col + dx >= 0) & (col + dx < W)
            masks.append(ok.astype(np.float32))
    return jnp.asarray(np.stack(masks))


def lk_decoder_disp_pallas(params, feats_nchw, out_w=None):
    """Fused Pallas decoder.  feats_nchw = [out[0], ..., out[-1]] in NCHW.
    Returns the displacement field (N, dim, H, W)."""
    n_levels = len(params["deconv"])
    assert n_levels >= 1
    if out_w is None:
        out_w = params["out_w"]
    dim = out_w.shape[-1]
    N, _, H0, W0 = feats_nchw[0].shape

    x_in = _to_cl(feats_nchw[-1])
    skips, level_dims, alphas, lvl_inputs = [], [], [], []
    for li, i in enumerate(range(n_levels - 1, -1, -1)):
        f = feats_nchw[i]
        H, W = f.shape[2], f.shape[3]
        skips.append(_to_cl(f))
        wt, bt, at = params["deconv"][i]
        (w1, b1, a1), (w2, b2, a2) = params["conv"][i]
        cu = wt.shape[1]                                   # deconv out channels
        level_dims.append((H, W, N * H * W, cu))
        alphas += [at, a1, a2]
        lvl_inputs += [
            _pack_deconv_w_stacked(wt, bt),                # (4*cu, cin+1)
            _pixel_shuffle_perm(N, H // 2, W // 2),        # (4*N*HWc, N*HW)
            _pack_conv3_w_stacked(w1, b1),                 # (cu, 9*2cu + 1)
            _pack_conv3_w_stacked(w2, b2),
            _make_tap_masks(N, H, W),                      # (9, N*HW)
        ]
    alphas = jnp.stack([jnp.asarray(a, jnp.float32) for a in alphas])
    w_out = _pack_conv3_w_stacked(out_w, None, cout_pad=8)  # sublane-dense output store

    inputs = [alphas, x_in] + skips + lvl_inputs + [w_out]
    smem = pl.BlockSpec(memory_space=pltpu.MemorySpace.SMEM)
    vmem = pl.BlockSpec(memory_space=pltpu.MemorySpace.VMEM)
    kernel = functools.partial(_fused_decoder_kernel, n_levels=n_levels,
                               level_dims=tuple(level_dims))

    disp8 = pl.pallas_call(
        kernel,
        out_shape=jax.ShapeDtypeStruct((8, N * H0 * W0), jnp.float32),
        in_specs=[smem] + [vmem] * (len(inputs) - 1),
        out_specs=vmem,
    )(*inputs)

    # (8, N*HW) -> (N, dim, H, W): drop the zero-padded channels, un-fold the batch.
    return disp8.reshape(8, N, H0, W0).transpose(1, 0, 2, 3)[:, :dim]


# ----------------------------------------------------------------------------
# Pure-JAX reference of the decoder conv path (for the numerical check)
# ----------------------------------------------------------------------------

def lk_decoder_disp_ref(params, feats_nchw, out_w=None):
    if out_w is None:
        out_w = params["out_w"]
    n_levels = len(params["deconv"])
    hp = jax.lax.Precision.HIGHEST
    x = feats_nchw[-1]
    for i in range(n_levels - 1, -1, -1):
        wt, bt, at = params["deconv"][i]
        up = jnp.einsum("nchw,cdab->ndhawb", x, wt, precision=hp)
        Nn, Co, Hh, _, Ww, _ = up.shape
        up = up.reshape(Nn, Co, 2 * Hh, 2 * Ww) + bt[None, :, None, None]
        up = jnp.where(up >= 0, up, at * up)
        x = jnp.concatenate([up, feats_nchw[i]], axis=1)
        for (w, b, a) in params["conv"][i]:
            y = jax.lax.conv_general_dilated(
                x, w, (1, 1), "SAME",
                dimension_numbers=("NCHW", "HWIO", "NCHW"), precision=hp)
            y = y + b[None, :, None, None]
            x = jnp.where(y >= 0, y, a * y)
    return jax.lax.conv_general_dilated(
        x, out_w, (1, 1), "SAME",
        dimension_numbers=("NCHW", "HWIO", "NCHW"), precision=hp)


# ----------------------------------------------------------------------------
# SpatialTransformer-style warp / overlap mask (plain JAX glue; gather-based)
# ----------------------------------------------------------------------------

def warp2d(src, flow, mode="bilinear"):
    """src: (N, C, H, W); flow: (N, 2, H, W), channel 0 -> rows, 1 -> cols."""
    N, C, H, W = src.shape
    gy, gx = jnp.meshgrid(jnp.arange(H, dtype=src.dtype),
                          jnp.arange(W, dtype=src.dtype), indexing="ij")
    ys = gy[None] + flow[:, 0]
    xs = gx[None] + flow[:, 1]
    order = 0 if mode == "nearest" else 1

    def one(img2d, y, x):
        return jax.scipy.ndimage.map_coordinates(img2d, [y, x], order=order,
                                                 mode="constant", cval=0.0)

    return jax.vmap(lambda imgC, y, x: jax.vmap(one, in_axes=(0, None, None))(imgC, y, x))(src, ys, xs)


def overlap_mask2d(flow):
    N, _, H, W = flow.shape
    gy, gx = jnp.meshgrid(jnp.arange(H, dtype=flow.dtype),
                          jnp.arange(W, dtype=flow.dtype), indexing="ij")
    ys = gy[None] + flow[:, 0]
    xs = gx[None] + flow[:, 1]
    ok = (ys >= 0) & (ys <= H - 1) & (xs >= 0) & (xs <= W - 1)
    return ok[:, None]  # (N, 1, H, W) bool


# ----------------------------------------------------------------------------
# Parameters (deterministic, in-script) and the full module forward
# ----------------------------------------------------------------------------

def init_params(key, n_levels=2, c0=4, dim=2):
    params = {"deconv": [], "conv": []}
    k = key

    def nrm(kk, shape, scale=0.1):
        return scale * jax.random.normal(kk, shape, jnp.float32)

    for i in range(n_levels):
        cu = c0 * 2 ** i
        k, k1, k2, k3, k4, k5, k6 = jax.random.split(k, 7)
        # Deconv(cu, cu, k=2, s=2): weight (Cin, Cout, 2, 2), bias (Cout,), PReLU alpha=0.25
        params["deconv"].append((nrm(k1, (cu, cu, 2, 2)), nrm(k2, (cu,), 0.01),
                                 jnp.float32(0.25)))
        c_out2 = cu if i == 0 else cu // 2
        conv1 = (nrm(k3, (3, 3, 2 * cu, cu)), nrm(k4, (cu,), 0.01), jnp.float32(0.25))
        conv2 = (nrm(k5, (3, 3, cu, c_out2)), nrm(k6, (c_out2,), 0.01), jnp.float32(0.25))
        params["conv"].append([conv1, conv2])
    # out_conv: Conv(c0 -> dim, k=3, same, bias=False), zero-initialized (as in the module)
    params["out_w"] = jnp.zeros((3, 3, c0, dim), jnp.float32)
    return params


def lk_decoder_forward(params, feats_nchw, moving_img, moving_mask, fixed_mask):
    """Returns (disp, warped_moving_img, mask); disp is the module's return value."""
    disp = lk_decoder_disp_pallas(params, feats_nchw)            # (N, dim, H, W)

    # output_vel=False branch: disp = out_conv(x); warp moving image / masks with disp
    warped_moving_img = warp2d(moving_img, disp, "bilinear")
    mask = warp2d(moving_mask.astype(jnp.float32), disp, "nearest") > 0
    mask = jnp.logical_and(mask, overlap_mask2d(disp))
    mask = jnp.logical_and(mask, fixed_mask.astype(bool))
    return disp, warped_moving_img, mask


# ----------------------------------------------------------------------------
# Main
# ----------------------------------------------------------------------------

if __name__ == "__main__":
    N, C0, Hs, Ws, n_levels = 2, 4, 16, 16, 2
    key = jax.random.PRNGKey(0)
    keys = jax.random.split(key, 8)

    # Encoder feature pyramid "out" (NCHW), consistent with the decoder's channel math:
    feats = [
        jax.random.normal(keys[0], (N, C0, Hs, Ws), jnp.float32),                  # out[0]
        jax.random.normal(keys[1], (N, C0 * 2, Hs // 2, Ws // 2), jnp.float32),    # out[1]
        jax.random.normal(keys[2], (N, C0 * 2, Hs // 4, Ws // 4), jnp.float32),    # out[-1]
    ]
    moving_img = jax.random.uniform(keys[3], (N, 1, Hs, Ws), jnp.float32)
    moving_mask = (jax.random.uniform(keys[4], (N, 1, Hs, Ws)) > 0.3).astype(jnp.float32)
    fixed_mask = (jax.random.uniform(keys[5], (N, 1, Hs, Ws)) > 0.3).astype(jnp.float32)

    params = init_params(keys[6], n_levels=n_levels, c0=C0, dim=2)

    # --- numerics check of the fused Pallas decoder vs a pure-JAX reference ----------
    # (use a non-zero out_conv weight so the whole deconv/conv/concat path is exercised)
    w_out_test = 0.1 * jax.random.normal(keys[7], (3, 3, C0, 2), jnp.float32)
    d_pl = lk_decoder_disp_pallas(params, feats, out_w=w_out_test)
    d_ref = lk_decoder_disp_ref(params, feats, out_w=w_out_test)
    jax.block_until_ready((d_pl, d_ref))
    assert d_pl.shape == (N, 2, Hs, Ws)
    err = float(jnp.max(jnp.abs(d_pl - d_ref)))
    assert err < 5e-3, f"fused decoder mismatch, max abs err = {err}"

    # --- full LKDecoder forward (module semantics: out_conv is zero-initialized) -----
    fwd = jax.jit(lk_decoder_forward)
    disp, warped, mask = fwd(params, feats, moving_img, moving_mask, fixed_mask)
    jax.block_until_ready((disp, warped, mask))

    assert disp.shape == (N, 2, Hs, Ws)
    assert bool(jnp.all(disp == 0.0))                    # zero-init out_conv -> zero disp
    assert jnp.allclose(warped, moving_img, atol=1e-5)   # zero disp -> identity warp
    assert mask.shape == (N, 1, Hs, Ws) and mask.dtype == jnp.bool_

    print("KERNEL_OK")
</pallas_src>

<mosaic_0001>
module attributes {stable_mosaic.version = 11 : i64} {
  func.func @_fused_decoder_kernel(%arg0: memref<6xf32, #tpu.memory_space<smem>>, %arg1: memref<8x32xf32, #tpu.memory_space<vmem>>, %arg2: memref<8x128xf32, #tpu.memory_space<vmem>>, %arg3: memref<4x512xf32, #tpu.memory_space<vmem>>, %arg4: memref<32x9xf32, #tpu.memory_space<vmem>>, %arg5: memref<128x128xf32, #tpu.memory_space<vmem>>, %arg6: memref<8x145xf32, #tpu.memory_space<vmem>>, %arg7: memref<4x73xf32, #tpu.memory_space<vmem>>, %arg8: memref<9x128xf32, #tpu.memory_space<vmem>>, %arg9: memref<16x5xf32, #tpu.memory_space<vmem>>, %arg10: memref<512x512xf32, #tpu.memory_space<vmem>>, %arg11: memref<4x73xf32, #tpu.memory_space<vmem>>, %arg12: memref<4x37xf32, #tpu.memory_space<vmem>>, %arg13: memref<9x512xf32, #tpu.memory_space<vmem>>, %arg14: memref<8x37xf32, #tpu.memory_space<vmem>>, %arg15: memref<8x512xf32, #tpu.memory_space<vmem>>) attributes {dimension_semantics = [], scalar_prefetch = 0 : i64, scratch_operands = 0 : i64, tpu.core_type = #tpu.core_type<tc>} {
    %c0 = arith.constant 0 : index
    %c0_0 = arith.constant 0 : index
    %0 = vector.load %arg1[%c0, %c0_0] : memref<8x32xf32, #tpu.memory_space<vmem>>, vector<8x32xf32>
    %c0_1 = arith.constant 0 : index
    %1 = memref.load %arg0[%c0_1] : memref<6xf32, #tpu.memory_space<smem>>
    %c1 = arith.constant 1 : index
    %2 = memref.load %arg0[%c1] : memref<6xf32, #tpu.memory_space<smem>>
    %c2 = arith.constant 2 : index
    %3 = memref.load %arg0[%c2] : memref<6xf32, #tpu.memory_space<smem>>
    %cst = arith.constant 1.000000e+00 : f32
    %4 = vector.broadcast %cst : f32 to vector<1x32xf32>
    %5 = tpu.concatenate %0, %4 in 0 : vector<8x32xf32>, vector<1x32xf32> -> vector<9x32xf32>
    %c0_2 = arith.constant 0 : index
    %c0_3 = arith.constant 0 : index
    %6 = vector.load %arg4[%c0_2, %c0_3] : memref<32x9xf32, #tpu.memory_space<vmem>>, vector<32x9xf32>
    %cst_4 = arith.constant dense<0.000000e+00> : vector<32x32xf32>
    %7 = tpu.matmul %6, %5, %cst_4 {dimension_numbers = #tpu.dot_dimension_numbers<[1], [0], [0], [1], [0, 0, 1, 1], [], []>} : vector<32x9xf32>, vector<9x32xf32>, vector<32x32xf32> -> vector<32x32xf32>
    %8 = vector.extract_strided_slice %7 {offsets = [0, 0], sizes = [8, 32], strides = [1, 1]} : vector<32x32xf32> to vector<8x32xf32>
    %9 = vector.extract_strided_slice %7 {offsets = [8, 0], sizes = [8, 32], strides = [1, 1]} : vector<32x32xf32> to vector<8x32xf32>
    %10 = vector.extract_strided_slice %7 {offsets = [16, 0], sizes = [8, 32], strides = [1, 1]} : vector<32x32xf32> to vector<8x32xf32>
    %11 = vector.extract_strided_slice %7 {offsets = [24, 0], sizes = [8, 32], strides = [1, 1]} : vector<32x32xf32> to vector<8x32xf32>
    %12 = tpu.concatenate %8, %9, %10, %11 in 1 : vector<8x32xf32>, vector<8x32xf32>, vector<8x32xf32>, vector<8x32xf32> -> vector<8x128xf32>
    %c0_5 = arith.constant 0 : index
    %c0_6 = arith.constant 0 : index
    %13 = vector.load %arg5[%c0_5, %c0_6] : memref<128x128xf32, #tpu.memory_space<vmem>>, vector<128x128xf32>
    %cst_7 = arith.constant dense<0.000000e+00> : vector<8x128xf32>
    %14 = tpu.matmul %12, %13, %cst_7 {dimension_numbers = #tpu.dot_dimension_numbers<[1], [0], [0], [1], [0, 0, 1, 1], [], []>} : vector<8x128xf32>, vector<128x128xf32>, vector<8x128xf32> -> vector<8x128xf32>
    %cst_8 = arith.constant 0.000000e+00 : f32
    %15 = vector.broadcast %cst_8 : f32 to vector<8x128xf32>
    %16 = arith.cmpf oge, %14, %15 : vector<8x128xf32>
    %17 = vector.broadcast %1 : f32 to vector<8x128xf32>
    %18 = arith.mulf %17, %14 : vector<8x128xf32>
    %19 = arith.select %16, %14, %18 : vector<8x128xi1>, vector<8x128xf32>
    %c0_9 = arith.constant 0 : index
    %c0_10 = arith.constant 0 : index
    %20 = vector.load %arg2[%c0_9, %c0_10] : memref<8x128xf32, #tpu.memory_space<vmem>>, vector<8x128xf32>
    %21 = tpu.concatenate %19, %20 in 0 : vector<8x128xf32>, vector<8x128xf32> -> vector<16x128xf32>
    %c0_11 = arith.constant 0 : index
    %c0_12 = arith.constant 0 : index
    %22 = vector.load %arg8[%c0_11, %c0_12] : memref<9x128xf32, #tpu.memory_space<vmem>>, vector<9x128xf32>
    %23 = vector.extract_strided_slice %22 {offsets = [0, 0], sizes = [1, 128], strides = [1, 1]} : vector<9x128xf32> to vector<1x128xf32>
    %24 = vector.extract_strided_slice %22 {offsets = [1, 0], sizes = [1, 128], strides = [1, 1]} : vector<9x128xf32> to vector<1x128xf32>
    %25 = vector.extract_strided_slice %22 {offsets = [2, 0], sizes = [1, 128], strides = [1, 1]} : vector<9x128xf32> to vector<1x128xf32>
    %26 = vector.extract_strided_slice %22 {offsets = [3, 0], sizes = [1, 128], strides = [1, 1]} : vector<9x128xf32> to vector<1x128xf32>
    %27 = vector.extract_strided_slice %22 {offsets = [5, 0], sizes = [1, 128], strides = [1, 1]} : vector<9x128xf32> to vector<1x128xf32>
    %28 = vector.extract_strided_slice %22 {offsets = [6, 0], sizes = [1, 128], strides = [1, 1]} : vector<9x128xf32> to vector<1x128xf32>
    %29 = vector.extract_strided_slice %22 {offsets = [7, 0], sizes = [1, 128], strides = [1, 1]} : vector<9x128xf32> to vector<1x128xf32>
    %30 = vector.extract_strided_slice %22 {offsets = [8, 0], sizes = [1, 128], strides = [1, 1]} : vector<9x128xf32> to vector<1x128xf32>
    %c9_i32 = arith.constant 9 : i32
    %31 = tpu.dynamic_rotate %21 by %c9_i32 dim 1 : vector<16x128xf32>, i32 -> vector<16x128xf32>
    %32 = vector.broadcast %23 : vector<1x128xf32> to vector<16x128xf32>
    %33 = arith.mulf %31, %32 : vector<16x128xf32>
    %c8_i32 = arith.constant 8 : i32
    %34 = tpu.dynamic_rotate %21 by %c8_i32 dim 1 : vector<16x128xf32>, i32 -> vector<16x128xf32>
    %35 = vector.broadcast %24 : vector<1x128xf32> to vector<16x128xf32>
    %36 = arith.mulf %34, %35 : vector<16x128xf32>
    %c7_i32 = arith.constant 7 : i32
    %37 = tpu.dynamic_rotate %21 by %c7_i32 dim 1 : vector<16x128xf32>, i32 -> vector<16x128xf32>
    %38 = vector.broadcast %25 : vector<1x128xf32> to vector<16x128xf32>
    %39 = arith.mulf %37, %38 : vector<16x128xf32>
    %c1_i32 = arith.constant 1 : i32
    %40 = tpu.dynamic_rotate %21 by %c1_i32 dim 1 : vector<16x128xf32>, i32 -> vector<16x128xf32>
    %41 = vector.broadcast %26 : vector<1x128xf32> to vector<16x128xf32>
    %42 = arith.mulf %40, %41 : vector<16x128xf32>
    %c127_i32 = arith.constant 127 : i32
    %43 = tpu.dynamic_rotate %21 by %c127_i32 dim 1 : vector<16x128xf32>, i32 -> vector<16x128xf32>
    %44 = vector.broadcast %27 : vector<1x128xf32> to vector<16x128xf32>
    %45 = arith.mulf %43, %44 : vector<16x128xf32>
    %c121_i32 = arith.constant 121 : i32
    %46 = tpu.dynamic_rotate %21 by %c121_i32 dim 1 : vector<16x128xf32>, i32 -> vector<16x128xf32>
    %47 = vector.broadcast %28 : vector<1x128xf32> to vector<16x128xf32>
    %48 = arith.mulf %46, %47 : vector<16x128xf32>
    %c120_i32 = arith.constant 120 : i32
    %49 = tpu.dynamic_rotate %21 by %c120_i32 dim 1 : vector<16x128xf32>, i32 -> vector<16x128xf32>
    %50 = vector.broadcast %29 : vector<1x128xf32> to vector<16x128xf32>
    %51 = arith.mulf %49, %50 : vector<16x128xf32>
    %c119_i32 = arith.constant 119 : i32
    %52 = tpu.dynamic_rotate %21 by %c119_i32 dim 1 : vector<16x128xf32>, i32 -> vector<16x128xf32>
    %53 = vector.broadcast %30 : vector<1x128xf32> to vector<16x128xf32>
    %54 = arith.mulf %52, %53 : vector<16x128xf32>
    %cst_13 = arith.constant 1.000000e+00 : f32
    %55 = vector.broadcast %cst_13 : f32 to vector<1x128xf32>
    %56 = tpu.concatenate %33, %36, %39, %42, %21, %45, %48, %51, %54, %55 in 0 : vector<16x128xf32>, vector<16x128xf32>, vector<16x128xf32>, vector<16x128xf32>, vector<16x128xf32>, vector<16x128xf32>, vector<16x128xf32>, vector<16x128xf32>, vector<16x128xf32>, vector<1x128xf32> -> vector<145x128xf32>
    %c0_14 = arith.constant 0 : index
    %c0_15 = arith.constant 0 : index
    %57 = vector.load %arg6[%c0_14, %c0_15] : memref<8x145xf32, #tpu.memory_space<vmem>>, vector<8x145xf32>
    %cst_16 = arith.constant dense<0.000000e+00> : vector<8x128xf32>
    %58 = tpu.matmul %57, %56, %cst_16 {dimension_numbers = #tpu.dot_dimension_numbers<[1], [0], [0], [1], [0, 0, 1, 1], [], []>} : vector<8x145xf32>, vector<145x128xf32>, vector<8x128xf32> -> vector<8x128xf32>
    %cst_17 = arith.constant 0.000000e+00 : f32
    %59 = vector.broadcast %cst_17 : f32 to vector<8x128xf32>
    %60 = arith.cmpf oge, %58, %59 : vector<8x128xf32>
    %61 = vector.broadcast %2 : f32 to vector<8x128xf32>
    %62 = arith.mulf %61, %58 : vector<8x128xf32>
    %63 = arith.select %60, %58, %62 : vector<8x128xi1>, vector<8x128xf32>
    %c9_i32_18 = arith.constant 9 : i32
    %64 = tpu.dynamic_rotate %63 by %c9_i32_18 dim 1 : vector<8x128xf32>, i32 -> vector<8x128xf32>
    %65 = vector.broadcast %23 : vector<1x128xf32> to vector<8x128xf32>
    %66 = arith.mulf %64, %65 : vector<8x128xf32>
    %c8_i32_19 = arith.constant 8 : i32
    %67 = tpu.dynamic_rotate %63 by %c8_i32_19 dim 1 : vector<8x128xf32>, i32 -> vector<8x128xf32>
    %68 = vector.broadcast %24 : vector<1x128xf32> to vector<8x128xf32>
    %69 = arith.mulf %67, %68 : vector<8x128xf32>
    %c7_i32_20 = arith.constant 7 : i32
    %70 = tpu.dynamic_rotate %63 by %c7_i32_20 dim 1 : vector<8x128xf32>, i32 -> vector<8x128xf32>
    %71 = vector.broadcast %25 : vector<1x128xf32> to vector<8x128xf32>
    %72 = arith.mulf %70, %71 : vector<8x128xf32>
    %c1_i32_21 = arith.constant 1 : i32
    %73 = tpu.dynamic_rotate %63 by %c1_i32_21 dim 1 : vector<8x128xf32>, i32 -> vector<8x128xf32>
    %74 = vector.broadcast %26 : vector<1x128xf32> to vector<8x128xf32>
    %75 = arith.mulf %73, %74 : vector<8x128xf32>
    %c127_i32_22 = arith.constant 127 : i32
    %76 = tpu.dynamic_rotate %63 by %c127_i32_22 dim 1 : vector<8x128xf32>, i32 -> vector<8x128xf32>
    %77 = vector.broadcast %27 : vector<1x128xf32> to vector<8x128xf32>
    %78 = arith.mulf %76, %77 : vector<8x128xf32>
    %c121_i32_23 = arith.constant 121 : i32
    %79 = tpu.dynamic_rotate %63 by %c121_i32_23 dim 1 : vector<8x128xf32>, i32 -> vector<8x128xf32>
    %80 = vector.broadcast %28 : vector<1x128xf32> to vector<8x128xf32>
    %81 = arith.mulf %79, %80 : vector<8x128xf32>
    %c120_i32_24 = arith.constant 120 : i32
    %82 = tpu.dynamic_rotate %63 by %c120_i32_24 dim 1 : vector<8x128xf32>, i32 -> vector<8x128xf32>
    %83 = vector.broadcast %29 : vector<1x128xf32> to vector<8x128xf32>
    %84 = arith.mulf %82, %83 : vector<8x128xf32>
    %c119_i32_25 = arith.constant 119 : i32
    %85 = tpu.dynamic_rotate %63 by %c119_i32_25 dim 1 : vector<8x128xf32>, i32 -> vector<8x128xf32>
    %86 = vector.broadcast %30 : vector<1x128xf32> to vector<8x128xf32>
    %87 = arith.mulf %85, %86 : vector<8x128xf32>
    %cst_26 = arith.constant 1.000000e+00 : f32
    %88 = vector.broadcast %cst_26 : f32 to vector<1x128xf32>
    %89 = tpu.concatenate %66, %69, %72, %75, %63, %78, %81, %84, %87, %88 in 0 : vector<8x128xf32>, vector<8x128xf32>, vector<8x128xf32>, vector<8x128xf32>, vector<8x128xf32>, vector<8x128xf32>, vector<8x128xf32>, vector<8x128xf32>, vector<8x128xf32>, vector<1x128xf32> -> vector<73x128xf32>
    %c0_27 = arith.constant 0 : index
    %c0_28 = arith.constant 0 : index
    %90 = vector.load %arg7[%c0_27, %c0_28] : memref<4x73xf32, #tpu.memory_space<vmem>>, vector<4x73xf32>
    %cst_29 = arith.constant dense<0.000000e+00> : vector<4x128xf32>
    %91 = tpu.matmul %90, %89, %cst_29 {dimension_numbers = #tpu.dot_dimension_numbers<[1], [0], [0], [1], [0, 0, 1, 1], [], []>} : vector<4x73xf32>, vector<73x128xf32>, vector<4x128xf32> -> vector<4x128xf32>
    %cst_30 = arith.constant 0.000000e+00 : f32
    %92 = vector.broadcast %cst_30 : f32 to vector<4x128xf32>
    %93 = arith.cmpf oge, %91, %92 : vector<4x128xf32>
    %94 = vector.broadcast %3 : f32 to vector<4x128xf32>
    %95 = arith.mulf %94, %91 : vector<4x128xf32>
    %96 = arith.select %93, %91, %95 : vector<4x128xi1>, vector<4x128xf32>
    %c3 = arith.constant 3 : index
    %97 = memref.load %arg0[%c3] : memref<6xf32, #tpu.memory_space<smem>>
    %c4 = arith.constant 4 : index
    %98 = memref.load %arg0[%c4] : memref<6xf32, #tpu.memory_space<smem>>
    %c5 = arith.constant 5 : index
    %99 = memref.load %arg0[%c5] : memref<6xf32, #tpu.memory_space<smem>>
    %cst_31 = arith.constant 1.000000e+00 : f32
    %100 = vector.broadcast %cst_31 : f32 to vector<1x128xf32>
    %101 = tpu.concatenate %96, %100 in 0 : vector<4x128xf32>, vector<1x128xf32> -> vector<5x128xf32>
    %c0_32 = arith.constant 0 : index
    %c0_33 = arith.constant 0 : index
    %102 = vector.load %arg9[%c0_32, %c0_33] : memref<16x5xf32, #tpu.memory_space<vmem>>, vector<16x5xf32>
    %cst_34 = arith.constant dense<0.000000e+00> : vector<16x128xf32>
    %103 = tpu.matmul %102, %101, %cst_34 {dimension_numbers = #tpu.dot_dimension_numbers<[1], [0], [0], [1], [0, 0, 1, 1], [], []>} : vector<16x5xf32>, vector<5x128xf32>, vector<16x128xf32> -> vector<16x128xf32>
    %104 = vector.extract_strided_slice %103 {offsets = [0, 0], sizes = [4, 128], strides = [1, 1]} : vector<16x128xf32> to vector<4x128xf32>
    %105 = vector.extract_strided_slice %103 {offsets = [4, 0], sizes = [4, 128], strides = [1, 1]} : vector<16x128xf32> to vector<4x128xf32>
    %106 = vector.extract_strided_slice %103 {offsets = [8, 0], sizes = [4, 128], strides = [1, 1]} : vector<16x128xf32> to vector<4x128xf32>
    %107 = vector.extract_strided_slice %103 {offsets = [12, 0], sizes = [4, 128], strides = [1, 1]} : vector<16x128xf32> to vector<4x128xf32>
    %108 = tpu.concatenate %104, %105, %106, %107 in 1 : vector<4x128xf32>, vector<4x128xf32>, vector<4x128xf32>, vector<4x128xf32> -> vector<4x512xf32>
    %c0_35 = arith.constant 0 : index
    %c0_36 = arith.constant 0 : index
    %109 = vector.load %arg10[%c0_35, %c0_36] : memref<512x512xf32, #tpu.memory_space<vmem>>, vector<512x512xf32>
    %cst_37 = arith.constant dense<0.000000e+00> : vector<4x512xf32>
    %110 = tpu.matmul %108, %109, %cst_37 {dimension_numbers = #tpu.dot_dimension_numbers<[1], [0], [0], [1], [0, 0, 1, 1], [], []>} : vector<4x512xf32>, vector<512x512xf32>, vector<4x512xf32> -> vector<4x512xf32>
    %cst_38 = arith.constant 0.000000e+00 : f32
    %111 = vector.broadcast %cst_38 : f32 to vector<4x512xf32>
    %112 = arith.cmpf oge, %110, %111 : vector<4x512xf32>
    %113 = vector.broadcast %97 : f32 to vector<4x512xf32>
    %114 = arith.mulf %113, %110 : vector<4x512xf32>
    %115 = arith.select %112, %110, %114 : vector<4x512xi1>, vector<4x512xf32>
    %c0_39 = arith.constant 0 : index
    %c0_40 = arith.constant 0 : index
    %116 = vector.load %arg3[%c0_39, %c0_40] : memref<4x512xf32, #tpu.memory_space<vmem>>, vector<4x512xf32>
    %117 = tpu.concatenate %115, %116 in 0 : vector<4x512xf32>, vector<4x512xf32> -> vector<8x512xf32>
    %c0_41 = arith.constant 0 : index
    %c0_42 = arith.constant 0 : index
    %118 = vector.load %arg13[%c0_41, %c0_42] : memref<9x512xf32, #tpu.memory_space<vmem>>, vector<9x512xf32>
    %119 = vector.extract_strided_slice %118 {offsets = [0, 0], sizes = [1, 512], strides = [1, 1]} : vector<9x512xf32> to vector<1x512xf32>
    %120 = vector.extract_strided_slice %118 {offsets = [1, 0], sizes = [1, 512], strides = [1, 1]} : vector<9x512xf32> to vector<1x512xf32>
    %121 = vector.extract_strided_slice %118 {offsets = [2, 0], sizes = [1, 512], strides = [1, 1]} : vector<9x512xf32> to vector<1x512xf32>
    %122 = vector.extract_strided_slice %118 {offsets = [3, 0], sizes = [1, 512], strides = [1, 1]} : vector<9x512xf32> to vector<1x512xf32>
    %123 = vector.extract_strided_slice %118 {offsets = [5, 0], sizes = [1, 512], strides = [1, 1]} : vector<9x512xf32> to vector<1x512xf32>
    %124 = vector.extract_strided_slice %118 {offsets = [6, 0], sizes = [1, 512], strides = [1, 1]} : vector<9x512xf32> to vector<1x512xf32>
    %125 = vector.extract_strided_slice %118 {offsets = [7, 0], sizes = [1, 512], strides = [1, 1]} : vector<9x512xf32> to vector<1x512xf32>
    %126 = vector.extract_strided_slice %118 {offsets = [8, 0], sizes = [1, 512], strides = [1, 1]} : vector<9x512xf32> to vector<1x512xf32>
    %c17_i32 = arith.constant 17 : i32
    %127 = tpu.dynamic_rotate %117 by %c17_i32 dim 1 : vector<8x512xf32>, i32 -> vector<8x512xf32>
    %128 = vector.broadcast %119 : vector<1x512xf32> to vector<8x512xf32>
    %129 = arith.mulf %127, %128 : vector<8x512xf32>
    %c16_i32 = arith.constant 16 : i32
    %130 = tpu.dynamic_rotate %117 by %c16_i32 dim 1 : vector<8x512xf32>, i32 -> vector<8x512xf32>
    %131 = vector.broadcast %120 : vector<1x512xf32> to vector<8x512xf32>
    %132 = arith.mulf %130, %131 : vector<8x512xf32>
    %c15_i32 = arith.constant 15 : i32
    %133 = tpu.dynamic_rotate %117 by %c15_i32 dim 1 : vector<8x512xf32>, i32 -> vector<8x512xf32>
    %134 = vector.broadcast %121 : vector<1x512xf32> to vector<8x512xf32>
    %135 = arith.mulf %133, %134 : vector<8x512xf32>
    %c1_i32_43 = arith.constant 1 : i32
    %136 = tpu.dynamic_rotate %117 by %c1_i32_43 dim 1 : vector<8x512xf32>, i32 -> vector<8x512xf32>
    %137 = vector.broadcast %122 : vector<1x512xf32> to vector<8x512xf32>
    %138 = arith.mulf %136, %137 : vector<8x512xf32>
    %c511_i32 = arith.constant 511 : i32
    %139 = tpu.dynamic_rotate %117 by %c511_i32 dim 1 : vector<8x512xf32>, i32 -> vector<8x512xf32>
    %140 = vector.broadcast %123 : vector<1x512xf32> to vector<8x512xf32>
    %141 = arith.mulf %139, %140 : vector<8x512xf32>
    %c497_i32 = arith.constant 497 : i32
    %142 = tpu.dynamic_rotate %117 by %c497_i32 dim 1 : vector<8x512xf32>, i32 -> vector<8x512xf32>
    %143 = vector.broadcast %124 : vector<1x512xf32> to vector<8x512xf32>
    %144 = arith.mulf %142, %143 : vector<8x512xf32>
    %c496_i32 = arith.constant 496 : i32
    %145 = tpu.dynamic_rotate %117 by %c496_i32 dim 1 : vector<8x512xf32>, i32 -> vector<8x512xf32>
    %146 = vector.broadcast %125 : vector<1x512xf32> to vector<8x512xf32>
    %147 = arith.mulf %145, %146 : vector<8x512xf32>
    %c495_i32 = arith.constant 495 : i32
    %148 = tpu.dynamic_rotate %117 by %c495_i32 dim 1 : vector<8x512xf32>, i32 -> vector<8x512xf32>
    %149 = vector.broadcast %126 : vector<1x512xf32> to vector<8x512xf32>
    %150 = arith.mulf %148, %149 : vector<8x512xf32>
    %cst_44 = arith.constant 1.000000e+00 : f32
    %151 = vector.broadcast %cst_44 : f32 to vector<1x512xf32>
    %152 = tpu.concatenate %129, %132, %135, %138, %117, %141, %144, %147, %150, %151 in 0 : vector<8x512xf32>, vector<8x512xf32>, vector<8x512xf32>, vector<8x512xf32>, vector<8x512xf32>, vector<8x512xf32>, vector<8x512xf32>, vector<8x512xf32>, vector<8x512xf32>, vector<1x512xf32> -> vector<73x512xf32>
    %c0_45 = arith.constant 0 : index
    %c0_46 = arith.constant 0 : index
    %153 = vector.load %arg11[%c0_45, %c0_46] : memref<4x73xf32, #tpu.memory_space<vmem>>, vector<4x73xf32>
    %cst_47 = arith.constant dense<0.000000e+00> : vector<4x512xf32>
    %154 = tpu.matmul %153, %152, %cst_47 {dimension_numbers = #tpu.dot_dimension_numbers<[1], [0], [0], [1], [0, 0, 1, 1], [], []>} : vector<4x73xf32>, vector<73x512xf32>, vector<4x512xf32> -> vector<4x512xf32>
    %cst_48 = arith.constant 0.000000e+00 : f32
    %155 = vector.broadcast %cst_48 : f32 to vector<4x512xf32>
    %156 = arith.cmpf oge, %154, %155 : vector<4x512xf32>
    %157 = vector.broadcast %98 : f32 to vector<4x512xf32>
    %158 = arith.mulf %157, %154 : vector<4x512xf32>
    %159 = arith.select %156, %154, %158 : vector<4x512xi1>, vector<4x512xf32>
    %c17_i32_49 = arith.constant 17 : i32
    %160 = tpu.dynamic_rotate %159 by %c17_i32_49 dim 1 : vector<4x512xf32>, i32 -> vector<4x512xf32>
    %161 = vector.broadcast %119 : vector<1x512xf32> to vector<4x512xf32>
    %162 = arith.mulf %160, %161 : vector<4x512xf32>
    %c16_i32_50 = arith.constant 16 : i32
    %163 = tpu.dynamic_rotate %159 by %c16_i32_50 dim 1 : vector<4x512xf32>, i32 -> vector<4x512xf32>
    %164 = vector.broadcast %120 : vector<1x512xf32> to vector<4x512xf32>
    %165 = arith.mulf %163, %164 : vector<4x512xf32>
    %c15_i32_51 = arith.constant 15 : i32
    %166 = tpu.dynamic_rotate %159 by %c15_i32_51 dim 1 : vector<4x512xf32>, i32 -> vector<4x512xf32>
    %167 = vector.broadcast %121 : vector<1x512xf32> to vector<4x512xf32>
    %168 = arith.mulf %166, %167 : vector<4x512xf32>
    %c1_i32_52 = arith.constant 1 : i32
    %169 = tpu.dynamic_rotate %159 by %c1_i32_52 dim 1 : vector<4x512xf32>, i32 -> vector<4x512xf32>
    %170 = vector.broadcast %122 : vector<1x512xf32> to vector<4x512xf32>
    %171 = arith.mulf %169, %170 : vector<4x512xf32>
    %c511_i32_53 = arith.constant 511 : i32
    %172 = tpu.dynamic_rotate %159 by %c511_i32_53 dim 1 : vector<4x512xf32>, i32 -> vector<4x512xf32>
    %173 = vector.broadcast %123 : vector<1x512xf32> to vector<4x512xf32>
    %174 = arith.mulf %172, %173 : vector<4x512xf32>
    %c497_i32_54 = arith.constant 497 : i32
    %175 = tpu.dynamic_rotate %159 by %c497_i32_54 dim 1 : vector<4x512xf32>, i32 -> vector<4x512xf32>
    %176 = vector.broadcast %124 : vector<1x512xf32> to vector<4x512xf32>
    %177 = arith.mulf %175, %176 : vector<4x512xf32>
    %c496_i32_55 = arith.constant 496 : i32
    %178 = tpu.dynamic_rotate %159 by %c496_i32_55 dim 1 : vector<4x512xf32>, i32 -> vector<4x512xf32>
    %179 = vector.broadcast %125 : vector<1x512xf32> to vector<4x512xf32>
    %180 = arith.mulf %178, %179 : vector<4x512xf32>
    %c495_i32_56 = arith.constant 495 : i32
    %181 = tpu.dynamic_rotate %159 by %c495_i32_56 dim 1 : vector<4x512xf32>, i32 -> vector<4x512xf32>
    %182 = vector.broadcast %126 : vector<1x512xf32> to vector<4x512xf32>
    %183 = arith.mulf %181, %182 : vector<4x512xf32>
    %cst_57 = arith.constant 1.000000e+00 : f32
    %184 = vector.broadcast %cst_57 : f32 to vector<1x512xf32>
    %185 = tpu.concatenate %162, %165, %168, %171, %159, %174, %177, %180, %183, %184 in 0 : vector<4x512xf32>, vector<4x512xf32>, vector<4x512xf32>, vector<4x512xf32>, vector<4x512xf32>, vector<4x512xf32>, vector<4x512xf32>, vector<4x512xf32>, vector<4x512xf32>, vector<1x512xf32> -> vector<37x512xf32>
    %c0_58 = arith.constant 0 : index
    %c0_59 = arith.constant 0 : index
    %186 = vector.load %arg12[%c0_58, %c0_59] : memref<4x37xf32, #tpu.memory_space<vmem>>, vector<4x37xf32>
    %cst_60 = arith.constant dense<0.000000e+00> : vector<4x512xf32>
    %187 = tpu.matmul %186, %185, %cst_60 {dimension_numbers = #tpu.dot_dimension_numbers<[1], [0], [0], [1], [0, 0, 1, 1], [], []>} : vector<4x37xf32>, vector<37x512xf32>, vector<4x512xf32> -> vector<4x512xf32>
    %cst_61 = arith.constant 0.000000e+00 : f32
    %188 = vector.broadcast %cst_61 : f32 to vector<4x512xf32>
    %189 = arith.cmpf oge, %187, %188 : vector<4x512xf32>
    %190 = vector.broadcast %99 : f32 to vector<4x512xf32>
    %191 = arith.mulf %190, %187 : vector<4x512xf32>
    %192 = arith.select %189, %187, %191 : vector<4x512xi1>, vector<4x512xf32>
    %c17_i32_62 = arith.constant 17 : i32
    %193 = tpu.dynamic_rotate %192 by %c17_i32_62 dim 1 : vector<4x512xf32>, i32 -> vector<4x512xf32>
    %194 = vector.broadcast %119 : vector<1x512xf32> to vector<4x512xf32>
    %195 = arith.mulf %193, %194 : vector<4x512xf32>
    %c16_i32_63 = arith.constant 16 : i32
    %196 = tpu.dynamic_rotate %192 by %c16_i32_63 dim 1 : vector<4x512xf32>, i32 -> vector<4x512xf32>
    %197 = vector.broadcast %120 : vector<1x512xf32> to vector<4x512xf32>
    %198 = arith.mulf %196, %197 : vector<4x512xf32>
    %c15_i32_64 = arith.constant 15 : i32
    %199 = tpu.dynamic_rotate %192 by %c15_i32_64 dim 1 : vector<4x512xf32>, i32 -> vector<4x512xf32>
    %200 = vector.broadcast %121 : vector<1x512xf32> to vector<4x512xf32>
    %201 = arith.mulf %199, %200 : vector<4x512xf32>
    %c1_i32_65 = arith.constant 1 : i32
    %202 = tpu.dynamic_rotate %192 by %c1_i32_65 dim 1 : vector<4x512xf32>, i32 -> vector<4x512xf32>
    %203 = vector.broadcast %122 : vector<1x512xf32> to vector<4x512xf32>
    %204 = arith.mulf %202, %203 : vector<4x512xf32>
    %c511_i32_66 = arith.constant 511 : i32
    %205 = tpu.dynamic_rotate %192 by %c511_i32_66 dim 1 : vector<4x512xf32>, i32 -> vector<4x512xf32>
    %206 = vector.broadcast %123 : vector<1x512xf32> to vector<4x512xf32>
    %207 = arith.mulf %205, %206 : vector<4x512xf32>
    %c497_i32_67 = arith.constant 497 : i32
    %208 = tpu.dynamic_rotate %192 by %c497_i32_67 dim 1 : vector<4x512xf32>, i32 -> vector<4x512xf32>
    %209 = vector.broadcast %124 : vector<1x512xf32> to vector<4x512xf32>
    %210 = arith.mulf %208, %209 : vector<4x512xf32>
    %c496_i32_68 = arith.constant 496 : i32
    %211 = tpu.dynamic_rotate %192 by %c496_i32_68 dim 1 : vector<4x512xf32>, i32 -> vector<4x512xf32>
    %212 = vector.broadcast %125 : vector<1x512xf32> to vector<4x512xf32>
    %213 = arith.mulf %211, %212 : vector<4x512xf32>
    %c495_i32_69 = arith.constant 495 : i32
    %214 = tpu.dynamic_rotate %192 by %c495_i32_69 dim 1 : vector<4x512xf32>, i32 -> vector<4x512xf32>
    %215 = vector.broadcast %126 : vector<1x512xf32> to vector<4x512xf32>
    %216 = arith.mulf %214, %215 : vector<4x512xf32>
    %cst_70 = arith.constant 1.000000e+00 : f32
    %217 = vector.broadcast %cst_70 : f32 to vector<1x512xf32>
    %218 = tpu.concatenate %195, %198, %201, %204, %192, %207, %210, %213, %216, %217 in 0 : vector<4x512xf32>, vector<4x512xf32>, vector<4x512xf32>, vector<4x512xf32>, vector<4x512xf32>, vector<4x512xf32>, vector<4x512xf32>, vector<4x512xf32>, vector<4x512xf32>, vector<1x512xf32> -> vector<37x512xf32>
    %c0_71 = arith.constant 0 : index
    %c0_72 = arith.constant 0 : index
    %219 = vector.load %arg14[%c0_71, %c0_72] : memref<8x37xf32, #tpu.memory_space<vmem>>, vector<8x37xf32>
    %cst_73 = arith.constant dense<0.000000e+00> : vector<8x512xf32>
    %220 = tpu.matmul %219, %218, %cst_73 {dimension_numbers = #tpu.dot_dimension_numbers<[1], [0], [0], [1], [0, 0, 1, 1], [], []>} : vector<8x37xf32>, vector<37x512xf32>, vector<8x512xf32> -> vector<8x512xf32>
    %c0_74 = arith.constant 0 : index
    %c0_75 = arith.constant 0 : index
    %221 = vector.load %arg15[%c0_74, %c0_75] : memref<8x512xf32, #tpu.memory_space<vmem>>, vector<8x512xf32>
    tpu.vector_store %arg15[%c0_74, %c0_75], %220 {strides = array<i32>} : memref<8x512xf32, #tpu.memory_space<vmem>>, vector<8x512xf32>,
    return
  }
}

</mosaic_0001>

<bundles_post_ra>
// kernel: tpu_custom_call.1
= control target key start
LH: loop header
LB: loop body
LE: loop exit
PB: predicated region body
PF: predicated region fallthrough
CT: control target
= control target key end

     0   :  { %s4429_s0 = inlined_call_operand.vmem [shape: f32[6], index: 0, kind: input, shape index: {}]   ;;  %s4430_s1 = inlined_call_operand.vmem [shape: f32[8,32], index: 1, kind: input, shape index: {}]   ;;  %s4431_s2 = inlined_call_operand.hbm [shape: f32[8,128], index: 2, kind: input, shape index: {}]   ;;  %s4432_s3 = inlined_call_operand.vmem [shape: f32[4,512], index: 3, kind: input, shape index: {}]   ;;  %s4433_s4 = inlined_call_operand.vmem [shape: f32[32,9], index: 4, kind: input, shape index: {}]   ;;  %s4434_s5 = inlined_call_operand.hbm [shape: f32[128,128], index: 5, kind: input, shape index: {}]   ;;  %s4435_s6 = inlined_call_operand.vmem [shape: f32[8,145], index: 6, kind: input, shape index: {}]   ;;  %s4436_s7 = inlined_call_operand.hbm [shape: f32[4,73], index: 7, kind: input, shape index: {}]   ;;  %s4437_s8 = inlined_call_operand.vmem [shape: f32[9,128], index: 8, kind: input, shape index: {}]   ;;  %s4438_s9 = inlined_call_operand.vmem [shape: f32[16,5], index: 9, kind: input, shape index: {}]   ;;  %s4439_s10 = inlined_call_operand.hbm [shape: f32[512,512], index: 10, kind: input, shape index: {}]   ;;  %s4440_s11 = inlined_call_operand.hbm [shape: f32[4,73], index: 11, kind: input, shape index: {}]   ;;  %s4441_s12 = inlined_call_operand.hbm [shape: f32[4,37], index: 12, kind: input, shape index: {}]   ;;  %s4442_s13 = inlined_call_operand.vmem [shape: f32[9,512], index: 13, kind: input, shape index: {}]   ;;  %s4443_s14 = inlined_call_operand.hbm [shape: f32[8,37], index: 14, kind: input, shape index: {}]   ;;  %s4444_s15 = inlined_call_operand.hbm [shape: f32[8,512], index: 15, kind: output, shape index: {}]  }
   0x1   :  { %4451 = sst [smem:[#allocation24_spill]] %s4444_s15 }
   0x2   :  { %20 = vsyncpa [#allocation5], 0 }
   0x3   :  { %21 = vsyncpa [#allocation3], 0 }
   0x4   :  { %22 = vsyncpa [#allocation8], 0 }
   0x5   :  { %23 = vsyncpa [#allocation11], 0 }
   0x6   :  { %24 = vsyncpa [#allocation14], 0 }
   0x7   :  { %25 = vsyncpa [#allocation4], 0  ;;  %s3269_s18 = smov [#allocation7]   ;;  %s3069_s22 = scalar_lea.hbm %s4434_s5, 2048 }
   0x8   :  { %s57_s19 = sshll.u32 %s3269_s18, 4  ;;  %p3070_p0 = scmp.ne.s32.totalorder %s4434_s5, %s3069_s22  ;;  %s58_s19 = int_to_ptr.vmem [resolvable:$true] %s57_s19 }
   0x9   :  { %p3073_p1 = scmp.lt.u32.totalorder %s3069_s22, %s4434_s5 }
   0xb   :  { %p3075_p2 = pnand %p3073_p1, %p3070_p0 }
   0xd   :  { %3078 = shalt.err (!%p3075_p2)
}
   0xe   :  { %s3079_s27 = scalar_lea.vmem %s58_s19, 2048  ;;  %p3084_p4 = scmp.lt.s32.totalorder %s58_s19, %s58_s19 }
   0xf   :  { %p3080_p3 = scmp.ne.s32.totalorder %s58_s19, %s3079_s27  ;;  %p3085_p5 = scmp.lt.s32.totalorder %s3079_s27, %s3079_s27 }
  0x11   :  { %p3086_p6 = por %p3085_p5, %p3084_p4 }
  0x13   :  { %p3087_p7 = pnand %p3086_p6, %p3080_p3 }
  0x15   :  { %3090 = shalt.err (!%p3087_p7)
}
  0x16   :  { %s3270_s28 = smov 128   ;;  %s4445_s29 = smov 8  }
  0x17   :  { %63 = dma.hbm_to_vmem [thread:$0]  %s4434_s5, 2048, %s58_s19, [#allocation8], %s3270_s28, %s3270_s28, %s4445_s29  }
  0x18   :  { %s3272_s17 = smov [#allocation10]   ;;  %s3091_s22 = scalar_lea.hbm %s4439_s10, 32768 }
  0x19   :  { %s85_s18 = sshll.u32 %s3272_s17, 4  ;;  %p3092_p8 = scmp.ne.s32.totalorder %s4439_s10, %s3091_s22  ;;  %s86_s18 = int_to_ptr.vmem [resolvable:$true] %s85_s18 }
  0x1a   :  { %p3095_p9 = scmp.lt.u32.totalorder %s3091_s22, %s4439_s10 }
  0x1c   :  { %p3097_p10 = pnand %p3095_p9, %p3092_p8 }
  0x1e   :  { %3100 = shalt.err (!%p3097_p10)
}
  0x1f   :  { %s3101_s27 = scalar_lea.vmem %s86_s18, 32768  ;;  %p3106_p12 = scmp.lt.s32.totalorder %s86_s18, %s86_s18 }
  0x20   :  { %p3102_p11 = scmp.ne.s32.totalorder %s86_s18, %s3101_s27  ;;  %p3107_p13 = scmp.lt.s32.totalorder %s3101_s27, %s3101_s27 }
  0x22   :  { %p3108_p0 = por %p3107_p13, %p3106_p12 }
  0x24   :  { %p3109_p1 = pnand %p3108_p0, %p3102_p11 }
  0x26   :  { %3112 = shalt.err (!%p3109_p1)
}
  0x27   :  { %s3273_s5 = smov 512   ;;  %s3274_s19 = smov 32  }
  0x28   :  { %91 = dma.hbm_to_vmem [thread:$0]  %s4439_s10, 32768, %s86_s18, [#allocation11], %s3273_s5, %s3273_s5, %s3274_s19  }
  0x29   :  { %s32_s20 = sshll.u32 %s4429_s0, 4  ;;  %s3275_s21 = smov [#allocation13]   ;;  %s33_s20 = int_to_ptr.vmem [resolvable:$true] %s32_s20 }
  0x2a   :  { %s108_s22 = sshll.u32 %s3275_s21, 4  ;;  %s3113_s25 = scalar_lea.hbm %s4441_s12, 64  ;;  %s109_s22 = int_to_ptr.vmem [resolvable:$true] %s108_s22 }
  0x2b   :  { %p3114_p2 = scmp.ne.s32.totalorder %s4441_s12, %s3113_s25  ;;  %p3117_p3 = scmp.lt.u32.totalorder %s3113_s25, %s4441_s12 }
  0x2d   :  { %p3119_p4 = pnand %p3117_p3, %p3114_p2 }
  0x2f   :  { %3122 = shalt.err (!%p3119_p4)
}
  0x30   :  { %s3123_s10 = scalar_lea.vmem %s109_s22, 64  ;;  %p3128_p6 = scmp.lt.s32.totalorder %s109_s22, %s109_s22 }
  0x31   :  { %p3124_p5 = scmp.ne.s32.totalorder %s109_s22, %s3123_s10  ;;  %p3129_p7 = scmp.lt.s32.totalorder %s3123_s10, %s3123_s10 }
  0x33   :  { %p3130_p8 = por %p3129_p7, %p3128_p6 }
  0x35   :  { %p3131_p9 = pnand %p3130_p8, %p3124_p5 }
  0x37   :  { %3134 = shalt.err (!%p3131_p9)
}
  0x38   :  { %111 = dma.hbm_to_vmem [thread:$0]  %s4441_s12, 64, %s109_s22, [#allocation14]  }
  0x39   :  { %s3135_s5 = scalar_lea.vmem %s33_s20, 16  ;;  %p3140_p11 = scmp.lt.s32.totalorder %s33_s20, %s33_s20 }
  0x3a   :  { %p3136_p10 = scmp.ne.s32.totalorder %s33_s20, %s3135_s5  ;;  %p3141_p12 = scmp.lt.s32.totalorder %s3135_s5, %s3135_s5 }
  0x3c   :  { %p3142_p13 = por %p3141_p12, %p3140_p11 }
  0x3e   :  { %p3143_p0 = pnand %p3142_p13, %p3136_p10 }
  0x40   :  { %3146 = shalt.err (!%p3143_p0)
}
  0x41   :  { %s3276_s15 = smov [#allocation2]   ;;  %s3277_s29 = smov [#allocation6]  }
  0x42   :  { %35 = dma.vmem_to_smem %s33_s20, 16, %s3276_s15, [#allocation5]  }
  0x43   :  { %s44_s28 = sshll.u32 %s3277_s29, 4  ;;  %s3278_s30 = smov [#allocation9]   ;;  %s45_s28 = int_to_ptr.vmem [resolvable:$true] %s44_s28 }
  0x44   :  { %s72_s16 = sshll.u32 %s3278_s30, 4  ;;  %s3147_s23 = scalar_lea.hbm %s4431_s2, 128  ;;  %s73_s16 = int_to_ptr.vmem [resolvable:$true] %s72_s16 }
  0x45   :  { %p3148_p1 = scmp.ne.s32.totalorder %s4431_s2, %s3147_s23  ;;  %p3151_p2 = scmp.lt.u32.totalorder %s3147_s23, %s4431_s2 }
  0x47   :  { %p3153_p3 = pnand %p3151_p2, %p3148_p1 }
  0x49   :  { %3156 = shalt.err (!%p3153_p3)
}
  0x4a   :  { %s3157_s20 = scalar_lea.vmem %s45_s28, 128  ;;  %p3162_p5 = scmp.lt.s32.totalorder %s45_s28, %s45_s28 }
  0x4b   :  { %p3158_p4 = scmp.ne.s32.totalorder %s45_s28, %s3157_s20  ;;  %p3163_p6 = scmp.lt.s32.totalorder %s3157_s20, %s3157_s20 }
  0x4d   :  { %p3164_p7 = por %p3163_p6, %p3162_p5 }
  0x4f   :  { %p3165_p8 = pnand %p3164_p7, %p3158_p4 }
  0x51   :  { %3168 = shalt.err (!%p3165_p8)
}
  0x52   :  { %47 = dma.hbm_to_vmem [thread:$0]  %s4431_s2, 128, %s45_s28, [#allocation3]  }
  0x53   :  { %s3169_s18 = scalar_lea.hbm %s4436_s7, 64 }
  0x54   :  { %p3170_p9 = scmp.ne.s32.totalorder %s4436_s7, %s3169_s18  ;;  %p3173_p10 = scmp.lt.u32.totalorder %s3169_s18, %s4436_s7 }
  0x56   :  { %p3175_p11 = pnand %p3173_p10, %p3170_p9 }
  0x58   :  { %3178 = shalt.err (!%p3175_p11)
}
  0x59   :  { %s3179_s17 = scalar_lea.vmem %s73_s16, 64  ;;  %p3184_p13 = scmp.lt.s32.totalorder %s73_s16, %s73_s16 }
  0x5a   :  { %p3180_p12 = scmp.ne.s32.totalorder %s73_s16, %s3179_s17  ;;  %p3185_p0 = scmp.lt.s32.totalorder %s3179_s17, %s3179_s17 }
  0x5c   :  { %p3186_p1 = por %p3185_p0, %p3184_p13 }
  0x5e   :  { %p3187_p2 = pnand %p3186_p1, %p3180_p12 }
  0x60   :  { %3190 = shalt.err (!%p3187_p2)
}
  0x61   :  { %75 = dma.hbm_to_vmem [thread:$0]  %s4436_s7, 64, %s73_s16, [#allocation8]  }
  0x62   :  { %s3279_s21 = smov [#allocation12]   ;;  %s3280_s12 = smov [#allocation15]  }
  0x63   :  { %s98_s23 = sshll.u32 %s3279_s21, 4  ;;  %s120_s22 = sshll.u32 %s3280_s12, 4  ;;  %s99_s23 = int_to_ptr.vmem [resolvable:$true] %s98_s23  ;;  %s121_s22 = int_to_ptr.vmem [resolvable:$true] %s120_s22 }
  0x64   :  { %s3191_s20 = scalar_lea.hbm %s4440_s11, 64 }
  0x65   :  { %p3192_p3 = scmp.ne.s32.totalorder %s4440_s11, %s3191_s20  ;;  %p3195_p4 = scmp.lt.u32.totalorder %s3191_s20, %s4440_s11 }
  0x67   :  { %p3197_p5 = pnand %p3195_p4, %p3192_p3 }
  0x69   :  { %3200 = shalt.err (!%p3197_p5)
}
  0x6a   :  { %s3201_s7 = scalar_lea.vmem %s99_s23, 64  ;;  %p3206_p7 = scmp.lt.s32.totalorder %s99_s23, %s99_s23 }
  0x6b   :  { %p3202_p6 = scmp.ne.s32.totalorder %s99_s23, %s3201_s7  ;;  %p3207_p8 = scmp.lt.s32.totalorder %s3201_s7, %s3201_s7 }
  0x6d   :  { %p3208_p9 = por %p3207_p8, %p3206_p7 }
  0x6f   :  { %p3209_p10 = pnand %p3208_p9, %p3202_p6 }
  0x71   :  { %3212 = shalt.err (!%p3209_p10)
}
  0x72   :  { %101 = dma.hbm_to_vmem [thread:$0]  %s4440_s11, 64, %s99_s23, [#allocation11]  }
  0x73   :  { %s3213_s29 = scalar_lea.hbm %s4443_s14, 128 }
  0x74   :  { %p3214_p11 = scmp.ne.s32.totalorder %s4443_s14, %s3213_s29  ;;  %p3217_p12 = scmp.lt.u32.totalorder %s3213_s29, %s4443_s14 }
  0x76   :  { %p3219_p13 = pnand %p3217_p12, %p3214_p11 }
  0x78   :  { %3222 = shalt.err (!%p3219_p13)
}
  0x79   :  { %s3223_s21 = scalar_lea.vmem %s121_s22, 128  ;;  %p3228_p1 = scmp.lt.s32.totalorder %s121_s22, %s121_s22 }
  0x7a   :  { %p3224_p0 = scmp.ne.s32.totalorder %s121_s22, %s3223_s21  ;;  %p3229_p2 = scmp.lt.s32.totalorder %s3223_s21, %s3223_s21 }
  0x7c   :  { %p3230_p3 = por %p3229_p2, %p3228_p1 }
  0x7e   :  { %p3231_p4 = pnand %p3230_p3, %p3224_p0 }
  0x80   :  { %3234 = shalt.err (!%p3231_p4)
}
  0x81   :  { %123 = dma.hbm_to_vmem [thread:$0]  %s4443_s14, 128, %s121_s22, [#allocation14]  }
  0x82   :  { %3257 = dma.done.wait [#allocation5], 16  }
  0x83   :  { %3258 = vsyncadd [#allocation5], 4294967280 }
  0x84   :  { %3259 = dma.done.wait [#allocation3], 128  }
  0x85   :  { %3260 = vsyncadd [#allocation3], 4294967168 }
  0x86   :  { %3261 = dma.done.wait [#allocation8], 2112  }
  0x87   :  { %3262 = vsyncadd [#allocation8], 4294965184 }
  0x88   :  { %3263 = dma.done.wait [#allocation11], 32832  }
  0x89   :  { %3264 = vsyncadd [#allocation11], 4294934464 }
  0x8a   :  { %3265 = dma.done.wait [#allocation14], 192  }
  0x8b   :  { %3266 = vsyncadd [#allocation14], 4294967104 }
  0x8c   :  { %148 = sfence }
  0x8d   :  { %v149_v0 = vld [vmem:[%s4430_s1] sm:$0xff]  ;;  %vm170_vm0 = vcmask 1040384   ;;  %vm157_vm1 = vcmask 72704   ;;  %v3281_v2 = vmov 1.0   ;;  %vm3282_vm2 = vmmov 1   ;;  %v154_v5 = vld [vmem:[%s4433_s4 + $0x8] sm:$0xff] }
  0x8e   :  { %v153_v1 = vld [vmem:[%s4433_s4] sm:$0xff]  ;;  %v2625_v3 = vpack.c.bf16 %v3281_v2, %v149_v0  ;;  %vm3479_vm3 = vmpackc.low %vm170_vm0, %vm3282_vm2  ;;  %v155_v6 = vld [vmem:[%s4433_s4 + $0x10] sm:$0xff]  ;;  %v3283_v11 = vmov 0.0|0.0   ;;  %vm3284_vm4 = vmmov 0   ;;  %v4448_v33 = vmov 0.0   ;;  %s3287_s0 = smov 64  }
  0x8f   :  { %2556 = vmatprep.mubr.msk.f32.mxu0 %vm157_vm1, %v153_v1  ;;  %v156_v7 = vld [vmem:[%s4433_s4 + $0x18] sm:$0xff]  ;;  %v277_v8 = vld [vmem:[#allocation7] sm:$0xff]  ;;  %v278_v9 = vld [vmem:[#allocation7 + $0x8] sm:$0xff]  ;;  %2631 = vmatprep.subr.bf16.mxu1 %v3283_v11  ;;  %s3286_s4 = smov 96   ;;  %vm271_vm5 = vcmask 261120   ;;  %vm273_vm6 = vcmask 523264   ;;  %v374_v51 = vlaneseq }
  0x90   :  { %2627 = vmatprep.subr.msk.bf16.mxu0 %vm3479_vm3, %v2625_v3  ;;  %v279_v10 = vld [vmem:[#allocation7 + $0x10] sm:$0xff]  ;;  %v2632_v12 = vpack.c.bf16 %v278_v9, %v277_v8  ;;  %v280_v13 = vld [vmem:[#allocation7 + $0x18] sm:$0xff]  ;;  %v281_v15 = vld [vmem:[#allocation7 + $0x20] sm:$0xff]  ;;  %2594 = vmatprep.mubr.msk.f32.mxu1 %vm3284_vm4, %v4448_v33  ;;  %vm275_vm7 = vcmask 785408   ;;  %s4454_s7 = smov 8   ;;  %s3289_s16 = smov 7  }
  0x91   :  { %2630 = vmatpush3.bf16.msk.msra.mxu0 %vm3479_vm3, %v2625_v3  ;;  %v2635_v14 = vpack.c.bf16 %v280_v13, %v279_v10  ;;  %v282_v16 = vld [vmem:[#allocation7 + $0x28] sm:$0xff]  ;;  %v283_v18 = vld [vmem:[#allocation7 + $0x30] sm:$0xff]  ;;  %v284_v19 = vld [vmem:[#allocation7 + $0x38] sm:$0xff]  ;;  %s3290_s18 = smov 1   ;;  %s3291_s5 = smov 127   ;;  %vm452_vm9 = vcmask 138240  }
  0x92   :  { %2655 = vmatprep.subr.bf16.mxu0 %v3283_v11  ;;  %2633 = vmatpush3.bf16.msra.mxu1 %v2632_v12  ;;  %v2638_v17 = vpack.c.bf16 %v282_v16, %v281_v15  ;;  %v2641_v20 = vpack.c.bf16 %v284_v19, %v283_v18  ;;  %v285_v21 = vld [vmem:[#allocation7 + $0x40] sm:$0xff]  ;;  %v286_v22 = vld [vmem:[#allocation7 + $0x48] sm:$0xff]  ;;  %v287_v24 = vld [vmem:[#allocation7 + $0x50] sm:$0xff]  ;;  %s3292_s15 = smov 121   ;;  %s3293_s29 = smov 120   ;;  %v375_v53 = vshrl.u32 %v374_v51, 7 }
  0x93   :  { %2634 = vmatprep.subr.bf16.mxu1 %v3283_v11  ;;  %v2644_v23 = vpack.c.bf16 %v286_v22, %v285_v21  ;;  %v288_v25 = vld [vmem:[#allocation7 + $0x58] sm:$0xff]  ;;  %v289_v27 = vld [vmem:[#allocation7 + $0x60] sm:$0xff]  ;;  %v290_v28 = vld [vmem:[#allocation7 + $0x68] sm:$0xff]  ;;  %s3294_s30 = smov 119   ;;  %s150_s17 = sld [smem:[#allocation2]]  ;;  %vm555_vm11 = vcmask 596992  }
  0x94   :  { %2557 = vmatmul.mubr.msk.f32.vlgmr.msra.gmra.mrb[0].mxu0 %vm157_vm1, %v154_v5  ;;  %v2647_v26 = vpack.c.bf16 %v288_v25, %v287_v24  ;;  %v2650_v29 = vpack.c.bf16 %v290_v28, %v289_v27  ;;  %v291_v30 = vld [vmem:[#allocation7 + $0x70] sm:$0xff]  ;;  %v292_v31 = vld [vmem:[#allocation7 + $0x78] sm:$0xff]  ;;  %v451_v50 = vld [vmem:[%s4435_s6 + $0x8] sm:$0xff]  ;;  %v3551_v54 = vsub.s32 0, %v375_v53  ;;  %v3559_v58 = vsub.s32 1, %v375_v53  ;;  %s2476_s1 = sld [smem:[#allocation2 + $0x2]] }
  0x95   :  { %2559 = vmatprep.mubr.msk.f32.mxu0 %vm157_vm1, %v155_v6  ;;  %v2653_v32 = vpack.c.bf16 %v292_v31, %v291_v30  ;;  %v3511_v44 = vld [vmem:[#allocation6] sm:$0xff]  ;;  %v3565_v62 = vsub.s32 2, %v375_v53  ;;  %v3572_v6 = vsub.s32 3, %v375_v53  ;;  %v3583_v19 = vsub.s32 5, %v375_v53  ;;  %s2489_s22 = sld [smem:[#allocation2 + $0x5]] }
  0x96   :  { %2636 = vmatpush3.bf16.msra.mxu1 %v2635_v14  ;;  %v368_v55 = vld [vmem:[%s4437_s8] sm:$0xff]  ;;  %v3590_v24 = vsub.s32 6, %v375_v53  ;;  %v3600_v31 = vsub.s32 7, %v375_v53  ;;  %vm640_vm12 = vcmask 39936   ;;  %vm636_vm14 = vcmask 1043456  }
  0x97   :  { %2637 = vmatprep.subr.bf16.mxu1 %v3283_v11  ;;  %v3557_v57 = vrot.slane %v368_v55, %v3551_v54  ;;  %v3563_v61 = vrot.slane %v368_v55, %v3559_v58  ;;  %v3570_v5 = vrot.slane %v368_v55, %v3565_v62  ;;  %v3578_v13 = vrot.slane %v368_v55, %v3572_v6 }
  0x98   :  { %2560 = vmatmul.mubr.msk.f32.gmra.mrb[2].mxu0 %vm157_vm1, %v156_v7  ;;  %v3598_v30 = vrot.slane %v368_v55, %v3590_v24  ;;  %vm647_vm15 = vcmask 1044480  }
  0x99   :  { %v364_v45 = vstv %s150_s17  ;;  %2484 = vmatprep.mubr.msk.f32.mxu0 %vm452_vm9, %v451_v50  ;;  %v450_v50 = vld [vmem:[%s4435_s6] sm:$0xff] }
  0x9a   :  { %2639 = vmatpush3.bf16.msra.mxu1 %v2638_v17 }
  0x9b   :  { %2640 = vmatprep.subr.bf16.mxu1 %v3283_v11 }
  0x9e   :  { %2642 = vmatpush3.bf16.msra.mxu1 %v2641_v20 }
  0x9f   :  { %2643 = vmatprep.subr.bf16.mxu1 %v3283_v11 }
  0xa2   :  { %2645 = vmatpush3.bf16.msra.mxu1 %v2644_v23  ;;  %v3588_v23 = vrot.slane %v368_v55, %v3583_v19 }
  0xa3   :  { %2646 = vmatprep.subr.bf16.mxu1 %v3283_v11 }
  0xa6   :  { %2648 = vmatpush3.bf16.msra.mxu1 %v2647_v26 }
  0xa7   :  { %2649 = vmatprep.subr.bf16.mxu1 %v3283_v11 }
  0xaa   :  { %2651 = vmatpush3.bf16.msra.mxu1 %v2650_v29 }
  0xab   :  { %2652 = vmatprep.subr.bf16.mxu1 %v3283_v11 }
  0xae   :  { %2654 = vmatpush3.bf16.msra.mxu1 %v2653_v32 }
  0xaf   :  { %2682 = vmatprep.subr.bf16.mxu1 %v3283_v11 }
 0x167   :  { %v2558_v34 = vpop.f32.mrb[0].mxu0 }
 0x168   :  { %260 = vrot.lane.b32.xlu0 %v2558_v34, %s3274_s19  ;;  %v240_v35 = vpop.f32.mrb[1].mxu0  ;;  %s3288_s19 = smov 9  }
 0x16b   :  { %v2561_v36 = vpop.f32.mrb[2].mxu0 }
 0x16c   :  { %268 = vrot.lane.b32.xlu1 %v2561_v36, %s3286_s4  ;;  %v250_v37 = vpop.f32.mrb[3].mxu0 }
 0x16d   :  { %264 = vrot.lane.b32.xlu0 %v250_v37, %s3287_s0  ;;  %s3295_s0 = smov 17  }
 0x171   :  { %372 = vrot.lane.b32.xlu0 %v3511_v44, %s3288_s19 }
 0x175   :  { %382 = vrot.lane.b32.xlu0 %v3511_v44, %s4454_s7 }
 0x179   :  { %392 = vrot.lane.b32.xlu0 %v3511_v44, %s3289_s16 }
 0x17d   :  { %402 = vrot.lane.b32.xlu0 %v3511_v44, %s3290_s18 }
 0x181   :  { %412 = vrot.lane.b32.xlu0 %v3511_v44, %s3291_s5 }
 0x185   :  { %422 = vrot.lane.b32.xlu0 %v3511_v44, %s3292_s15 }
 0x189   :  { %432 = vrot.lane.b32.xlu0 %v3511_v44, %s3293_s29 }
 0x18d   :  { %442 = vrot.lane.b32.xlu0 %v3511_v44, %s3294_s30 }
 0x1da   :  { %v261_v38 = vpop.permute.xlu0 %260 }
 0x1db   :  { %v272_v39 = vsel %vm271_vm5, %v240_v35, %v261_v38  ;;  %v437_v38 = vrot.slane %v368_v55, %v3600_v31 }
 0x1de   :  { %v269_v41 = vpop.permute.xlu1 %268 }
 0x1df   :  { %v265_v40 = vpop.permute.xlu0 %264 }
 0x1e0   :  { %v274_v42 = vsel %vm273_vm6, %v272_v39, %v265_v40 }
 0x1e1   :  { %v276_v43 = vsel %vm275_vm7, %v274_v42, %v269_v41 }
 0x1e2   :  { %2595 = vmatmul.mubr.f32.vlgmr.msra.gmra.mrb[0].mxu1 %v276_v43  ;;  %v2482_v43 = vld [vmem:[%s4437_s8 + $0x8] ss:$0 sm:$0xff]  ;;  %s2475_s8 = sld [smem:[#allocation2 + $0x1]] }
 0x1e3   :  { %2617 = vmatprep.mubr.msk.f32.mxu1 %vm3284_vm4, %v4448_v33  ;;  %v373_v52 = vpop.permute.xlu0 %372 }
 0x1e4   :  { %v379_v60 = vmul.f32 %v3557_v57, %v373_v52 }
 0x1e7   :  { %v383_v56 = vpop.permute.xlu0 %382 }
 0x1e8   :  { %v389_v3 = vmul.f32 %v3563_v61, %v383_v56  ;;  %v527_v52 = vstv %s2475_s8 }
 0x1eb   :  { %v393_v59 = vpop.permute.xlu0 %392 }
 0x1ec   :  { %v399_v12 = vmul.f32 %v3570_v5, %v393_v59 }
 0x1ef   :  { %v403_v8 = vpop.permute.xlu0 %402 }
 0x1f0   :  { %v409_v18 = vmul.f32 %v3578_v13, %v403_v8 }
 0x1f3   :  { %v413_v16 = vpop.permute.xlu0 %412 }
 0x1f4   :  { %v419_v29 = vmul.f32 %v3588_v23, %v413_v16 }
 0x1f7   :  { %v423_v26 = vpop.permute.xlu0 %422 }
 0x1f8   :  { %v429_v37 = vmul.f32 %v3598_v30, %v423_v26  ;;  %v739_v26 = vld [vmem:[#allocation10 + $0x38] sm:$0xff] }
 0x1fb   :  { %v433_v34 = vpop.permute.xlu0 %432 }
 0x1fc   :  { %v439_v42 = vmul.f32 %v437_v38, %v433_v34 }
 0x2b5   :  { %v359_v46 = vpop.f32.mrb[0].mxu1 }
 0x2b6   :  { %vm363_vm8 = vcmp.ge.f32.partialorder %v359_v46, 0.0  ;;  %v365_v47 = vmul.f32 %v364_v45, %v359_v46  ;;  %v2596_v48 = vpop.f32.mrb[1].mxu1  ;;  %v443_v45 = vpop.permute.xlu0 %442 }
 0x2b7   :  { %v449_v48 = vmul.f32 %v2482_v43, %v443_v45  ;;  %v763_v45 = vld [vmem:[#allocation10 + $0xf8] sm:$0xff] }
 0x2b8   :  { %v3529_v49 = vsel %vm363_vm8, %v359_v46, %v365_v47 }
 0x2b9   :  { %370 = vrot.lane.b32.xlu1 %v3529_v49, %s3288_s19  ;;  %v2668_v27 = vpack.c.bf16 %v3511_v44, %v3529_v49 }
 0x2bd   :  { %380 = vrot.lane.b32.xlu1 %v3529_v49, %s4454_s7 }
 0x2c1   :  { %390 = vrot.lane.b32.xlu1 %v3529_v49, %s3289_s16 }
 0x2c5   :  { %400 = vrot.lane.b32.xlu1 %v3529_v49, %s3290_s18 }
 0x2c9   :  { %410 = vrot.lane.b32.xlu1 %v3529_v49, %s3291_s5 }
 0x2cd   :  { %420 = vrot.lane.b32.xlu1 %v3529_v49, %s3292_s15 }
 0x2d1   :  { %430 = vrot.lane.b32.xlu1 %v3529_v49, %s3293_s29 }
 0x2d5   :  { %440 = vrot.lane.b32.xlu1 %v3529_v49, %s3294_s30 }
 0x32b   :  { %v371_v63 = vpop.permute.xlu1 %370 }
 0x32c   :  { %v378_v0 = vmul.f32 %v3557_v57, %v371_v63 }
 0x32e   :  { %v2656_v1 = vpack.c.bf16 %v379_v60, %v378_v0 }
 0x32f   :  { %v381_v7 = vpop.permute.xlu1 %380 }
 0x330   :  { %v388_v9 = vmul.f32 %v3563_v61, %v381_v7  ;;  %2657 = vmatpush1.bf16.msra.mxu0 %v2656_v1 }
 0x331   :  { %2658 = vmatprep.subr.bf16.mxu0 %v3283_v11 }
 0x332   :  { %v2659_v10 = vpack.c.bf16 %v389_v3, %v388_v9 }
 0x333   :  { %v391_v14 = vpop.permute.xlu1 %390 }
 0x334   :  { %v398_v15 = vmul.f32 %v3570_v5, %v391_v14  ;;  %2660 = vmatpush1.bf16.msra.mxu0 %v2659_v10 }
 0x335   :  { %2661 = vmatprep.subr.bf16.mxu0 %v3283_v11 }
 0x336   :  { %v2662_v17 = vpack.c.bf16 %v399_v12, %v398_v15 }
 0x337   :  { %v401_v20 = vpop.permute.xlu1 %400 }
 0x338   :  { %v408_v21 = vmul.f32 %v3578_v13, %v401_v20  ;;  %2663 = vmatpush1.bf16.msra.mxu0 %v2662_v17 }
 0x339   :  { %2664 = vmatprep.subr.bf16.mxu0 %v3283_v11 }
 0x33a   :  { %v2665_v22 = vpack.c.bf16 %v409_v18, %v408_v21 }
 0x33b   :  { %v411_v25 = vpop.permute.xlu1 %410 }
 0x33c   :  { %2666 = vmatpush1.bf16.msra.mxu0 %v2665_v22  ;;  %v418_v28 = vmul.f32 %v3588_v23, %v411_v25  ;;  %v554_v22 = vld [vmem:[#allocation9] sm:$0xf] }
 0x33d   :  { %2667 = vmatprep.subr.bf16.mxu0 %v3283_v11  ;;  %v735_v25 = vld [vmem:[#allocation10 + $0x18] sm:$0xff] }
 0x33e   :  { %v2671_v35 = vpack.c.bf16 %v419_v29, %v418_v28  ;;  %v738_v28 = vld [vmem:[#allocation10 + $0x30] sm:$0xff] }
 0x33f   :  { %v421_v32 = vpop.permute.xlu1 %420 }
 0x340   :  { %2669 = vmatpush1.bf16.msra.mxu0 %v2668_v27  ;;  %v428_v36 = vmul.f32 %v3598_v30, %v421_v32  ;;  %v2826_v27 = vpack.c.bf16 %v739_v26, %v735_v25  ;;  %v747_v32 = vld [vmem:[#allocation10 + $0x78] sm:$0xff] }
 0x341   :  { %2670 = vmatprep.subr.bf16.mxu0 %v3283_v11  ;;  %v807_v26 = vld [vmem:[#allocation10 + $0x258] sm:$0xff] }
 0x342   :  { %v2674_v40 = vpack.c.bf16 %v429_v37, %v428_v36  ;;  %v746_v36 = vld [vmem:[#allocation10 + $0x70] sm:$0xff] }
 0x343   :  { %v431_v39 = vpop.permute.xlu1 %430 }
 0x344   :  { %2672 = vmatpush1.bf16.msra.mxu0 %v2671_v35  ;;  %v438_v41 = vmul.f32 %v437_v38, %v431_v39  ;;  %v742_v35 = vld [vmem:[#allocation10 + $0x50] sm:$0xff]  ;;  %v755_v39 = vld [vmem:[#allocation10 + $0xb8] sm:$0xff] }
 0x345   :  { %2673 = vmatprep.subr.bf16.mxu0 %v3283_v11  ;;  %v2832_v37 = vpack.c.bf16 %v746_v36, %v742_v35  ;;  %v814_v36 = vld [vmem:[#allocation10 + $0x290] sm:$0xff] }
 0x346   :  { %v2677_v46 = vpack.c.bf16 %v439_v42, %v438_v41  ;;  %v750_v41 = vld [vmem:[#allocation10 + $0x90] sm:$0xff] }
 0x347   :  { %v441_v44 = vpop.permute.xlu1 %440  ;;  %v754_v42 = vld [vmem:[#allocation10 + $0xb0] sm:$0xff] }
 0x348   :  { %2675 = vmatpush1.bf16.msra.mxu0 %v2674_v40  ;;  %v448_v47 = vmul.f32 %v2482_v43, %v441_v44  ;;  %v759_v44 = vld [vmem:[#allocation10 + $0xd8] sm:$0xff] }
 0x349   :  { %2676 = vmatprep.subr.bf16.mxu0 %v3283_v11 }
 0x34a   :  { %v2680_v49 = vpack.c.bf16 %v449_v48, %v448_v47  ;;  %v758_v47 = vld [vmem:[#allocation10 + $0xd0] sm:$0xff] }
 0x34b   :  { %v762_v48 = vld [vmem:[#allocation10 + $0xf0] sm:$0xff] }
 0x34c   :  { %2678 = vmatpush1.bf16.msra.mxu0 %v2677_v46  ;;  %v2838_v46 = vpack.c.bf16 %v763_v45, %v759_v44  ;;  %v831_v45 = vld [vmem:[#allocation10 + $0x318] sm:$0xff] }
 0x34d   :  { %2679 = vmatprep.subr.bf16.mxu0 %v3283_v11 }
 0x350   :  { %2681 = vmatpush1.bf16.msra.mxu0 %v2680_v49  ;;  %v2840_v49 = vpack.c.bf16 %v762_v48, %v758_v47  ;;  %v830_v48 = vld [vmem:[#allocation10 + $0x310] sm:$0xff] }
 0x351   :  { %492 = vmatprep.subr.mxu0 %v4448_v33 }
 0x354   :  { %2483 = vmatpush1.msk.msra.mxu0 %vm170_vm0, %v3281_v2 }
 0x355   :  { %521 = vmatmul.mubr.f32.vlgmr.msra.gmra.mrb[4].mxu0 %v450_v50  ;;  %v767_v50 = vld [vmem:[#allocation10 + $0x118] sm:$0xff] }
 0x428   :  { %v522_v53 = vpop.f32.mrb[4].mxu0 }
 0x429   :  { %vm526_vm10 = vcmp.ge.f32.partialorder %v522_v53, 0.0  ;;  %v528_v55 = vmul.f32 %v527_v52, %v522_v53  ;;  %v524_v56 = vpop.f32.mrb[5].mxu0  ;;  %v771_v52 = vld [vmem:[#allocation10 + $0x138] sm:$0xff] }
 0x42a   :  { %v770_v56 = vld [vmem:[#allocation10 + $0x130] sm:$0xff] }
 0x42b   :  { %v529_v59 = vsel %vm526_vm10, %v522_v53, %v528_v55  ;;  %v2842_v53 = vpack.c.bf16 %v771_v52, %v767_v50  ;;  %v766_v55 = vld [vmem:[#allocation10 + $0x110] sm:$0xff]  ;;  %v839_v52 = vld [vmem:[#allocation10 + $0x358] sm:$0xff] }
 0x42c   :  { %533 = vrot.lane.b32.xlu0 %v529_v59, %s4454_s7  ;;  %530 = vrot.lane.b32.xlu1 %v529_v59, %s3288_s19  ;;  %s3297_s19 = smov 15   ;;  %s3298_s7 = smov 113  }
 0x430   :  { %539 = vrot.lane.b32.xlu0 %v529_v59, %s3290_s18  ;;  %536 = vrot.lane.b32.xlu1 %v529_v59, %s3289_s16  ;;  %s3299_s16 = smov 112  }
 0x434   :  { %545 = vrot.lane.b32.xlu0 %v529_v59, %s3292_s15  ;;  %542 = vrot.lane.b32.xlu1 %v529_v59, %s3291_s5  ;;  %s3300_s15 = smov 111  }
 0x438   :  { %551 = vrot.lane.b32.xlu0 %v529_v59, %s3294_s30  ;;  %548 = vrot.lane.b32.xlu1 %v529_v59, %s3293_s29 }
 0x49e   :  { %v534_v60 = vpop.permute.xlu0 %533  ;;  %v531_v63 = vpop.permute.xlu1 %530 }
 0x49f   :  { %v535_v0 = vmul.f32 %v534_v60, %v3563_v61  ;;  %v532_v1 = vmul.f32 %v531_v63, %v3557_v57  ;;  %v775_v60 = vld [vmem:[#allocation10 + $0x158] sm:$0xff] }
 0x4a0   :  { %v779_v63 = vld [vmem:[#allocation10 + $0x178] sm:$0xff] }
 0x4a1   :  { %v2683_v3 = vpack.c.bf16 %v535_v0, %v532_v1  ;;  %v2846_v0 = vpack.c.bf16 %v779_v63, %v775_v60  ;;  %v774_v1 = vld [vmem:[#allocation10 + $0x150] sm:$0xff]  ;;  %v847_v63 = vld [vmem:[#allocation10 + $0x398] sm:$0xff] }
 0x4a2   :  { %v540_v7 = vpop.permute.xlu0 %539  ;;  %v537_v8 = vpop.permute.xlu1 %536 }
 0x4a3   :  { %v541_v9 = vmul.f32 %v540_v7, %v3578_v13  ;;  %v538_v10 = vmul.f32 %v537_v8, %v3570_v5  ;;  %2684 = vmatpush3.bf16.msra.mxu1 %v2683_v3  ;;  %v778_v3 = vld [vmem:[#allocation10 + $0x170] sm:$0xff]  ;;  %v783_v8 = vld [vmem:[#allocation10 + $0x198] sm:$0xff] }
 0x4a4   :  { %2685 = vmatprep.subr.bf16.mxu1 %v3283_v11  ;;  %v2848_v7 = vpack.c.bf16 %v778_v3, %v774_v1  ;;  %v846_v3 = vld [vmem:[#allocation10 + $0x390] sm:$0xff] }
 0x4a5   :  { %v2686_v12 = vpack.c.bf16 %v541_v9, %v538_v10  ;;  %v787_v9 = vld [vmem:[#allocation10 + $0x1b8] sm:$0xff] }
 0x4a6   :  { %v546_v14 = vpop.permute.xlu0 %545  ;;  %v543_v15 = vpop.permute.xlu1 %542  ;;  %v2850_v10 = vpack.c.bf16 %v787_v9, %v783_v8  ;;  %v630_v9 = vstv %s2476_s1 }
 0x4a7   :  { %v544_v16 = vmul.f32 %v543_v15, %v3588_v23  ;;  %2687 = vmatpush3.bf16.msra.mxu1 %v2686_v12  ;;  %v547_v18 = vmul.f32 %v546_v14, %v3598_v30  ;;  %v638_v23 = vld [vmem:[%s4438_s9] sm:$0xff] }
 0x4a8   :  { %2688 = vmatprep.subr.bf16.mxu1 %v3283_v11  ;;  %2622 = vmatprep.mubr.msk.f32.mxu0 %vm640_vm12, %v638_v23  ;;  %v743_v30 = vld [vmem:[#allocation10 + $0x58] sm:$0xff]  ;;  %v782_v12 = vld [vmem:[#allocation10 + $0x190] sm:$0xff] }
 0x4a9   :  { %v2689_v61 = vpack.c.bf16 %v544_v16, %v529_v59  ;;  %v2830_v34 = vpack.c.bf16 %v747_v32, %v743_v30  ;;  %v2844_v59 = vpack.c.bf16 %v770_v56, %v766_v55  ;;  %v786_v14 = vld [vmem:[#allocation10 + $0x1b0] sm:$0xff]  ;;  %v791_v16 = vld [vmem:[#allocation10 + $0x1d8] sm:$0xff] }
 0x4aa   :  { %v552_v57 = vpop.permute.xlu0 %551  ;;  %v549_v17 = vpop.permute.xlu1 %548  ;;  %v2852_v15 = vpack.c.bf16 %v786_v14, %v782_v12  ;;  %v802_v23 = vld [vmem:[#allocation10 + $0x230] sm:$0xff]  ;;  %v815_v32 = vld [vmem:[#allocation10 + $0x298] sm:$0xff]  ;;  %v733_v12 = vld [vmem:[#allocation10 + $0x8] sm:$0xff] }
 0x4ab   :  { %v550_v20 = vmul.f32 %v549_v17, %v437_v38  ;;  %2690 = vmatpush3.bf16.msra.mxu1 %v2689_v61  ;;  %v553_v5 = vmul.f32 %v2482_v43, %v552_v57  ;;  %v751_v38 = vld [vmem:[#allocation10 + $0x98] sm:$0xff]  ;;  %v2836_v43 = vpack.c.bf16 %v754_v42, %v750_v41  ;;  %v790_v17 = vld [vmem:[#allocation10 + $0x1d0] sm:$0xff]  ;;  %v737_v14 = vld [vmem:[#allocation10 + $0x28] sm:$0xff] }
 0x4ac   :  { %2691 = vmatprep.subr.bf16.mxu1 %v3283_v11  ;;  %v2834_v40 = vpack.c.bf16 %v755_v39, %v751_v38  ;;  %v795_v61 = vld [vmem:[#allocation10 + $0x1f8] sm:$0xff]  ;;  %v822_v42 = vld [vmem:[#allocation10 + $0x2d0] sm:$0xff] }
 0x4ad   :  { %v2692_v13 = vpack.c.bf16 %v550_v20, %v547_v18  ;;  %v2695_v21 = vpack.c.bf16 %v3281_v2, %v553_v5  ;;  %v2854_v57 = vpack.c.bf16 %v795_v61, %v791_v16  ;;  %v794_v18 = vld [vmem:[#allocation10 + $0x1f0] sm:$0xff]  ;;  %v799_v5 = vld [vmem:[#allocation10 + $0x218] sm:$0xff]  ;;  %v732_v61 = vld [vmem:[#allocation10] sm:$0xff] }
 0x4ae   :  { %v2856_v20 = vpack.c.bf16 %v794_v18, %v790_v17  ;;  %v823_v39 = vld [vmem:[#allocation10 + $0x2d8] sm:$0xff]  ;;  %v838_v56 = vld [vmem:[#allocation10 + $0x350] sm:$0xff]  ;;  %v741_v17 = vld [vmem:[#allocation10 + $0x48] sm:$0xff] }
 0x4af   :  { %2693 = vmatpush3.bf16.msra.mxu1 %v2692_v13  ;;  %v803_v13 = vld [vmem:[#allocation10 + $0x238] sm:$0xff]  ;;  %v745_v18 = vld [vmem:[#allocation10 + $0x68] sm:$0xff] }
 0x4b0   :  { %2694 = vmatprep.subr.bf16.mxu1 %v3283_v11  ;;  %v734_v11 = vld [vmem:[#allocation10 + $0x10] sm:$0xff] }
 0x4b1   :  { %v2828_v29 = vpack.c.bf16 %v738_v28, %v734_v11  ;;  %v806_v28 = vld [vmem:[#allocation10 + $0x250] sm:$0xff] }
 0x4b3   :  { %2697 = vmatpush3.bf16.msk.msra.mxu1 %vm3479_vm3, %v2695_v21  ;;  %v2858_v21 = vpack.c.bf16 %v803_v13, %v799_v5  ;;  %v2698_v5 = vpack.c.bf16 %v737_v14, %v733_v12  ;;  %v801_v12 = vld [vmem:[#allocation10 + $0x228] sm:$0xff] }
 0x4b4   :  { %2827 = vmatprep.subr.bf16.mxu1 %v2826_v27  ;;  %v811_v27 = vld [vmem:[#allocation10 + $0x278] sm:$0xff] }
 0x4b5   :  { %v2862_v11 = vpack.c.bf16 %v811_v27, %v807_v26  ;;  %v744_v26 = vld [vmem:[#allocation10 + $0x60] sm:$0xff]  ;;  %v749_v27 = vld [vmem:[#allocation10 + $0x88] sm:$0xff] }
 0x4b6   :  { %2618 = vmatmul.mubr.msk.f32.vlgmr.msra.gmra.mrb[2].mxu1 %vm555_vm11, %v554_v22  ;;  %v798_v22 = vld [vmem:[#allocation10 + $0x210] sm:$0xff] }
 0x4b7   :  { %2829 = vmatpush1.bf16.msra.mxu1 %v2828_v29  ;;  %v2860_v25 = vpack.c.bf16 %v802_v23, %v798_v22  ;;  %v810_v29 = vld [vmem:[#allocation10 + $0x270] sm:$0xff]  ;;  %v2702_v23 = vpack.c.bf16 %v745_v18, %v741_v17  ;;  %v809_v17 = vld [vmem:[#allocation10 + $0x268] sm:$0xff] }
 0x4b8   :  { %2831 = vmatprep.subr.bf16.mxu1 %v2830_v34  ;;  %v2864_v30 = vpack.c.bf16 %v810_v29, %v806_v28  ;;  %v819_v34 = vld [vmem:[#allocation10 + $0x2b8] sm:$0xff] }
 0x4b9   :  { %v2866_v35 = vpack.c.bf16 %v819_v34, %v815_v32  ;;  %v752_v32 = vld [vmem:[#allocation10 + $0xa0] sm:$0xff]  ;;  %v757_v34 = vld [vmem:[#allocation10 + $0xc8] sm:$0xff] }
 0x4bb   :  { %2833 = vmatpush1.bf16.msra.mxu1 %v2832_v37  ;;  %v818_v37 = vld [vmem:[#allocation10 + $0x2b0] sm:$0xff] }
 0x4bc   :  { %2835 = vmatprep.subr.bf16.mxu1 %v2834_v40  ;;  %v2868_v38 = vpack.c.bf16 %v818_v37, %v814_v36  ;;  %v827_v40 = vld [vmem:[#allocation10 + $0x2f8] sm:$0xff] }
 0x4bd   :  { %v2870_v41 = vpack.c.bf16 %v827_v40, %v823_v39  ;;  %v760_v39 = vld [vmem:[#allocation10 + $0xe0] sm:$0xff]  ;;  %v765_v40 = vld [vmem:[#allocation10 + $0x108] sm:$0xff] }
 0x4bf   :  { %2837 = vmatpush1.bf16.msra.mxu1 %v2836_v43  ;;  %v826_v43 = vld [vmem:[#allocation10 + $0x2f0] sm:$0xff] }
 0x4c0   :  { %2839 = vmatprep.subr.bf16.mxu1 %v2838_v46  ;;  %v2872_v44 = vpack.c.bf16 %v826_v43, %v822_v42  ;;  %v835_v46 = vld [vmem:[#allocation10 + $0x338] sm:$0xff] }
 0x4c1   :  { %v2874_v47 = vpack.c.bf16 %v835_v46, %v831_v45  ;;  %v768_v45 = vld [vmem:[#allocation10 + $0x120] sm:$0xff]  ;;  %v773_v46 = vld [vmem:[#allocation10 + $0x148] sm:$0xff] }
 0x4c3   :  { %2841 = vmatpush1.bf16.msra.mxu1 %v2840_v49  ;;  %v834_v49 = vld [vmem:[#allocation10 + $0x330] sm:$0xff] }
 0x4c4   :  { %2843 = vmatprep.subr.bf16.mxu1 %v2842_v53  ;;  %v2876_v50 = vpack.c.bf16 %v834_v49, %v830_v48  ;;  %v843_v53 = vld [vmem:[#allocation10 + $0x378] sm:$0xff] }
 0x4c5   :  { %v2878_v55 = vpack.c.bf16 %v843_v53, %v839_v52  ;;  %v776_v52 = vld [vmem:[#allocation10 + $0x160] sm:$0xff]  ;;  %v781_v53 = vld [vmem:[#allocation10 + $0x188] sm:$0xff] }
 0x4c7   :  { %2845 = vmatpush1.bf16.msra.mxu1 %v2844_v59  ;;  %v842_v59 = vld [vmem:[#allocation10 + $0x370] sm:$0xff] }
 0x4c8   :  { %2847 = vmatprep.subr.bf16.mxu1 %v2846_v0  ;;  %v2880_v60 = vpack.c.bf16 %v842_v59, %v838_v56  ;;  %v851_v0 = vld [vmem:[#allocation10 + $0x3b8] sm:$0xff] }
 0x4c9   :  { %v2882_v1 = vpack.c.bf16 %v851_v0, %v847_v63  ;;  %v784_v63 = vld [vmem:[#allocation10 + $0x1a0] sm:$0xff]  ;;  %v789_v0 = vld [vmem:[#allocation10 + $0x1c8] sm:$0xff] }
 0x4cb   :  { %2849 = vmatpush1.bf16.msra.mxu1 %v2848_v7  ;;  %v850_v7 = vld [vmem:[#allocation10 + $0x3b0] sm:$0xff] }
 0x4cc   :  { %2851 = vmatprep.subr.bf16.mxu1 %v2850_v10  ;;  %v2884_v8 = vpack.c.bf16 %v850_v7, %v846_v3 }
 0x4cf   :  { %2853 = vmatpush1.bf16.msra.mxu1 %v2852_v15 }
 0x4d0   :  { %2855 = vmatprep.subr.bf16.mxu1 %v2854_v57  ;;  %v736_v57 = vld [vmem:[#allocation10 + $0x20] sm:$0xff] }
 0x4d1   :  { %v2700_v22 = vpack.c.bf16 %v736_v57, %v732_v61  ;;  %v800_v61 = vld [vmem:[#allocation10 + $0x220] sm:$0xff]  ;;  %v805_v57 = vld [vmem:[#allocation10 + $0x248] sm:$0xff] }
 0x4d3   :  { %2857 = vmatpush1.bf16.msra.mxu1 %v2856_v20 }
 0x4d4   :  { %2859 = vmatprep.subr.bf16.mxu1 %v2858_v21  ;;  %v639_v21 = vld [vmem:[%s4438_s9 + $0x8] sm:$0xff]  ;;  %s2487_s9 = sld [smem:[#allocation2 + $0x3]] }
 0x4d7   :  { %2861 = vmatpush1.bf16.msra.mxu1 %v2860_v25  ;;  %v740_v25 = vld [vmem:[#allocation10 + $0x40] sm:$0xff] }
 0x4d8   :  { %2863 = vmatprep.subr.bf16.mxu1 %v2862_v11  ;;  %v753_v11 = vld [vmem:[#allocation10 + $0xa8] sm:$0xff]  ;;  %v2704_v28 = vpack.c.bf16 %v744_v26, %v740_v25  ;;  %v812_v26 = vld [vmem:[#allocation10 + $0x280] sm:$0xff] }
 0x4d9   :  { %v2706_v29 = vpack.c.bf16 %v753_v11, %v749_v27  ;;  %v816_v27 = vld [vmem:[#allocation10 + $0x2a0] sm:$0xff]  ;;  %v821_v11 = vld [vmem:[#allocation10 + $0x2c8] sm:$0xff] }
 0x4db   :  { %2865 = vmatpush1.bf16.msra.mxu1 %v2864_v30  ;;  %v748_v30 = vld [vmem:[#allocation10 + $0x80] sm:$0xff] }
 0x4dc   :  { %2867 = vmatprep.subr.bf16.mxu1 %v2866_v35  ;;  %v761_v35 = vld [vmem:[#allocation10 + $0xe8] sm:$0xff]  ;;  %v2708_v36 = vpack.c.bf16 %v752_v32, %v748_v30  ;;  %v820_v32 = vld [vmem:[#allocation10 + $0x2c0] sm:$0xff] }
 0x4dd   :  { %v2710_v37 = vpack.c.bf16 %v761_v35, %v757_v34  ;;  %v824_v34 = vld [vmem:[#allocation10 + $0x2e0] sm:$0xff]  ;;  %v829_v35 = vld [vmem:[#allocation10 + $0x308] sm:$0xff] }
 0x4df   :  { %2869 = vmatpush1.bf16.msra.mxu1 %v2868_v38  ;;  %v756_v38 = vld [vmem:[#allocation10 + $0xc0] sm:$0xff] }
 0x4e0   :  { %2871 = vmatprep.subr.bf16.mxu1 %v2870_v41  ;;  %v769_v41 = vld [vmem:[#allocation10 + $0x128] sm:$0xff]  ;;  %v2712_v42 = vpack.c.bf16 %v760_v39, %v756_v38  ;;  %v828_v39 = vld [vmem:[#allocation10 + $0x300] sm:$0xff] }
 0x4e1   :  { %v2714_v43 = vpack.c.bf16 %v769_v41, %v765_v40  ;;  %v832_v40 = vld [vmem:[#allocation10 + $0x320] sm:$0xff]  ;;  %v837_v41 = vld [vmem:[#allocation10 + $0x348] sm:$0xff] }
 0x4e3   :  { %2873 = vmatpush1.bf16.msra.mxu1 %v2872_v44  ;;  %v764_v44 = vld [vmem:[#allocation10 + $0x100] sm:$0xff] }
 0x4e4   :  { %2875 = vmatprep.subr.bf16.mxu1 %v2874_v47  ;;  %v777_v47 = vld [vmem:[#allocation10 + $0x168] sm:$0xff]  ;;  %v2716_v48 = vpack.c.bf16 %v768_v45, %v764_v44  ;;  %v836_v45 = vld [vmem:[#allocation10 + $0x340] sm:$0xff] }
 0x4e5   :  { %v2718_v49 = vpack.c.bf16 %v777_v47, %v773_v46  ;;  %v840_v46 = vld [vmem:[#allocation10 + $0x360] sm:$0xff]  ;;  %v845_v47 = vld [vmem:[#allocation10 + $0x388] sm:$0xff] }
 0x4e7   :  { %2877 = vmatpush1.bf16.msra.mxu1 %v2876_v50  ;;  %v772_v50 = vld [vmem:[#allocation10 + $0x140] sm:$0xff] }
 0x4e8   :  { %2879 = vmatprep.subr.bf16.mxu1 %v2878_v55  ;;  %v785_v55 = vld [vmem:[#allocation10 + $0x1a8] sm:$0xff]  ;;  %v2720_v56 = vpack.c.bf16 %v776_v52, %v772_v50  ;;  %v844_v52 = vld [vmem:[#allocation10 + $0x380] sm:$0xff] }
 0x4e9   :  { %v2722_v59 = vpack.c.bf16 %v785_v55, %v781_v53  ;;  %v848_v53 = vld [vmem:[#allocation10 + $0x3a0] sm:$0xff] }
 0x4ea   :  { %v2756_v55 = vpack.c.bf16 %v848_v53, %v844_v52  ;;  %v885_v52 = vld [vmem:[#allocation10 + $0x4c8] sm:$0xff] }
 0x4eb   :  { %2881 = vmatpush1.bf16.msra.mxu1 %v2880_v60  ;;  %v780_v60 = vld [vmem:[#allocation10 + $0x180] sm:$0xff]  ;;  %v889_v53 = vld [vmem:[#allocation10 + $0x4e8] sm:$0xff] }
 0x4ec   :  { %2883 = vmatprep.subr.bf16.mxu1 %v2882_v1  ;;  %v793_v1 = vld [vmem:[#allocation10 + $0x1e8] sm:$0xff]  ;;  %v2724_v3 = vpack.c.bf16 %v784_v63, %v780_v60  ;;  %v855_v60 = vld [vmem:[#allocation10 + $0x3d8] sm:$0xff] }
 0x4ed   :  { %v2726_v7 = vpack.c.bf16 %v793_v1, %v789_v0  ;;  %v859_v0 = vld [vmem:[#allocation10 + $0x3f8] sm:$0xff]  ;;  %v852_v1 = vld [vmem:[#allocation10 + $0x3c0] sm:$0xff] }
 0x4ef   :  { %2885 = vmatpush1.bf16.msra.mxu1 %v2884_v8  ;;  %v788_v8 = vld [vmem:[#allocation10 + $0x1c0] sm:$0xff] }
 0x589   :  { %v625_v10 = vpop.f32.mrb[2].mxu1 }
 0x58a   :  { %vm629_vm13 = vcmp.ge.f32.partialorder %v625_v10, 0.0  ;;  %v631_v15 = vmul.f32 %v630_v9, %v625_v10  ;;  %v2619_v16 = vpop.f32.mrb[3].mxu1  ;;  %v792_v9 = vld [vmem:[#allocation10 + $0x1e0] sm:$0xff] }
 0x58b   :  { %v2728_v14 = vpack.c.bf16 %v792_v9, %v788_v8  ;;  %v796_v16 = vld [vmem:[#allocation10 + $0x200] sm:$0xff]  ;;  %v854_v9 = vld [vmem:[#allocation10 + $0x3d0] sm:$0xff] }
 0x58c   :  { %v632_v20 = vsel %vm629_vm13, %v625_v10, %v631_v15  ;;  %v797_v10 = vld [vmem:[#allocation10 + $0x208] sm:$0xff]  ;;  %v2732_v18 = vpack.c.bf16 %v800_v61, %v796_v16  ;;  %v863_v16 = vld [vmem:[#allocation10 + $0x418] sm:$0xff] }
 0x58d   :  { %v637_v13 = vsel %vm636_vm14, %v632_v20, 1.0  ;;  %v2730_v15 = vpack.c.bf16 %v801_v12, %v797_v10  ;;  %v2734_v20 = vpack.c.bf16 %v809_v17, %v805_v57  ;;  %v858_v10 = vld [vmem:[#allocation10 + $0x3f0] sm:$0xff]  ;;  %v867_v57 = vld [vmem:[#allocation10 + $0x438] sm:$0xff] }
 0x58e   :  { %2620 = vmatprep.subr.msk.mxu0 %vm647_vm15, %v637_v13  ;;  %v2888_v12 = vpack.c.bf16 %v858_v10, %v854_v9  ;;  %v2890_v17 = vpack.c.bf16 %v867_v57, %v863_v16  ;;  %v893_v9 = vld [vmem:[#allocation10 + $0x508] sm:$0xff]  ;;  %v896_v57 = vld [vmem:[#allocation10 + $0x520] sm:$0xff] }
 0x58f   :  { %2621 = vmatpush3.msk.msra.mxu0 %vm647_vm15, %v637_v13  ;;  %v808_v13 = vld [vmem:[#allocation10 + $0x260] sm:$0xff]  ;;  %v897_v10 = vld [vmem:[#allocation10 + $0x528] sm:$0xff] }
 0x590   :  { %2623 = vmatmul.mubr.msk.f32.vlgmr.msra.gmra.mrb[6].mxu0 %vm640_vm12, %v639_v21  ;;  %2699 = vmatprep.subr.bf16.mxu0 %v2698_v5  ;;  %v804_v5 = vld [vmem:[#allocation10 + $0x240] sm:$0xff]  ;;  %v813_v21 = vld [vmem:[#allocation10 + $0x288] sm:$0xff] }
 0x591   :  { %2701 = vmatpush1.bf16.msra.mxu0 %v2700_v22  ;;  %v817_v22 = vld [vmem:[#allocation10 + $0x2a8] sm:$0xff] }
 0x592   :  { %2703 = vmatprep.subr.bf16.mxu0 %v2702_v23  ;;  %v2736_v23 = vpack.c.bf16 %v808_v13, %v804_v5  ;;  %v2738_v25 = vpack.c.bf16 %v817_v22, %v813_v21  ;;  %v862_v5 = vld [vmem:[#allocation10 + $0x410] sm:$0xff]  ;;  %v869_v22 = vld [vmem:[#allocation10 + $0x448] sm:$0xff] }
 0x593   :  { %v866_v13 = vld [vmem:[#allocation10 + $0x430] sm:$0xff] }
 0x595   :  { %2705 = vmatpush1.bf16.msra.mxu0 %v2704_v28  ;;  %v825_v28 = vld [vmem:[#allocation10 + $0x2e8] sm:$0xff] }
 0x596   :  { %2707 = vmatprep.subr.bf16.mxu0 %v2706_v29  ;;  %v2740_v29 = vpack.c.bf16 %v816_v27, %v812_v26  ;;  %v2742_v30 = vpack.c.bf16 %v825_v28, %v821_v11  ;;  %v871_v26 = vld [vmem:[#allocation10 + $0x458] sm:$0xff] }
 0x597   :  { %v875_v27 = vld [vmem:[#allocation10 + $0x478] sm:$0xff] }
 0x599   :  { %2709 = vmatpush1.bf16.msra.mxu0 %v2708_v36  ;;  %v833_v36 = vld [vmem:[#allocation10 + $0x328] sm:$0xff] }
 0x59a   :  { %2711 = vmatprep.subr.bf16.mxu0 %v2710_v37  ;;  %v2744_v37 = vpack.c.bf16 %v824_v34, %v820_v32  ;;  %v2746_v38 = vpack.c.bf16 %v833_v36, %v829_v35  ;;  %v872_v32 = vld [vmem:[#allocation10 + $0x460] sm:$0xff]  ;;  %v870_v34 = vld [vmem:[#allocation10 + $0x450] sm:$0xff]  ;;  %v877_v36 = vld [vmem:[#allocation10 + $0x488] sm:$0xff] }
 0x59b   :  { %v874_v35 = vld [vmem:[#allocation10 + $0x470] sm:$0xff] }
 0x59d   :  { %2713 = vmatpush1.bf16.msra.mxu0 %v2712_v42  ;;  %v841_v42 = vld [vmem:[#allocation10 + $0x368] sm:$0xff] }
 0x59e   :  { %2715 = vmatprep.subr.bf16.mxu0 %v2714_v43  ;;  %v2748_v43 = vpack.c.bf16 %v832_v40, %v828_v39  ;;  %v2750_v44 = vpack.c.bf16 %v841_v42, %v837_v41  ;;  %v881_v39 = vld [vmem:[#allocation10 + $0x4a8] sm:$0xff]  ;;  %v879_v40 = vld [vmem:[#allocation10 + $0x498] sm:$0xff] }
 0x59f   :  { %v883_v41 = vld [vmem:[#allocation10 + $0x4b8] sm:$0xff] }
 0x5a1   :  { %2717 = vmatpush1.bf16.msra.mxu0 %v2716_v48  ;;  %v849_v48 = vld [vmem:[#allocation10 + $0x3a8] sm:$0xff] }
 0x5a2   :  { %2719 = vmatprep.subr.bf16.mxu0 %v2718_v49  ;;  %v2752_v49 = vpack.c.bf16 %v840_v46, %v836_v45  ;;  %v2754_v50 = vpack.c.bf16 %v849_v48, %v845_v47  ;;  %v876_v45 = vld [vmem:[#allocation10 + $0x480] sm:$0xff]  ;;  %v2770_v47 = vpack.c.bf16 %v881_v39, %v877_v36  ;;  %v2898_v48 = vpack.c.bf16 %v883_v41, %v879_v40  ;;  %v913_v36 = vld [vmem:[#allocation10 + $0x5a8] sm:$0xff] }
 0x5a3   :  { %v880_v46 = vld [vmem:[#allocation10 + $0x4a0] sm:$0xff] }
 0x5a4   :  { %v908_v41 = vld [vmem:[#allocation10 + $0x580] sm:$0xff] }
 0x5a5   :  { %2721 = vmatpush1.bf16.msra.mxu0 %v2720_v56  ;;  %v853_v56 = vld [vmem:[#allocation10 + $0x3c8] sm:$0xff] }
 0x5a6   :  { %2723 = vmatprep.subr.bf16.mxu0 %v2722_v59  ;;  %v857_v59 = vld [vmem:[#allocation10 + $0x3e8] sm:$0xff] }
 0x5a7   :  { %v2758_v63 = vpack.c.bf16 %v857_v59, %v853_v56  ;;  %v891_v56 = vld [vmem:[#allocation10 + $0x4f8] sm:$0xff]  ;;  %v2772_v59 = vpack.c.bf16 %v880_v46, %v876_v45  ;;  %v910_v45 = vld [vmem:[#allocation10 + $0x590] sm:$0xff] }
 0x5a8   :  { %v914_v46 = vld [vmem:[#allocation10 + $0x5b0] sm:$0xff] }
 0x5a9   :  { %2725 = vmatpush1.bf16.msra.mxu0 %v2724_v3  ;;  %v856_v3 = vld [vmem:[#allocation10 + $0x3e0] sm:$0xff] }
 0x5aa   :  { %2727 = vmatprep.subr.bf16.mxu0 %v2726_v7  ;;  %v2886_v7 = vpack.c.bf16 %v859_v0, %v855_v60  ;;  %v2760_v8 = vpack.c.bf16 %v856_v3, %v852_v1  ;;  %v888_v0 = vld [vmem:[#allocation10 + $0x4e0] sm:$0xff]  ;;  %v2774_v1 = vpack.c.bf16 %v889_v53, %v885_v52  ;;  %v2916_v53 = vpack.c.bf16 %v914_v46, %v910_v45  ;;  %v951_v45 = vld [vmem:[#allocation10 + $0x6d8] sm:$0xff] }
 0x5ab   :  { %v955_v46 = vld [vmem:[#allocation10 + $0x6f8] sm:$0xff] }
 0x5ac   :  { %2887 = vmatprep.subr.bf16.mxu1 %v2886_v7  ;;  %v886_v7 = vld [vmem:[#allocation10 + $0x4d0] sm:$0xff] }
 0x5ad   :  { %2729 = vmatpush1.bf16.msra.mxu0 %v2728_v14  ;;  %v861_v14 = vld [vmem:[#allocation10 + $0x408] sm:$0xff]  ;;  %2889 = vmatpush1.bf16.msra.mxu1 %v2888_v12  ;;  %v895_v12 = vld [vmem:[#allocation10 + $0x518] sm:$0xff] }
 0x5ae   :  { %2731 = vmatprep.subr.bf16.mxu0 %v2730_v15  ;;  %v865_v15 = vld [vmem:[#allocation10 + $0x428] sm:$0xff]  ;;  %2891 = vmatprep.subr.bf16.mxu1 %v2890_v17  ;;  %v2778_v17 = vpack.c.bf16 %v897_v10, %v893_v9 }
 0x5af   :  { %v2762_v61 = vpack.c.bf16 %v865_v15, %v861_v14  ;;  %v899_v14 = vld [vmem:[#allocation10 + $0x538] sm:$0xff] }
 0x5b1   :  { %2733 = vmatpush1.bf16.msra.mxu0 %v2732_v18  ;;  %v860_v18 = vld [vmem:[#allocation10 + $0x400] sm:$0xff] }
 0x5b2   :  { %2735 = vmatprep.subr.bf16.mxu0 %v2734_v20  ;;  %v864_v20 = vld [vmem:[#allocation10 + $0x420] sm:$0xff] }
 0x5b3   :  { %v2764_v28 = vpack.c.bf16 %v864_v20, %v860_v18  ;;  %v2906_v18 = vpack.c.bf16 %v899_v14, %v895_v12  ;;  %v894_v20 = vld [vmem:[#allocation10 + $0x510] sm:$0xff]  ;;  %v924_v12 = vld [vmem:[#allocation10 + $0x600] sm:$0xff] }
 0x5b4   :  { %v928_v14 = vld [vmem:[#allocation10 + $0x620] sm:$0xff] }
 0x5b5   :  { %2737 = vmatpush1.bf16.msra.mxu0 %v2736_v23 }
 0x5b6   :  { %2739 = vmatprep.subr.bf16.mxu0 %v2738_v25  ;;  %v873_v25 = vld [vmem:[#allocation10 + $0x468] sm:$0xff] }
 0x5b9   :  { %2741 = vmatpush1.bf16.msra.mxu0 %v2740_v29  ;;  %v2892_v29 = vpack.c.bf16 %v866_v13, %v862_v5  ;;  %v898_v5 = vld [vmem:[#allocation10 + $0x530] sm:$0xff]  ;;  %v901_v13 = vld [vmem:[#allocation10 + $0x548] sm:$0xff] }
 0x5ba   :  { %2743 = vmatprep.subr.bf16.mxu0 %v2742_v30  ;;  %v868_v30 = vld [vmem:[#allocation10 + $0x440] sm:$0xff] }
 0x5bd   :  { %2745 = vmatpush1.bf16.msra.mxu0 %v2744_v37  ;;  %v2766_v37 = vpack.c.bf16 %v873_v25, %v869_v22  ;;  %v905_v22 = vld [vmem:[#allocation10 + $0x568] sm:$0xff]  ;;  %v907_v25 = vld [vmem:[#allocation10 + $0x578] sm:$0xff] }
 0x5be   :  { %2747 = vmatprep.subr.bf16.mxu0 %v2746_v38  ;;  %v2894_v38 = vpack.c.bf16 %v875_v27, %v871_v26  ;;  %v2908_v27 = vpack.c.bf16 %v898_v5, %v894_v20  ;;  %v935_v20 = vld [vmem:[#allocation10 + $0x658] sm:$0xff] }
 0x5bf   :  { %v939_v5 = vld [vmem:[#allocation10 + $0x678] sm:$0xff] }
 0x5c1   :  { %2749 = vmatpush1.bf16.msra.mxu0 %v2748_v43  ;;  %v2768_v43 = vpack.c.bf16 %v872_v32, %v868_v30  ;;  %v902_v32 = vld [vmem:[#allocation10 + $0x550] sm:$0xff] }
 0x5c2   :  { %2751 = vmatprep.subr.bf16.mxu0 %v2750_v44  ;;  %v2896_v44 = vpack.c.bf16 %v874_v35, %v870_v34  ;;  %v906_v34 = vld [vmem:[#allocation10 + $0x570] sm:$0xff]  ;;  %v909_v35 = vld [vmem:[#allocation10 + $0x588] sm:$0xff] }
 0x5c3   :  { %v2912_v40 = vpack.c.bf16 %v906_v34, %v902_v32  ;;  %v943_v32 = vld [vmem:[#allocation10 + $0x698] sm:$0xff] }
 0x5c4   :  { %v947_v34 = vld [vmem:[#allocation10 + $0x6b8] sm:$0xff] }
 0x5c5   :  { %2753 = vmatpush1.bf16.msra.mxu0 %v2752_v49  ;;  %v878_v49 = vld [vmem:[#allocation10 + $0x490] sm:$0xff] }
 0x5c6   :  { %2755 = vmatprep.subr.bf16.mxu0 %v2754_v50  ;;  %v882_v50 = vld [vmem:[#allocation10 + $0x4b0] sm:$0xff] }
 0x5c7   :  { %v2900_v60 = vpack.c.bf16 %v882_v50, %v878_v49  ;;  %v919_v49 = vld [vmem:[#allocation10 + $0x5d8] sm:$0xff] }
 0x5c8   :  { %v923_v50 = vld [vmem:[#allocation10 + $0x5f8] sm:$0xff] }
 0x5c9   :  { %2757 = vmatpush1.bf16.msra.mxu0 %v2756_v55  ;;  %v887_v55 = vld [vmem:[#allocation10 + $0x4d8] sm:$0xff] }
 0x5ca   :  { %2759 = vmatprep.subr.bf16.mxu0 %v2758_v63  ;;  %v884_v63 = vld [vmem:[#allocation10 + $0x4c0] sm:$0xff]  ;;  %v2902_v3 = vpack.c.bf16 %v891_v56, %v887_v55 }
 0x5cb   :  { %v2776_v15 = vpack.c.bf16 %v888_v0, %v884_v63  ;;  %v916_v55 = vld [vmem:[#allocation10 + $0x5c0] sm:$0xff]  ;;  %v918_v63 = vld [vmem:[#allocation10 + $0x5d0] sm:$0xff] }
 0x5cc   :  { %v920_v56 = vld [vmem:[#allocation10 + $0x5e0] sm:$0xff]  ;;  %v922_v0 = vld [vmem:[#allocation10 + $0x5f0] sm:$0xff] }
 0x5cd   :  { %2761 = vmatpush1.bf16.msra.mxu0 %v2760_v8  ;;  %v890_v8 = vld [vmem:[#allocation10 + $0x4f0] sm:$0xff]  ;;  %v2792_v9 = vpack.c.bf16 %v920_v56, %v916_v55  ;;  %v2920_v10 = vpack.c.bf16 %v922_v0, %v918_v63  ;;  %v959_v63 = vld [vmem:[#allocation10 + $0x718] sm:$0xff] }
 0x5ce   :  { %2763 = vmatprep.subr.bf16.mxu0 %v2762_v61  ;;  %v2904_v16 = vpack.c.bf16 %v890_v8, %v886_v7  ;;  %v892_v61 = vld [vmem:[#allocation10 + $0x500] sm:$0xff]  ;;  %v927_v7 = vld [vmem:[#allocation10 + $0x618] sm:$0xff]  ;;  %v950_v55 = vld [vmem:[#allocation10 + $0x6d0] sm:$0xff] }
 0x5cf   :  { %v2780_v26 = vpack.c.bf16 %v896_v57, %v892_v61  ;;  %v931_v8 = vld [vmem:[#allocation10 + $0x638] sm:$0xff]  ;;  %v926_v61 = vld [vmem:[#allocation10 + $0x610] sm:$0xff] }
 0x5d0   :  { %v930_v57 = vld [vmem:[#allocation10 + $0x630] sm:$0xff]  ;;  %v963_v0 = vld [vmem:[#allocation10 + $0x738] sm:$0xff] }
 0x5d1   :  { %v954_v56 = vld [vmem:[#allocation10 + $0x6f0] sm:$0xff] }
 0x663   :  { %v3651_v21 = vpop.f32.mrb[6].mxu0 }
 0x664   :  { %v717_v23 = vpop.f32.mrb[7].mxu0  ;;  %v730_v42 = vrot.slane %v3651_v21, 4 }
 0x665   :  { %v727_v11 = vrot.slane %v717_v23, 4 }
 0x667   :  { %1052 = vmatprep.mubr.f32.mxu0 %v727_v11  ;;  %1194 = vmatprep.mubr.f32.mxu1 %v727_v11  ;;  %v900_v11 = vld [vmem:[#allocation10 + $0x540] sm:$0xff] }
 0x668   :  { %1053 = vmatmul.mubr.f32.vlgmr.msra.gmra.mrb[8].mxu0 %v717_v23  ;;  %1195 = vmatmul.mubr.f32.vlgmr.msra.gmra.mrb[4].mxu1 %v717_v23  ;;  %v903_v23 = vld [vmem:[#allocation10 + $0x558] sm:$0xff] }
 0x669   :  { %2765 = vmatpush1.bf16.msra.mxu0 %v2764_v28  ;;  %2893 = vmatpush1.bf16.msra.mxu1 %v2892_v29  ;;  %v904_v28 = vld [vmem:[#allocation10 + $0x560] sm:$0xff]  ;;  %v2782_v29 = vpack.c.bf16 %v905_v22, %v901_v13  ;;  %v2910_v30 = vpack.c.bf16 %v907_v25, %v903_v23  ;;  %v2796_v13 = vpack.c.bf16 %v928_v14, %v924_v12  ;;  %v958_v12 = vld [vmem:[#allocation10 + $0x710] sm:$0xff] }
 0x66a   :  { %1123 = vmatprep.mubr.f32.mxu0 %v730_v42  ;;  %1265 = vmatprep.mubr.f32.mxu1 %v730_v42  ;;  %v2784_v39 = vpack.c.bf16 %v904_v28, %v900_v11  ;;  %v912_v42 = vld [vmem:[#allocation10 + $0x5a0] sm:$0xff]  ;;  %v2924_v22 = vpack.c.bf16 %v930_v57, %v926_v61  ;;  %v934_v11 = vld [vmem:[#allocation10 + $0x650] sm:$0xff]  ;;  %v967_v61 = vld [vmem:[#allocation10 + $0x758] sm:$0xff] }
 0x66b   :  { %2767 = vmatprep.subr.bf16.mxu0 %v2766_v37  ;;  %2895 = vmatprep.subr.bf16.mxu1 %v2894_v38  ;;  %v911_v37 = vld [vmem:[#allocation10 + $0x598] sm:$0xff]  ;;  %v2788_v52 = vpack.c.bf16 %v912_v42, %v908_v41  ;;  %v932_v23 = vld [vmem:[#allocation10 + $0x640] sm:$0xff]  ;;  %v938_v28 = vld [vmem:[#allocation10 + $0x670] sm:$0xff] }
 0x66c   :  { %v915_v38 = vld [vmem:[#allocation10 + $0x5b8] sm:$0xff]  ;;  %v936_v25 = vld [vmem:[#allocation10 + $0x660] sm:$0xff]  ;;  %v942_v41 = vld [vmem:[#allocation10 + $0x690] sm:$0xff] }
 0x66d   :  { %2769 = vmatpush1.bf16.msra.mxu0 %v2768_v43  ;;  %2897 = vmatpush1.bf16.msra.mxu1 %v2896_v44  ;;  %v2786_v43 = vpack.c.bf16 %v913_v36, %v909_v35  ;;  %v2914_v44 = vpack.c.bf16 %v915_v38, %v911_v37  ;;  %v2800_v35 = vpack.c.bf16 %v936_v25, %v932_v23  ;;  %v940_v37 = vld [vmem:[#allocation10 + $0x680] sm:$0xff]  ;;  %v946_v42 = vld [vmem:[#allocation10 + $0x6b0] sm:$0xff]  ;;  %v971_v57 = vld [vmem:[#allocation10 + $0x778] sm:$0xff] }
 0x66e   :  { %2771 = vmatprep.subr.bf16.mxu0 %v2770_v47  ;;  %2899 = vmatprep.subr.bf16.mxu1 %v2898_v48  ;;  %v917_v47 = vld [vmem:[#allocation10 + $0x5c8] sm:$0xff]  ;;  %v2928_v36 = vpack.c.bf16 %v938_v28, %v934_v11  ;;  %v944_v38 = vld [vmem:[#allocation10 + $0x6a0] sm:$0xff]  ;;  %v962_v14 = vld [vmem:[#allocation10 + $0x730] sm:$0xff] }
 0x66f   :  { %v921_v48 = vld [vmem:[#allocation10 + $0x5e8] sm:$0xff]  ;;  %v966_v23 = vld [vmem:[#allocation10 + $0x750] sm:$0xff]  ;;  %v975_v11 = vld [vmem:[#allocation10 + $0x798] sm:$0xff] }
 0x670   :  { %v970_v25 = vld [vmem:[#allocation10 + $0x770] sm:$0xff]  ;;  %v979_v28 = vld [vmem:[#allocation10 + $0x7b8] sm:$0xff] }
 0x671   :  { %2773 = vmatpush1.bf16.msra.mxu0 %v2772_v59  ;;  %2901 = vmatpush1.bf16.msra.mxu1 %v2900_v60  ;;  %v2790_v59 = vpack.c.bf16 %v921_v48, %v917_v47  ;;  %v2918_v60 = vpack.c.bf16 %v923_v50, %v919_v49  ;;  %v2804_v47 = vpack.c.bf16 %v944_v38, %v940_v37  ;;  %v948_v49 = vld [vmem:[#allocation10 + $0x6c0] sm:$0xff]  ;;  %v974_v37 = vld [vmem:[#allocation10 + $0x790] sm:$0xff] }
 0x672   :  { %2775 = vmatprep.subr.bf16.mxu0 %v2774_v1  ;;  %2903 = vmatprep.subr.bf16.mxu1 %v2902_v3  ;;  %v925_v1 = vld [vmem:[#allocation10 + $0x608] sm:$0xff]  ;;  %v2932_v48 = vpack.c.bf16 %v946_v42, %v942_v41  ;;  %v952_v50 = vld [vmem:[#allocation10 + $0x6e0] sm:$0xff]  ;;  %v978_v38 = vld [vmem:[#allocation10 + $0x7b0] sm:$0xff] }
 0x673   :  { %v929_v3 = vld [vmem:[#allocation10 + $0x628] sm:$0xff]  ;;  %v983_v41 = vld [vmem:[#allocation10 + $0x7d8] sm:$0xff] }
 0x674   :  { %v987_v42 = vld [vmem:[#allocation10 + $0x7f8] sm:$0xff] }
 0x675   :  { %2777 = vmatpush1.bf16.msra.mxu0 %v2776_v15  ;;  %2905 = vmatpush1.bf16.msra.mxu1 %v2904_v16  ;;  %v2794_v15 = vpack.c.bf16 %v929_v3, %v925_v1  ;;  %v2922_v16 = vpack.c.bf16 %v931_v8, %v927_v7  ;;  %v2808_v1 = vpack.c.bf16 %v952_v50, %v948_v49  ;;  %v956_v7 = vld [vmem:[#allocation10 + $0x700] sm:$0xff]  ;;  %v982_v49 = vld [vmem:[#allocation10 + $0x7d0] sm:$0xff] }
 0x676   :  { %2779 = vmatprep.subr.bf16.mxu0 %v2778_v17  ;;  %2907 = vmatprep.subr.bf16.mxu1 %v2906_v18  ;;  %v933_v17 = vld [vmem:[#allocation10 + $0x648] sm:$0xff]  ;;  %v2936_v3 = vpack.c.bf16 %v954_v56, %v950_v55  ;;  %v960_v8 = vld [vmem:[#allocation10 + $0x720] sm:$0xff]  ;;  %v986_v50 = vld [vmem:[#allocation10 + $0x7f0] sm:$0xff]  ;;  %v1276_v56 = vstv %s2487_s9 }
 0x677   :  { %v937_v18 = vld [vmem:[#allocation10 + $0x668] sm:$0xff]  ;;  %v1285_v55 = vld [vmem:[%s4432_s3] sm:$0xff] }
 0x679   :  { %2781 = vmatpush1.bf16.msra.mxu0 %v2780_v26  ;;  %2909 = vmatpush1.bf16.msra.mxu1 %v2908_v27  ;;  %v2798_v26 = vpack.c.bf16 %v937_v18, %v933_v17  ;;  %v2926_v27 = vpack.c.bf16 %v939_v5, %v935_v20  ;;  %v2812_v17 = vpack.c.bf16 %v960_v8, %v956_v7  ;;  %v964_v20 = vld [vmem:[#allocation10 + $0x740] sm:$0xff] }
 0x67a   :  { %2783 = vmatprep.subr.bf16.mxu0 %v2782_v29  ;;  %2911 = vmatprep.subr.bf16.mxu1 %v2910_v30  ;;  %v941_v29 = vld [vmem:[#allocation10 + $0x688] sm:$0xff]  ;;  %v2940_v18 = vpack.c.bf16 %v962_v14, %v958_v12  ;;  %v968_v5 = vld [vmem:[#allocation10 + $0x760] sm:$0xff] }
 0x67b   :  { %v945_v30 = vld [vmem:[#allocation10 + $0x6a8] sm:$0xff] }
 0x67d   :  { %2785 = vmatpush1.bf16.msra.mxu0 %v2784_v39  ;;  %2913 = vmatpush1.bf16.msra.mxu1 %v2912_v40  ;;  %v2802_v39 = vpack.c.bf16 %v945_v30, %v941_v29  ;;  %v2930_v40 = vpack.c.bf16 %v947_v34, %v943_v32  ;;  %v2816_v29 = vpack.c.bf16 %v968_v5, %v964_v20  ;;  %v972_v32 = vld [vmem:[#allocation10 + $0x780] sm:$0xff]  ;;  %v3741_v5 = vand.u32 127, %v374_v51  ;;  %v3761_v51 = vld [vmem:[%s4442_s13 + $0x18] sm:$0xff] }
 0x67e   :  { %2787 = vmatprep.subr.bf16.mxu0 %v2786_v43  ;;  %2915 = vmatprep.subr.bf16.mxu1 %v2914_v44  ;;  %v949_v43 = vld [vmem:[#allocation10 + $0x6c8] sm:$0xff]  ;;  %v2944_v30 = vpack.c.bf16 %v970_v25, %v966_v23  ;;  %v976_v34 = vld [vmem:[#allocation10 + $0x7a0] sm:$0xff] }
 0x67f   :  { %v953_v44 = vld [vmem:[#allocation10 + $0x6e8] sm:$0xff]  ;;  %vm1315_vm5 = vcmp.lt.s32.totalorder %v3741_v5, 17  ;;  %vm1348_vm6 = vcmp.lt.s32.totalorder %v3741_v5, 16  ;;  %vm1381_vm7 = vcmp.lt.s32.totalorder %v3741_v5, 15  ;;  %vm1414_vm8 = vcmp.lt.s32.totalorder %v3741_v5, 1 }
 0x680   :  { %vm1447_vm9 = vcmp.lt.s32.totalorder %v3741_v5, 127  ;;  %vm1480_vm10 = vcmp.lt.s32.totalorder %v3741_v5, 113  ;;  %vm1513_vm12 = vcmp.lt.s32.totalorder %v3741_v5, 112  ;;  %vm1546_vm13 = vcmp.lt.s32.totalorder %v3741_v5, 111 }
 0x681   :  { %2789 = vmatpush1.bf16.msra.mxu0 %v2788_v52  ;;  %2917 = vmatpush1.bf16.msra.mxu1 %v2916_v53  ;;  %v2806_v52 = vpack.c.bf16 %v953_v44, %v949_v43  ;;  %v2934_v53 = vpack.c.bf16 %v955_v46, %v951_v45  ;;  %v2820_v43 = vpack.c.bf16 %v976_v34, %v972_v32  ;;  %v980_v45 = vld [vmem:[#allocation10 + $0x7c0] sm:$0xff] }
 0x682   :  { %2791 = vmatprep.subr.bf16.mxu0 %v2790_v59  ;;  %2919 = vmatprep.subr.bf16.mxu1 %v2918_v60  ;;  %v957_v59 = vld [vmem:[#allocation10 + $0x708] sm:$0xff]  ;;  %v2948_v44 = vpack.c.bf16 %v978_v38, %v974_v37 }
 0x683   :  { %v961_v60 = vld [vmem:[#allocation10 + $0x728] sm:$0xff] }
 0x685   :  { %2793 = vmatpush1.bf16.msra.mxu0 %v2792_v9  ;;  %2921 = vmatpush1.bf16.msra.mxu1 %v2920_v10  ;;  %v2810_v9 = vpack.c.bf16 %v961_v60, %v957_v59  ;;  %v2938_v10 = vpack.c.bf16 %v963_v0, %v959_v63  ;;  %v1289_v60 = vcombine.low %v1285_v55, %v1285_v55 }
 0x686   :  { %2795 = vmatprep.subr.bf16.mxu0 %v2794_v15  ;;  %2923 = vmatprep.subr.bf16.mxu1 %v2922_v16  ;;  %v965_v15 = vld [vmem:[#allocation10 + $0x748] sm:$0xff] }
 0x687   :  { %v969_v16 = vld [vmem:[#allocation10 + $0x768] sm:$0xff] }
 0x689   :  { %2797 = vmatpush1.bf16.msra.mxu0 %v2796_v13  ;;  %2925 = vmatpush1.bf16.msra.mxu1 %v2924_v22  ;;  %v2814_v13 = vpack.c.bf16 %v969_v16, %v965_v15  ;;  %v2942_v22 = vpack.c.bf16 %v971_v57, %v967_v61 }
 0x68a   :  { %2799 = vmatprep.subr.bf16.mxu0 %v2798_v26  ;;  %2927 = vmatprep.subr.bf16.mxu1 %v2926_v27  ;;  %v973_v26 = vld [vmem:[#allocation10 + $0x788] sm:$0xff] }
 0x68b   :  { %v977_v27 = vld [vmem:[#allocation10 + $0x7a8] sm:$0xff] }
 0x68d   :  { %2801 = vmatpush1.bf16.msra.mxu0 %v2800_v35  ;;  %2929 = vmatpush1.bf16.msra.mxu1 %v2928_v36  ;;  %v2818_v35 = vpack.c.bf16 %v977_v27, %v973_v26  ;;  %v2946_v36 = vpack.c.bf16 %v979_v28, %v975_v11  ;;  %v3756_v27 = vld [vmem:[%s4442_s13] sm:$0xff] }
 0x68e   :  { %2803 = vmatprep.subr.bf16.mxu0 %v2802_v39  ;;  %2931 = vmatprep.subr.bf16.mxu1 %v2930_v40  ;;  %v981_v39 = vld [vmem:[#allocation10 + $0x7c8] sm:$0xff]  ;;  %v3777_v34 = vrot.slane %v3756_v27, %v3551_v54 }
 0x68f   :  { %v985_v40 = vld [vmem:[#allocation10 + $0x7e8] sm:$0xff] }
 0x690   :  { %v2822_v46 = vpack.c.bf16 %v985_v40, %v981_v39  ;;  %v3793_v40 = vrot.slane %v3756_v27, %v3559_v58 }
 0x691   :  { %2805 = vmatpush1.bf16.msra.mxu0 %v2804_v47  ;;  %2933 = vmatpush1.bf16.msra.mxu1 %v2932_v48  ;;  %v2950_v47 = vpack.c.bf16 %v987_v42, %v983_v41  ;;  %v984_v48 = vld [vmem:[#allocation10 + $0x7e0] sm:$0xff]  ;;  %v3797_v41 = vrot.slane %v3761_v51, %v3559_v58 }
 0x692   :  { %2807 = vmatprep.subr.bf16.mxu0 %v2806_v52  ;;  %2935 = vmatprep.subr.bf16.mxu1 %v2934_v53  ;;  %v2824_v52 = vpack.c.bf16 %v984_v48, %v980_v45  ;;  %v2952_v53 = vpack.c.bf16 %v986_v50, %v982_v49 }
 0x695   :  { %2809 = vmatpush1.bf16.msra.mxu0 %v2808_v1  ;;  %2937 = vmatpush1.bf16.msra.mxu1 %v2936_v3 }
 0x696   :  { %2811 = vmatprep.subr.bf16.mxu0 %v2810_v9  ;;  %2939 = vmatprep.subr.bf16.mxu1 %v2938_v10 }
 0x699   :  { %2813 = vmatpush1.bf16.msra.mxu0 %v2812_v17  ;;  %2941 = vmatpush1.bf16.msra.mxu1 %v2940_v18 }
 0x69a   :  { %2815 = vmatprep.subr.bf16.mxu0 %v2814_v13  ;;  %2943 = vmatprep.subr.bf16.mxu1 %v2942_v22  ;;  %v3746_v22 = vld [vmem:[%s4442_s13 + $0x8] sm:$0xff] }
 0x69b   :  { %v3751_v26 = vrot.slane %v3746_v22, %v3551_v54  ;;  %v3766_v11 = vrot.slane %v3746_v22, %v3559_v58 }
 0x69d   :  { %2817 = vmatpush1.bf16.msra.mxu0 %v2816_v29  ;;  %2945 = vmatpush1.bf16.msra.mxu1 %v2944_v30  ;;  %v3773_v30 = vld [vmem:[%s4442_s13 + $0x10] sm:$0xff] }
 0x69e   :  { %2819 = vmatprep.subr.bf16.mxu0 %v2818_v35  ;;  %2947 = vmatprep.subr.bf16.mxu1 %v2946_v36  ;;  %v3781_v35 = vrot.slane %v3761_v51, %v3551_v54  ;;  %v3787_v37 = vrot.slane %v3773_v30, %v3559_v58  ;;  %v3801_v42 = vrot.slane %v3773_v30, %v3551_v54 }
 0x6a0   :  { %4455 = vst [vmem:[#allocation23_spill] sm:$0xff] %v3781_v35 }
 0x6a1   :  { %2821 = vmatpush1.bf16.msra.mxu0 %v2820_v43  ;;  %2949 = vmatpush1.bf16.msra.mxu1 %v2948_v44 }
 0x6a2   :  { %2823 = vmatprep.subr.bf16.mxu0 %v2822_v46  ;;  %2951 = vmatprep.subr.bf16.mxu1 %v2950_v47 }
 0x6a5   :  { %2825 = vmatpush1.bf16.msra.mxu0 %v2824_v52  ;;  %2953 = vmatpush1.bf16.msra.mxu1 %v2952_v53 }
 0x6a8   :  { %1124 = vmatmul.mubr.f32.vlgmr.msra.gmra.mrb[8].mxu0 %v3651_v21  ;;  %1266 = vmatmul.mubr.f32.vlgmr.msra.gmra.mrb[4].mxu1 %v3651_v21  ;;  %v1286_v21 = vld [vmem:[%s4432_s3 + $0x8] sm:$0xff]  ;;  %s3296_s3 = smov 16  }
 0x6a9   :  { %1639 = vmatprep.mubr.f32.mxu0 %v4448_v33  ;;  %1710 = vmatprep.mubr.f32.mxu1 %v4448_v33  ;;  %v1290_v14 = vcombine.low %v1286_v21, %v1286_v21 }
 0x77b   :  { %v1125_v59 = vpop.f32.mrb[8].mxu0  ;;  %v1267_v63 = vpop.f32.mrb[4].mxu1 }
 0x77c   :  { %vm1272_vm0 = vcmp.ge.f32.partialorder %v1125_v59, 0.0  ;;  %v1277_v0 = vmul.f32 %v1276_v56, %v1125_v59  ;;  %v1279_v1 = vmul.f32 %v1276_v56, %v1267_v63  ;;  %v1127_v3 = vpop.f32.mrb[9].mxu0  ;;  %v1269_v7 = vpop.f32.mrb[5].mxu1  ;;  %vm1274_vm1 = vcmp.ge.f32.partialorder %v1267_v63, 0.0 }
 0x77d   :  { %vm1273_vm2 = vcmp.ge.f32.partialorder %v1127_v3, 0.0  ;;  %v1278_v8 = vmul.f32 %v1276_v56, %v1127_v3  ;;  %v1280_v9 = vmul.f32 %v1276_v56, %v1269_v7  ;;  %vm1275_vm4 = vcmp.ge.f32.partialorder %v1269_v7, 0.0 }
 0x77e   :  { %v1281_v10 = vsel %vm1272_vm0, %v1125_v59, %v1277_v0  ;;  %v1283_v16 = vsel %vm1274_vm1, %v1267_v63, %v1279_v1 }
 0x77f   :  { %v3665_v12 = vsel %vm636_vm14, %v1281_v10, %v1289_v60  ;;  %v1282_v15 = vsel %vm1273_vm2, %v1127_v3, %v1278_v8  ;;  %v1284_v57 = vsel %vm1275_vm4, %v1269_v7, %v1280_v9  ;;  %v3675_v17 = vsel %vm636_vm14, %v1283_v16, %v1290_v14 }
 0x780   :  { %v3668_v61 = vsel %vm636_vm14, %v1282_v15, %v1285_v55  ;;  %1305 = vrot.lane.b32.xlu1 %v3665_v12, %s3295_s0  ;;  %v3678_v18 = vsel %vm636_vm14, %v1284_v57, %v1286_v21  ;;  %v3824_v8 = vrot.slane %v3746_v22, %v3565_v62  ;;  %v3829_v9 = vrot.slane %v3746_v22, %v3572_v6 }
 0x781   :  { %1307 = vrot.lane.b32.xlu0 %v3668_v61, %s3295_s0  ;;  %v3835_v16 = vrot.slane %v3756_v27, %v3565_v62  ;;  %v3839_v57 = vrot.slane %v3761_v51, %v3565_v62  ;;  %vm1927_vm2 = vcmask 302080  }
 0x784   :  { %1309 = vrot.lane.b32.xlu1 %v3675_v17, %s3295_s0 }
 0x785   :  { %1311 = vrot.lane.b32.xlu0 %v3678_v18, %s3295_s0 }
 0x788   :  { %1340 = vrot.lane.b32.xlu1 %v3665_v12, %s3296_s3 }
 0x789   :  { %1342 = vrot.lane.b32.xlu0 %v3668_v61, %s3296_s3 }
 0x78c   :  { %1344 = vrot.lane.b32.xlu1 %v3675_v17, %s3296_s3 }
 0x78d   :  { %1346 = vrot.lane.b32.xlu0 %v3678_v18, %s3296_s3 }
 0x790   :  { %1373 = vrot.lane.b32.xlu1 %v3665_v12, %s3297_s19 }
 0x791   :  { %1375 = vrot.lane.b32.xlu0 %v3668_v61, %s3297_s19 }
 0x794   :  { %1377 = vrot.lane.b32.xlu1 %v3675_v17, %s3297_s19 }
 0x795   :  { %1379 = vrot.lane.b32.xlu0 %v3678_v18, %s3297_s19 }
 0x798   :  { %1406 = vrot.lane.b32.xlu1 %v3665_v12, %s3290_s18 }
 0x799   :  { %1408 = vrot.lane.b32.xlu0 %v3668_v61, %s3290_s18 }
 0x79c   :  { %1410 = vrot.lane.b32.xlu1 %v3675_v17, %s3290_s18 }
 0x79d   :  { %1412 = vrot.lane.b32.xlu0 %v3678_v18, %s3290_s18 }
 0x7a0   :  { %1439 = vrot.lane.b32.xlu1 %v3665_v12, %s3291_s5 }
 0x7a1   :  { %1441 = vrot.lane.b32.xlu0 %v3668_v61, %s3291_s5 }
 0x7a4   :  { %1443 = vrot.lane.b32.xlu1 %v3675_v17, %s3291_s5 }
 0x7a5   :  { %1445 = vrot.lane.b32.xlu0 %v3678_v18, %s3291_s5 }
 0x7a8   :  { %1472 = vrot.lane.b32.xlu1 %v3665_v12, %s3298_s7 }
 0x7a9   :  { %1474 = vrot.lane.b32.xlu0 %v3668_v61, %s3298_s7 }
 0x7ac   :  { %1476 = vrot.lane.b32.xlu1 %v3675_v17, %s3298_s7 }
 0x7ad   :  { %1478 = vrot.lane.b32.xlu0 %v3678_v18, %s3298_s7 }
 0x7b0   :  { %1505 = vrot.lane.b32.xlu1 %v3665_v12, %s3299_s16 }
 0x7b1   :  { %1507 = vrot.lane.b32.xlu0 %v3668_v61, %s3299_s16 }
 0x7b4   :  { %1509 = vrot.lane.b32.xlu1 %v3675_v17, %s3299_s16 }
 0x7b5   :  { %1511 = vrot.lane.b32.xlu0 %v3678_v18, %s3299_s16 }
 0x7b8   :  { %1538 = vrot.lane.b32.xlu1 %v3665_v12, %s3300_s15 }
 0x7b9   :  { %1540 = vrot.lane.b32.xlu0 %v3668_v61, %s3300_s15 }
 0x7bc   :  { %1542 = vrot.lane.b32.xlu1 %v3675_v17, %s3300_s15 }
 0x7bd   :  { %1544 = vrot.lane.b32.xlu0 %v3678_v18, %s3300_s15 }
 0x7f2   :  { %v1306_v20 = vpop.permute.xlu1 %1305 }
 0x7f3   :  { %v1308_v13 = vpop.permute.xlu0 %1307 }
 0x7f4   :  { %v1318_v28 = vsel %vm1315_vm5, %v1306_v20, %v1308_v13 }
 0x7f5   :  { %v1337_v38 = vmul.f32 %v3751_v26, %v1318_v28  ;;  %v3851_v28 = vrot.slane %v3756_v27, %v3572_v6 }
 0x7f6   :  { %v1310_v23 = vpop.permute.xlu1 %1309 }
 0x7f7   :  { %v1312_v25 = vpop.permute.xlu0 %1311  ;;  %v1317_v46 = vsel %vm1315_vm5, %v1308_v13, %v1310_v23  ;;  %v3845_v13 = vrot.slane %v3773_v30, %v3572_v6 }
 0x7f8   :  { %v1316_v43 = vsel %vm1315_vm5, %v1310_v23, %v1312_v25  ;;  %v1319_v44 = vsel %vm1315_vm5, %v1312_v25, %v1306_v20  ;;  %v1338_v59 = vmul.f32 %v3801_v42, %v1317_v46 }
 0x7f9   :  { %v1336_v52 = vmul.f32 %v3777_v34, %v1319_v44  ;;  %v1339_v53 = vmul.f32 %v3781_v35, %v1316_v43 }
 0x7fa   :  { %v1341_v29 = vpop.permute.xlu1 %1340 }
 0x7fb   :  { %v1343_v32 = vpop.permute.xlu0 %1342 }
 0x7fc   :  { %v1351_v36 = vsel %vm1348_vm6, %v1341_v29, %v1343_v32 }
 0x7fd   :  { %v1370_v39 = vmul.f32 %v3766_v11, %v1351_v36 }
 0x7fe   :  { %v1345_v45 = vpop.permute.xlu1 %1344 }
 0x7ff   :  { %v1350_v47 = vsel %vm1348_vm6, %v1343_v32, %v1345_v45  ;;  %v1347_v48 = vpop.permute.xlu0 %1346  ;;  %v2954_v58 = vpack.c.bf16 %v1370_v39, %v1337_v38  ;;  %v3859_v32 = vrot.slane %v3773_v30, %v3565_v62 }
 0x800   :  { %v1371_v49 = vmul.f32 %v3787_v37, %v1350_v47  ;;  %v1349_v54 = vsel %vm1348_vm6, %v1345_v45, %v1347_v48  ;;  %v1352_v50 = vsel %vm1348_vm6, %v1347_v48, %v1341_v29  ;;  %v3855_v29 = vrot.slane %v3761_v51, %v3572_v6 }
 0x801   :  { %v1369_v55 = vmul.f32 %v3793_v40, %v1352_v50  ;;  %v1372_v56 = vmul.f32 %v3797_v41, %v1349_v54  ;;  %2955 = vmatprep.subr.bf16.mxu0 %v2954_v58 }
 0x802   :  { %v1374_v60 = vpop.permute.xlu1 %1373  ;;  %v2978_v21 = vpack.c.bf16 %v1371_v49, %v1338_v59 }
 0x803   :  { %v2956_v63 = vpack.c.bf16 %v1369_v55, %v1336_v52  ;;  %v1376_v0 = vpop.permute.xlu0 %1375  ;;  %v2976_v1 = vpack.c.bf16 %v1372_v56, %v1339_v53  ;;  %v3882_v55 = vrot.slane %v3756_v27, %v3583_v19 }
 0x804   :  { %v1384_v10 = vsel %vm1381_vm7, %v1374_v60, %v1376_v0 }
 0x805   :  { %2957 = vmatpush1.bf16.msra.mxu0 %v2956_v63  ;;  %2977 = vmatprep.subr.bf16.mxu1 %v2976_v1  ;;  %v1403_v23 = vmul.f32 %v3824_v8, %v1384_v10  ;;  %v3892_v1 = vrot.slane %v3773_v30, %v3583_v19 }
 0x806   :  { %v1378_v3 = vpop.permute.xlu1 %1377  ;;  %2979 = vmatpush1.bf16.msra.mxu1 %v2978_v21  ;;  %v3896_v21 = vrot.slane %v3761_v51, %v3583_v19 }
 0x807   :  { %v1380_v7 = vpop.permute.xlu0 %1379  ;;  %v1383_v43 = vsel %vm1381_vm7, %v1376_v0, %v1378_v3  ;;  %v3888_v0 = vrot.slane %v3746_v22, %v3583_v19 }
 0x808   :  { %v1382_v36 = vsel %vm1381_vm7, %v1378_v3, %v1380_v7  ;;  %v1385_v38 = vsel %vm1381_vm7, %v1380_v7, %v1374_v60  ;;  %v1404_v50 = vmul.f32 %v3859_v32, %v1383_v43 }
 0x809   :  { %v1402_v48 = vmul.f32 %v3835_v16, %v1385_v38  ;;  %v1405_v58 = vmul.f32 %v3839_v57, %v1382_v36 }
 0x80a   :  { %v1407_v14 = vpop.permute.xlu1 %1406 }
 0x80b   :  { %v1409_v15 = vpop.permute.xlu0 %1408 }
 0x80c   :  { %v1417_v20 = vsel %vm1414_vm8, %v1407_v14, %v1409_v15 }
 0x80d   :  { %v1436_v25 = vmul.f32 %v3829_v9, %v1417_v20 }
 0x80e   :  { %v1411_v39 = vpop.permute.xlu1 %1410 }
 0x80f   :  { %v1416_v44 = vsel %vm1414_vm8, %v1409_v15, %v1411_v39  ;;  %v1413_v45 = vpop.permute.xlu0 %1412  ;;  %v2958_v6 = vpack.c.bf16 %v1436_v25, %v1403_v23 }
 0x810   :  { %v1437_v46 = vmul.f32 %v3845_v13, %v1416_v44  ;;  %v1415_v62 = vsel %vm1414_vm8, %v1411_v39, %v1413_v45  ;;  %v1418_v47 = vsel %vm1414_vm8, %v1413_v45, %v1407_v14 }
 0x811   :  { %v1435_v49 = vmul.f32 %v3851_v28, %v1418_v47  ;;  %v1438_v54 = vmul.f32 %v3855_v29, %v1415_v62  ;;  %2959 = vmatprep.subr.bf16.mxu0 %v2958_v6 }
 0x812   :  { %v1440_v52 = vpop.permute.xlu1 %1439  ;;  %v2982_v60 = vpack.c.bf16 %v1437_v46, %v1404_v50  ;;  %v3946_v50 = vrot.slane %v3773_v30, %v3600_v31 }
 0x813   :  { %v2960_v53 = vpack.c.bf16 %v1435_v49, %v1402_v48  ;;  %v1442_v56 = vpop.permute.xlu0 %1441  ;;  %v2980_v59 = vpack.c.bf16 %v1438_v54, %v1405_v58  ;;  %v3930_v48 = vrot.slane %v3773_v30, %v3590_v24  ;;  %v3936_v49 = vrot.slane %v3746_v22, %v3600_v31 }
 0x814   :  { %v1450_v63 = vsel %vm1447_vm9, %v1440_v52, %v1442_v56 }
 0x815   :  { %2961 = vmatpush1.bf16.msra.mxu0 %v2960_v53  ;;  %2981 = vmatprep.subr.bf16.mxu1 %v2980_v59  ;;  %v1468_v7 = vmul.f32 %v3882_v55, %v1450_v63 }
 0x816   :  { %v1444_v3 = vpop.permute.xlu1 %1443  ;;  %2983 = vmatpush1.bf16.msra.mxu1 %v2982_v60 }
 0x817   :  { %v1449_v10 = vsel %vm1447_vm9, %v1442_v56, %v1444_v3  ;;  %v1446_v14 = vpop.permute.xlu0 %1445  ;;  %v2964_v39 = vpack.c.bf16 %v1468_v7, %v3665_v12  ;;  %v3920_v12 = vrot.slane %v3746_v22, %v3590_v24 }
 0x818   :  { %v1469_v15 = vmul.f32 %v3888_v0, %v1449_v10  ;;  %v1448_v20 = vsel %vm1447_vm9, %v1444_v3, %v1446_v14  ;;  %v1451_v23 = vsel %vm1447_vm9, %v1446_v14, %v1440_v52  ;;  %v3950_v52 = vrot.slane %v3761_v51, %v3600_v31 }
 0x819   :  { %v1470_v25 = vmul.f32 %v3892_v1, %v1448_v20  ;;  %v1471_v19 = vmul.f32 %v3896_v21, %v1451_v23 }
 0x81a   :  { %v1473_v36 = vpop.permute.xlu1 %1472  ;;  %v2962_v38 = vpack.c.bf16 %v1469_v15, %v3668_v61  ;;  %v3916_v61 = vrot.slane %v3756_v27, %v3590_v24 }
 0x81b   :  { %v2986_v43 = vpack.c.bf16 %v1470_v25, %v3675_v17  ;;  %v1475_v44 = vpop.permute.xlu0 %1474  ;;  %v2984_v45 = vpack.c.bf16 %v1471_v19, %v3678_v18  ;;  %v3924_v17 = vrot.slane %v3756_v27, %v3600_v31  ;;  %v3942_v27 = vrot.slane %v3761_v51, %v3590_v24 }
 0x81c   :  { %2963 = vmatprep.subr.bf16.mxu0 %v2962_v38  ;;  %v1483_v47 = vsel %vm1480_vm10, %v1473_v36, %v1475_v44 }
 0x81d   :  { %2965 = vmatpush1.bf16.msra.mxu0 %v2964_v39  ;;  %2985 = vmatprep.subr.bf16.mxu1 %v2984_v45  ;;  %v1501_v59 = vmul.f32 %v3916_v61, %v1483_v47  ;;  %v3974_v39 = vld [vmem:[%s4442_s13 + $0x20] ss:$0 sm:$0xff] }
 0x81e   :  { %v1477_v6 = vpop.permute.xlu1 %1476  ;;  %2987 = vmatpush1.bf16.msra.mxu1 %v2986_v43 }
 0x81f   :  { %v1479_v46 = vpop.permute.xlu0 %1478  ;;  %v1482_v54 = vsel %vm1480_vm10, %v1475_v44, %v1477_v6  ;;  %v3981_v44 = vld [vmem:[%s4442_s13 + $0x28] ss:$0 sm:$0xff] }
 0x820   :  { %v1481_v53 = vsel %vm1480_vm10, %v1477_v6, %v1479_v46  ;;  %v1484_v22 = vsel %vm1480_vm10, %v1479_v46, %v1473_v36  ;;  %v1502_v31 = vmul.f32 %v3920_v12, %v1482_v54  ;;  %v3986_v6 = vld [vmem:[%s4442_s13 + $0x30] ss:$0 sm:$0xff]  ;;  %v3991_v46 = vld [vmem:[%s4442_s13 + $0x38] ss:$0 sm:$0xff]  ;;  %s2488_s13 = sld [smem:[#allocation2 + $0x4]] }
 0x821   :  { %v1503_v7 = vmul.f32 %v3930_v48, %v1481_v53  ;;  %v1504_v10 = vmul.f32 %v3942_v27, %v1484_v22 }
 0x822   :  { %v1506_v62 = vpop.permute.xlu1 %1505 }
 0x823   :  { %v1508_v18 = vpop.permute.xlu0 %1507 }
 0x824   :  { %v1516_v58 = vsel %vm1513_vm12, %v1506_v62, %v1508_v18 }
 0x825   :  { %v1534_v24 = vmul.f32 %v3924_v17, %v1516_v58 }
 0x826   :  { %v1510_v56 = vpop.permute.xlu1 %1509 }
 0x827   :  { %v1515_v60 = vsel %vm1513_vm12, %v1508_v18, %v1510_v56  ;;  %v1512_v30 = vpop.permute.xlu0 %1511  ;;  %v2968_v25 = vpack.c.bf16 %v1534_v24, %v1501_v59 }
 0x828   :  { %v1535_v51 = vmul.f32 %v3936_v49, %v1515_v60  ;;  %v1514_v63 = vsel %vm1513_vm12, %v1510_v56, %v1512_v30  ;;  %v1517_v3 = vsel %vm1513_vm12, %v1512_v30, %v1506_v62 }
 0x829   :  { %v1536_v14 = vmul.f32 %v3946_v50, %v1514_v63  ;;  %v1537_v15 = vmul.f32 %v3950_v52, %v1517_v3 }
 0x82a   :  { %v1539_v20 = vpop.permute.xlu1 %1538  ;;  %v2966_v23 = vpack.c.bf16 %v1535_v51, %v1502_v31  ;;  %v1571_v31 = vld [vmem:[#allocation12] sm:$0xf] }
 0x82b   :  { %v2990_v19 = vpack.c.bf16 %v1536_v14, %v1503_v7  ;;  %v1541_v36 = vpop.permute.xlu0 %1540  ;;  %v2988_v38 = vpack.c.bf16 %v1537_v15, %v1504_v10 }
 0x82c   :  { %v1549_v43 = vsel %vm1546_vm13, %v1539_v20, %v1541_v36  ;;  %2967 = vmatprep.subr.bf16.mxu0 %v2966_v23 }
 0x82d   :  { %2969 = vmatpush1.bf16.msra.mxu0 %v2968_v25  ;;  %2989 = vmatprep.subr.bf16.mxu1 %v2988_v38  ;;  %v1567_v62 = vmul.f32 %v3974_v39, %v1549_v43 }
 0x82e   :  { %v1543_v45 = vpop.permute.xlu1 %1542  ;;  %2991 = vmatpush1.bf16.msra.mxu1 %v2990_v19 }
 0x82f   :  { %v1548_v18 = vsel %vm1546_vm13, %v1541_v36, %v1543_v45  ;;  %v1545_v47 = vpop.permute.xlu0 %1544  ;;  %v2973_v24 = vpack.c.bf16 %v3281_v2, %v1567_v62 }
 0x830   :  { %v1568_v58 = vmul.f32 %v3981_v44, %v1548_v18  ;;  %v1547_v54 = vsel %vm1546_vm13, %v1543_v45, %v1545_v47  ;;  %v1550_v53 = vsel %vm1546_vm13, %v1545_v47, %v1539_v20 }
 0x831   :  { %v1569_v22 = vmul.f32 %v3986_v6, %v1547_v54  ;;  %v1570_v56 = vmul.f32 %v3991_v46, %v1550_v53 }
 0x832   :  { %v2970_v59 = vpack.c.bf16 %v3281_v2, %v1568_v58 }
 0x833   :  { %v2992_v60 = vpack.c.bf16 %v3281_v2, %v1570_v56  ;;  %v2995_v30 = vpack.c.bf16 %v3281_v2, %v1569_v22  ;;  %v1721_v2 = vstv %s2488_s13 }
 0x834   :  { %2972 = vmatprep.subr.msk.bf16.mxu0 %vm3479_vm3, %v2970_v59 }
 0x835   :  { %2975 = vmatpush1.bf16.msk.msra.mxu0 %vm3479_vm3, %v2973_v24  ;;  %2994 = vmatprep.subr.msk.bf16.mxu1 %vm3479_vm3, %v2992_v60 }
 0x836   :  { %2997 = vmatpush1.bf16.msk.msra.mxu1 %vm3479_vm3, %v2995_v30 }
 0x838   :  { %2499 = vmatmul.mubr.msk.f32.vlgmr.msra.gmra.mrb[10].mxu0 %vm555_vm11, %v1571_v31 }
 0x839   :  { %2502 = vmatmul.mubr.msk.f32.vlgmr.msra.gmra.mrb[6].mxu1 %vm555_vm11, %v1571_v31  ;;  %2007 = vmatprep.mubr.f32.mxu0 %v4448_v33 }
 0x83a   :  { %2078 = vmatprep.mubr.f32.mxu1 %v4448_v33 }
 0x90b   :  { %v1641_v51 = vpop.f32.mrb[10].mxu0 }
 0x90c   :  { %vm1717_vm0 = vcmp.ge.f32.partialorder %v1641_v51, 0.0  ;;  %v1722_v63 = vmul.f32 %v1721_v2, %v1641_v51  ;;  %v1643_v3 = vpop.f32.mrb[11].mxu0  ;;  %v1712_v7 = vpop.f32.mrb[6].mxu1 }
 0x90d   :  { %vm1718_vm1 = vcmp.ge.f32.partialorder %v1643_v3, 0.0  ;;  %v1723_v10 = vmul.f32 %v1721_v2, %v1643_v3  ;;  %v1714_v14 = vpop.f32.mrb[7].mxu1  ;;  %v1724_v15 = vmul.f32 %v1721_v2, %v1712_v7  ;;  %vm1719_vm3 = vcmp.ge.f32.partialorder %v1712_v7, 0.0 }
 0x90e   :  { %v4019_v4 = vsel %vm1717_vm0, %v1641_v51, %v1722_v63  ;;  %v1725_v23 = vmul.f32 %v1721_v2, %v1714_v14  ;;  %vm1720_vm11 = vcmp.ge.f32.partialorder %v1714_v14, 0.0 }
 0x90f   :  { %v4021_v20 = vsel %vm1718_vm1, %v1643_v3, %v1723_v10  ;;  %1746 = vrot.lane.b32.xlu1 %v4019_v4, %s3296_s3  ;;  %v4027_v25 = vsel %vm1719_vm3, %v1712_v7, %v1724_v15 }
 0x910   :  { %1748 = vrot.lane.b32.xlu0 %v4021_v20, %s3296_s3  ;;  %v4029_v19 = vsel %vm1720_vm11, %v1714_v14, %v1725_v23 }
 0x913   :  { %1750 = vrot.lane.b32.xlu1 %v4027_v25, %s3296_s3 }
 0x914   :  { %1752 = vrot.lane.b32.xlu0 %v4029_v19, %s3296_s3 }
 0x917   :  { %1778 = vrot.lane.b32.xlu1 %v4019_v4, %s3290_s18 }
 0x918   :  { %1780 = vrot.lane.b32.xlu0 %v4021_v20, %s3290_s18 }
 0x91b   :  { %1782 = vrot.lane.b32.xlu1 %v4027_v25, %s3290_s18 }
 0x91c   :  { %1784 = vrot.lane.b32.xlu0 %v4029_v19, %s3290_s18 }
 0x91f   :  { %1730 = vrot.lane.b32.xlu1 %v4019_v4, %s3295_s0 }
 0x920   :  { %1732 = vrot.lane.b32.xlu0 %v4021_v20, %s3295_s0 }
 0x923   :  { %1734 = vrot.lane.b32.xlu1 %v4027_v25, %s3295_s0 }
 0x924   :  { %1736 = vrot.lane.b32.xlu0 %v4029_v19, %s3295_s0 }
 0x927   :  { %1762 = vrot.lane.b32.xlu1 %v4019_v4, %s3297_s19 }
 0x928   :  { %1764 = vrot.lane.b32.xlu0 %v4021_v20, %s3297_s19 }
 0x92b   :  { %1766 = vrot.lane.b32.xlu1 %v4027_v25, %s3297_s19 }
 0x92c   :  { %1768 = vrot.lane.b32.xlu0 %v4029_v19, %s3297_s19 }
 0x92f   :  { %1794 = vrot.lane.b32.xlu1 %v4019_v4, %s3291_s5 }
 0x930   :  { %1796 = vrot.lane.b32.xlu0 %v4021_v20, %s3291_s5 }
 0x933   :  { %1798 = vrot.lane.b32.xlu1 %v4027_v25, %s3291_s5 }
 0x934   :  { %1800 = vrot.lane.b32.xlu0 %v4029_v19, %s3291_s5 }
 0x937   :  { %1826 = vrot.lane.b32.xlu1 %v4019_v4, %s3299_s16 }
 0x938   :  { %1828 = vrot.lane.b32.xlu0 %v4021_v20, %s3299_s16 }
 0x93b   :  { %1830 = vrot.lane.b32.xlu1 %v4027_v25, %s3299_s16 }
 0x93c   :  { %1832 = vrot.lane.b32.xlu0 %v4029_v19, %s3299_s16 }
 0x93f   :  { %1810 = vrot.lane.b32.xlu1 %v4019_v4, %s3298_s7 }
 0x940   :  { %1812 = vrot.lane.b32.xlu0 %v4021_v20, %s3298_s7 }
 0x943   :  { %1814 = vrot.lane.b32.xlu1 %v4027_v25, %s3298_s7 }
 0x944   :  { %1816 = vrot.lane.b32.xlu0 %v4029_v19, %s3298_s7 }
 0x947   :  { %1842 = vrot.lane.b32.xlu1 %v4019_v4, %s3300_s15 }
 0x948   :  { %1844 = vrot.lane.b32.xlu0 %v4021_v20, %s3300_s15 }
 0x94b   :  { %1846 = vrot.lane.b32.xlu1 %v4027_v25, %s3300_s15 }
 0x94c   :  { %1848 = vrot.lane.b32.xlu0 %v4029_v19, %s3300_s15 }
 0x981   :  { %v1747_v36 = vpop.permute.xlu1 %1746 }
 0x982   :  { %v1749_v38 = vpop.permute.xlu0 %1748 }
 0x983   :  { %v1756_v22 = vsel %vm1348_vm6, %v1747_v36, %v1749_v38 }
 0x984   :  { %v1759_v30 = vmul.f32 %v1756_v22, %v3766_v11 }
 0x985   :  { %v1751_v43 = vpop.permute.xlu1 %1750 }
 0x986   :  { %v1753_v45 = vpop.permute.xlu0 %1752  ;;  %v1755_v63 = vsel %vm1348_vm6, %v1749_v38, %v1751_v43 }
 0x987   :  { %v1757_v56 = vsel %vm1348_vm6, %v1753_v45, %v1747_v36  ;;  %v1754_v59 = vsel %vm1348_vm6, %v1751_v43, %v1753_v45  ;;  %v1760_v38 = vmul.f32 %v1755_v63, %v3787_v37 }
 0x988   :  { %v1758_v3 = vmul.f32 %v1757_v56, %v3793_v40  ;;  %v1761_v7 = vmul.f32 %v1754_v59, %v3797_v41 }
 0x989   :  { %v1779_v62 = vpop.permute.xlu1 %1778 }
 0x98a   :  { %v1781_v18 = vpop.permute.xlu0 %1780  ;;  %v1862_v56 = vrot.slane %v1758_v3, 4 }
 0x98b   :  { %v1788_v24 = vsel %vm1414_vm8, %v1779_v62, %v1781_v18 }
 0x98c   :  { %v1791_v10 = vmul.f32 %v1788_v24, %v3829_v9 }
 0x98d   :  { %v1783_v47 = vpop.permute.xlu1 %1782 }
 0x98e   :  { %v1785_v58 = vpop.permute.xlu0 %1784  ;;  %v1787_v31 = vsel %vm1414_vm8, %v1781_v18, %v1783_v47  ;;  %v1863_v18 = vrot.slane %v1759_v30, 4 }
 0x98f   :  { %v1792_v14 = vmul.f32 %v1787_v31, %v3845_v13  ;;  %v1786_v15 = vsel %vm1414_vm8, %v1783_v47, %v1785_v58  ;;  %v1789_v23 = vsel %vm1414_vm8, %v1785_v58, %v1779_v62  ;;  %v1875_v58 = vrot.slane %v1791_v10, 4 }
 0x990   :  { %v1790_v24 = vmul.f32 %v1789_v23, %v3851_v28  ;;  %v1793_v30 = vmul.f32 %v1786_v15, %v3855_v29 }
 0x991   :  { %v1731_v54 = vpop.permute.xlu1 %1730 }
 0x992   :  { %v1733_v53 = vpop.permute.xlu0 %1732 }
 0x993   :  { %v1740_v2 = vsel %vm1315_vm5, %v1731_v54, %v1733_v53 }
 0x994   :  { %v1743_v36 = vmul.f32 %v1740_v2, %v3751_v26  ;;  %v1865_v2 = vrot.slane %v1761_v7, 4 }
 0x995   :  { %v1735_v60 = vpop.permute.xlu1 %1734 }
 0x996   :  { %v1737_v51 = vpop.permute.xlu0 %1736  ;;  %v1739_v43 = vsel %vm1315_vm5, %v1733_v53, %v1735_v60  ;;  %v1876_v53 = vrot.slane %v1792_v14, 4 }
 0x997   :  { %v1738_v59 = vsel %vm1315_vm5, %v1735_v60, %v1737_v51  ;;  %v1741_v47 = vsel %vm1315_vm5, %v1737_v51, %v1731_v54  ;;  %v1744_v63 = vmul.f32 %v1739_v43, %v3801_v42  ;;  %v1907_v60 = vsel %vm636_vm14, %v1743_v36, %v1863_v18 }
 0x998   :  { %v1742_v33 = vmul.f32 %v1741_v47, %v3777_v34  ;;  %v1745_v54 = vmul.f32 %v1738_v59, %v3781_v35  ;;  %v1874_v36 = vrot.slane %v1790_v24, 4  ;;  %v1877_v18 = vrot.slane %v1793_v30, 4 }
 0x999   :  { %v1763_v45 = vpop.permute.xlu1 %1762 }
 0x99a   :  { %v1765_v22 = vpop.permute.xlu0 %1764 }
 0x99b   :  { %v1772_v62 = vsel %vm1381_vm7, %v1763_v45, %v1765_v22 }
 0x99c   :  { %v1775_v31 = vmul.f32 %v1772_v62, %v3824_v8  ;;  %v1864_v62 = vrot.slane %v1760_v38, 4 }
 0x99d   :  { %v1767_v3 = vpop.permute.xlu1 %1766 }
 0x99e   :  { %v1771_v51 = vsel %vm1381_vm7, %v1765_v22, %v1767_v3  ;;  %v1769_v10 = vpop.permute.xlu0 %1768  ;;  %v1911_v23 = vsel %vm636_vm14, %v1775_v31, %v1875_v58  ;;  %v1906_v58 = vsel %vm636_vm14, %v1742_v33, %v1862_v56  ;;  %v1908_v24 = vsel %vm636_vm14, %v1744_v63, %v1864_v62 }
 0x99f   :  { %v1776_v15 = vmul.f32 %v1771_v51, %v3859_v32  ;;  %v1770_v7 = vsel %vm1381_vm7, %v1767_v3, %v1769_v10  ;;  %v1773_v14 = vsel %vm1381_vm7, %v1769_v10, %v1763_v45  ;;  %v2998_v43 = vpack.c.bf16 %v1911_v23, %v1907_v60 }
 0x9a0   :  { %v1774_v47 = vmul.f32 %v1773_v14, %v3835_v16  ;;  %v1777_v59 = vmul.f32 %v1770_v7, %v3839_v57  ;;  %v1909_v51 = vsel %vm636_vm14, %v1745_v54, %v1865_v2 }
 0x9a1   :  { %v1912_v22 = vsel %vm636_vm14, %v1776_v15, %v1876_v53  ;;  %v1795_v35 = vpop.permute.xlu1 %1794  ;;  %2999 = vmatprep.subr.bf16.mxu0 %v2998_v43 }
 0x9a2   :  { %v1910_v31 = vsel %vm636_vm14, %v1774_v47, %v1874_v36  ;;  %v1797_v3 = vpop.permute.xlu0 %1796  ;;  %v1913_v45 = vsel %vm636_vm14, %v1777_v59, %v1877_v18  ;;  %v3008_v10 = vpack.c.bf16 %v1912_v22, %v1908_v24 }
 0x9a3   :  { %v3000_v30 = vpack.c.bf16 %v1910_v31, %v1906_v58  ;;  %v3006_v60 = vpack.c.bf16 %v1913_v45, %v1909_v51  ;;  %v1804_v56 = vsel %vm1447_vm9, %v1795_v35, %v1797_v3 }
 0x9a4   :  { %v1806_v18 = vmul.f32 %v1804_v56, %v3882_v55 }
 0x9a5   :  { %v1799_v23 = vpop.permute.xlu1 %1798  ;;  %3001 = vmatpush1.bf16.msra.mxu0 %v3000_v30  ;;  %3007 = vmatprep.subr.bf16.mxu1 %v3006_v60 }
 0x9a6   :  { %3009 = vmatpush1.bf16.msra.mxu1 %v3008_v10  ;;  %v1801_v38 = vpop.permute.xlu0 %1800  ;;  %v1803_v2 = vsel %vm1447_vm9, %v1797_v3, %v1799_v23  ;;  %v1886_v60 = vrot.slane %v1806_v18, 4 }
 0x9a7   :  { %v1802_v63 = vsel %vm1447_vm9, %v1799_v23, %v1801_v38  ;;  %v1805_v7 = vsel %vm1447_vm9, %v1801_v38, %v1795_v35  ;;  %v1807_v47 = vmul.f32 %v1803_v2, %v3888_v0 }
 0x9a8   :  { %v1808_v59 = vmul.f32 %v1802_v63, %v3892_v1  ;;  %v1809_v35 = vmul.f32 %v1805_v7, %v3896_v21 }
 0x9a9   :  { %v1827_v53 = vpop.permute.xlu1 %1826  ;;  %v1887_v10 = vrot.slane %v1807_v47, 4 }
 0x9aa   :  { %v1829_v15 = vpop.permute.xlu0 %1828  ;;  %v1888_v23 = vrot.slane %v1808_v59, 4  ;;  %v1914_v59 = vsel %vm636_vm14, %v4019_v4, %v1886_v60 }
 0x9ab   :  { %v1836_v14 = vsel %vm1513_vm12, %v1827_v53, %v1829_v15 }
 0x9ac   :  { %v1838_v58 = vmul.f32 %v1836_v14, %v3924_v17 }
 0x9ad   :  { %v1831_v33 = vpop.permute.xlu1 %1830 }
 0x9ae   :  { %v1833_v54 = vpop.permute.xlu0 %1832  ;;  %v1835_v43 = vsel %vm1513_vm12, %v1829_v15, %v1831_v33  ;;  %v1898_v15 = vrot.slane %v1838_v58, 4  ;;  %v1915_v58 = vsel %vm636_vm14, %v4021_v20, %v1887_v10 }
 0x9af   :  { %v1834_v36 = vsel %vm1513_vm12, %v1831_v33, %v1833_v54  ;;  %v1837_v62 = vsel %vm1513_vm12, %v1833_v54, %v1827_v53  ;;  %v1839_v31 = vmul.f32 %v1835_v43, %v3936_v49  ;;  %v1889_v53 = vrot.slane %v1809_v35, 4 }
 0x9b0   :  { %v1840_v51 = vmul.f32 %v1834_v36, %v3946_v50  ;;  %v1841_v24 = vmul.f32 %v1837_v62, %v3950_v52  ;;  %v1916_v62 = vsel %vm636_vm14, %v4027_v25, %v1888_v23 }
 0x9b1   :  { %v1811_v22 = vpop.permute.xlu1 %1810  ;;  %v1899_v33 = vrot.slane %v1839_v31, 4 }
 0x9b2   :  { %v1813_v3 = vpop.permute.xlu0 %1812  ;;  %v1900_v63 = vrot.slane %v1840_v51, 4  ;;  %v1901_v43 = vrot.slane %v1841_v24, 4 }
 0x9b3   :  { %v1820_v45 = vsel %vm1480_vm10, %v1811_v22, %v1813_v3 }
 0x9b4   :  { %v1822_v30 = vmul.f32 %v1820_v45, %v3916_v61  ;;  %v1917_v45 = vsel %vm636_vm14, %v4029_v19, %v1889_v53 }
 0x9b5   :  { %v1815_v38 = vpop.permute.xlu1 %1814 }
 0x9b6   :  { %v1819_v56 = vsel %vm1480_vm10, %v1813_v3, %v1815_v38  ;;  %v1817_v2 = vpop.permute.xlu0 %1816  ;;  %v1918_v36 = vsel %vm636_vm14, %v1822_v30, %v1898_v15 }
 0x9b7   :  { %v1823_v54 = vmul.f32 %v1819_v56, %v3920_v12  ;;  %v1818_v7 = vsel %vm1480_vm10, %v1815_v38, %v1817_v2  ;;  %v1821_v14 = vsel %vm1480_vm10, %v1817_v2, %v1811_v22  ;;  %v3004_v30 = vpack.c.bf16 %v1918_v36, %v1914_v59 }
 0x9b8   :  { %v1824_v18 = vmul.f32 %v1818_v7, %v3930_v48  ;;  %v1825_v47 = vmul.f32 %v1821_v14, %v3942_v27  ;;  %v2089_v36 = vstv %s2489_s22 }
 0x9b9   :  { %v1843_v35 = vpop.permute.xlu1 %1842  ;;  %v1919_v31 = vsel %vm636_vm14, %v1823_v54, %v1899_v33 }
 0x9ba   :  { %v1920_v22 = vsel %vm636_vm14, %v1824_v18, %v1900_v63  ;;  %v1845_v3 = vpop.permute.xlu0 %1844  ;;  %v3002_v51 = vpack.c.bf16 %v1919_v31, %v1915_v58  ;;  %v1921_v24 = vsel %vm636_vm14, %v1825_v47, %v1901_v43  ;;  %v1926_v63 = vld [vmem:[#allocation13] sm:$0xf]  ;;  %v4456_v43 = vmov 0.0  }
 0x9bb   :  { %v1852_v4 = vsel %vm1546_vm13, %v1843_v35, %v1845_v3  ;;  %v3010_v25 = vpack.c.bf16 %v1921_v24, %v1917_v45  ;;  %v3012_v60 = vpack.c.bf16 %v1920_v22, %v1916_v62 }
 0x9bc   :  { %3003 = vmatprep.subr.bf16.mxu0 %v3002_v51  ;;  %v1854_v20 = vmul.f32 %v3974_v39, %v1852_v4 }
 0x9bd   :  { %v1847_v23 = vpop.permute.xlu1 %1846  ;;  %3005 = vmatpush1.bf16.msra.mxu0 %v3004_v30  ;;  %3011 = vmatprep.subr.bf16.mxu1 %v3010_v25 }
 0x9be   :  { %v1851_v10 = vsel %vm1546_vm13, %v1845_v3, %v1847_v23  ;;  %3013 = vmatpush1.bf16.msra.mxu1 %v3012_v60  ;;  %v1849_v38 = vpop.permute.xlu0 %1848  ;;  %v1922_v54 = vsel %vm636_vm14, %v1854_v20, 1.0 }
 0x9bf   :  { %v1855_v19 = vmul.f32 %v3981_v44, %v1851_v10  ;;  %v1850_v53 = vsel %vm1546_vm13, %v1847_v23, %v1849_v38  ;;  %v1853_v15 = vsel %vm1546_vm13, %v1849_v38, %v1843_v35 }
 0x9c0   :  { %v1856_v33 = vmul.f32 %v3986_v6, %v1850_v53  ;;  %v1857_v56 = vmul.f32 %v3991_v46, %v1853_v15 }
 0x9c1   :  { %v1923_v2 = vsel %vm636_vm14, %v1855_v19, 1.0 }
 0x9c2   :  { %v1924_v7 = vsel %vm636_vm14, %v1856_v33, 1.0  ;;  %2503 = vmatprep.subr.msk.mxu0 %vm647_vm15, %v1923_v2  ;;  %v1925_v14 = vsel %vm636_vm14, %v1857_v56, 1.0 }
 0x9c3   :  { %2504 = vmatpush1.msk.msra.mxu0 %vm647_vm15, %v1922_v54  ;;  %2506 = vmatprep.subr.msk.mxu1 %vm647_vm15, %v1925_v14 }
 0x9c4   :  { %2505 = vmatmul.mubr.msk.f32.vlgmr.msra.gmra.mrb[12].mxu0 %vm1927_vm2, %v1926_v63  ;;  %2507 = vmatpush1.msk.msra.mxu1 %vm647_vm15, %v1924_v7 }
 0x9c5   :  { %2508 = vmatmul.mubr.msk.f32.vlgmr.msra.gmra.mrb[8].mxu1 %vm1927_vm2, %v1926_v63  ;;  %2374 = vmatprep.mubr.f32.mxu0 %v4456_v43 }
 0x9c6   :  { %2445 = vmatprep.mubr.f32.mxu1 %v4456_v43 }
 0xa97   :  { %v2009_v18 = vpop.f32.mrb[12].mxu0 }
 0xa98   :  { %vm2085_vm4 = vcmp.ge.f32.partialorder %v2009_v18, 0.0  ;;  %v2090_v47 = vmul.f32 %v2089_v36, %v2009_v18  ;;  %v2011_v59 = vpop.f32.mrb[13].mxu0  ;;  %v2080_v62 = vpop.f32.mrb[8].mxu1 }
 0xa99   :  { %vm2086_vm0 = vcmp.ge.f32.partialorder %v2011_v59, 0.0  ;;  %v2091_v35 = vmul.f32 %v2089_v36, %v2011_v59  ;;  %v2082_v58 = vpop.f32.mrb[9].mxu1  ;;  %v2092_v22 = vmul.f32 %v2089_v36, %v2080_v62  ;;  %vm2087_vm1 = vcmp.ge.f32.partialorder %v2080_v62, 0.0 }
 0xa9a   :  { %v4219_v31 = vsel %vm2085_vm4, %v2009_v18, %v2090_v47  ;;  %v2093_v51 = vmul.f32 %v2089_v36, %v2082_v58  ;;  %vm2088_vm3 = vcmp.ge.f32.partialorder %v2082_v58, 0.0 }
 0xa9b   :  { %v4221_v3 = vsel %vm2086_vm0, %v2011_v59, %v2091_v35  ;;  %2114 = vrot.lane.b32.xlu1 %v4219_v31, %s3296_s3  ;;  %v4227_v45 = vsel %vm2087_vm1, %v2080_v62, %v2092_v22 }
 0xa9c   :  { %2116 = vrot.lane.b32.xlu0 %v4221_v3, %s3296_s3  ;;  %v4229_v24 = vsel %vm2088_vm3, %v2082_v58, %v2093_v51 }
 0xa9f   :  { %2118 = vrot.lane.b32.xlu1 %v4227_v45, %s3296_s3 }
 0xaa0   :  { %2120 = vrot.lane.b32.xlu0 %v4229_v24, %s3296_s3 }
 0xaa3   :  { %2146 = vrot.lane.b32.xlu1 %v4219_v31, %s3290_s18 }
 0xaa4   :  { %2148 = vrot.lane.b32.xlu0 %v4221_v3, %s3290_s18 }
 0xaa7   :  { %2150 = vrot.lane.b32.xlu1 %v4227_v45, %s3290_s18 }
 0xaa8   :  { %2152 = vrot.lane.b32.xlu0 %v4229_v24, %s3290_s18  ;;  %s3301_s18 = smov [#allocation16]  }
 0xaab   :  { %2098 = vrot.lane.b32.xlu1 %v4219_v31, %s3295_s0 }
 0xaac   :  { %2100 = vrot.lane.b32.xlu0 %v4221_v3, %s3295_s0 }
 0xaaf   :  { %2102 = vrot.lane.b32.xlu1 %v4227_v45, %s3295_s0 }
 0xab0   :  { %2104 = vrot.lane.b32.xlu0 %v4229_v24, %s3295_s0 }
 0xab3   :  { %2130 = vrot.lane.b32.xlu1 %v4219_v31, %s3297_s19 }
 0xab4   :  { %2132 = vrot.lane.b32.xlu0 %v4221_v3, %s3297_s19 }
 0xab7   :  { %2134 = vrot.lane.b32.xlu1 %v4227_v45, %s3297_s19 }
 0xab8   :  { %2136 = vrot.lane.b32.xlu0 %v4229_v24, %s3297_s19 }
 0xabb   :  { %2162 = vrot.lane.b32.xlu1 %v4219_v31, %s3291_s5 }
 0xabc   :  { %2164 = vrot.lane.b32.xlu0 %v4221_v3, %s3291_s5 }
 0xabf   :  { %2166 = vrot.lane.b32.xlu1 %v4227_v45, %s3291_s5 }
 0xac0   :  { %2168 = vrot.lane.b32.xlu0 %v4229_v24, %s3291_s5  ;;  %s2462_s5 = sshll.u32 %s3301_s18, 4  ;;  %s2463_s5 = int_to_ptr.vmem [resolvable:$true] %s2462_s5 }
 0xac1   :  { %s3235_s9 = scalar_lea.vmem %s2463_s5, 512  ;;  %p3240_p6 = scmp.lt.s32.totalorder %s2463_s5, %s2463_s5 }
 0xac2   :  { %p3236_p5 = scmp.ne.s32.totalorder %s2463_s5, %s3235_s9  ;;  %p3241_p7 = scmp.lt.s32.totalorder %s3235_s9, %s3235_s9 }
 0xac3   :  { %2194 = vrot.lane.b32.xlu1 %v4219_v31, %s3299_s16 }
 0xac4   :  { %2196 = vrot.lane.b32.xlu0 %v4221_v3, %s3299_s16  ;;  %p3242_p8 = por %p3241_p7, %p3240_p6 }
 0xac6   :  { %p3243_p9 = pnand %p3242_p8, %p3236_p5 }
 0xac7   :  { %2198 = vrot.lane.b32.xlu1 %v4227_v45, %s3299_s16 }
 0xac8   :  { %2200 = vrot.lane.b32.xlu0 %v4229_v24, %s3299_s16 }
 0xacb   :  { %2178 = vrot.lane.b32.xlu1 %v4219_v31, %s3298_s7 }
 0xacc   :  { %2180 = vrot.lane.b32.xlu0 %v4221_v3, %s3298_s7 }
 0xacf   :  { %2182 = vrot.lane.b32.xlu1 %v4227_v45, %s3298_s7 }
 0xad0   :  { %2184 = vrot.lane.b32.xlu0 %v4229_v24, %s3298_s7 }
 0xad3   :  { %2210 = vrot.lane.b32.xlu1 %v4219_v31, %s3300_s15 }
 0xad4   :  { %2212 = vrot.lane.b32.xlu0 %v4221_v3, %s3300_s15 }
 0xad7   :  { %2214 = vrot.lane.b32.xlu1 %v4227_v45, %s3300_s15 }
 0xad8   :  { %2216 = vrot.lane.b32.xlu0 %v4229_v24, %s3300_s15 }
 0xb0d   :  { %v2115_v4 = vpop.permute.xlu1 %2114 }
 0xb0e   :  { %v2117_v30 = vpop.permute.xlu0 %2116 }
 0xb0f   :  { %v2124_v15 = vsel %vm1348_vm6, %v2115_v4, %v2117_v30 }
 0xb10   :  { %v2127_v54 = vmul.f32 %v2124_v15, %v3766_v11 }
 0xb11   :  { %v2119_v25 = vpop.permute.xlu1 %2118 }
 0xb12   :  { %v2121_v60 = vpop.permute.xlu0 %2120  ;;  %v2123_v36 = vsel %vm1348_vm6, %v2117_v30, %v2119_v25  ;;  %v2231_v51 = vrot.slane %v2127_v54, 4 }
 0xb13   :  { %v2125_v33 = vsel %vm1348_vm6, %v2121_v60, %v2115_v4  ;;  %v2122_v56 = vsel %vm1348_vm6, %v2119_v25, %v2121_v60  ;;  %v2128_v4 = vmul.f32 %v2123_v36, %v3787_v37 }
 0xb14   :  { %v2126_v18 = vmul.f32 %v2125_v33, %v3793_v40  ;;  %v2129_v47 = vmul.f32 %v2122_v56, %v3797_v41 }
 0xb15   :  { %v2147_v23 = vpop.permute.xlu1 %2146  ;;  %v2232_v36 = vrot.slane %v2128_v4, 4 }
 0xb16   :  { %v2149_v20 = vpop.permute.xlu0 %2148  ;;  %v2230_v30 = vrot.slane %v2126_v18, 4 }
 0xb17   :  { %v2156_v2 = vsel %vm1414_vm8, %v2147_v23, %v2149_v20 }
 0xb18   :  { %v2159_v59 = vmul.f32 %v2156_v2, %v3829_v9 }
 0xb19   :  { %v2151_v10 = vpop.permute.xlu1 %2150 }
 0xb1a   :  { %v2153_v38 = vpop.permute.xlu0 %2152  ;;  %v2155_v7 = vsel %vm1414_vm8, %v2149_v20, %v2151_v10  ;;  %v2243_v60 = vrot.slane %v2159_v59, 4  ;;  %v2233_v20 = vrot.slane %v2129_v47, 4 }
 0xb1b   :  { %v2160_v62 = vmul.f32 %v2155_v7, %v3845_v13  ;;  %v2154_v11 = vsel %vm1414_vm8, %v2151_v10, %v2153_v38  ;;  %v2157_v35 = vsel %vm1414_vm8, %v2153_v38, %v2147_v23 }
 0xb1c   :  { %v2161_v23 = vmul.f32 %v2154_v11, %v3855_v29 }
 0xb1d   :  { %v2099_v19 = vpop.permute.xlu1 %2098  ;;  %v2244_v10 = vrot.slane %v2160_v62, 4 }
 0xb1e   :  { %v2101_v53 = vpop.permute.xlu0 %2100 }
 0xb1f   :  { %v2108_v14 = vsel %vm1315_vm5, %v2099_v19, %v2101_v53 }
 0xb20   :  { %v2111_v58 = vmul.f32 %v2108_v14, %v3751_v26  ;;  %v2158_v26 = vmul.f32 %v2157_v35, %v3851_v28  ;;  %v2245_v14 = vrot.slane %v2161_v23, 4 }
 0xb21   :  { %v2103_v63 = vpop.permute.xlu1 %2102 }
 0xb22   :  { %v2105_v43 = vpop.permute.xlu0 %2104  ;;  %v2107_v40 = vsel %vm1315_vm5, %v2101_v53, %v2103_v63  ;;  %v2275_v15 = vsel %vm636_vm14, %v2111_v58, %v2231_v51  ;;  %v2242_v7 = vrot.slane %v2158_v26, 4 }
 0xb23   :  { %v2106_v9 = vsel %vm1315_vm5, %v2103_v63, %v2105_v43  ;;  %v2109_v13 = vsel %vm1315_vm5, %v2105_v43, %v2099_v19  ;;  %v2112_v38 = vmul.f32 %v2107_v40, %v3801_v42  ;;  %v4457_v19 = vld [vmem:[#allocation23_spill] sm:$0xff] }
 0xb24   :  { %v2110_v33 = vmul.f32 %v2109_v13, %v3777_v34  ;;  %v2113_v56 = vmul.f32 %v2106_v9, %v4457_v19 }
 0xb25   :  { %v2131_v22 = vpop.permute.xlu1 %2130  ;;  %v2276_v58 = vsel %vm636_vm14, %v2112_v38, %v2232_v36 }
 0xb26   :  { %v2133_v41 = vpop.permute.xlu0 %2132  ;;  %v2277_v11 = vsel %vm636_vm14, %v2113_v56, %v2233_v20 }
 0xb27   :  { %v2140_v25 = vsel %vm1381_vm7, %v2131_v22, %v2133_v41 }
 0xb28   :  { %v2143_v37 = vmul.f32 %v2140_v25, %v3824_v8 }
 0xb29   :  { %v2135_v53 = vpop.permute.xlu1 %2134 }
 0xb2a   :  { %v2139_v2 = vsel %vm1381_vm7, %v2133_v41, %v2135_v53  ;;  %v2137_v63 = vpop.permute.xlu0 %2136  ;;  %v2279_v28 = vsel %vm636_vm14, %v2143_v37, %v2243_v60 }
 0xb2b   :  { %v2144_v29 = vmul.f32 %v2139_v2, %v3859_v32  ;;  %v2138_v8 = vsel %vm1381_vm7, %v2135_v53, %v2137_v63  ;;  %v2141_v42 = vsel %vm1381_vm7, %v2137_v63, %v2131_v22  ;;  %v3014_v54 = vpack.c.bf16 %v2279_v28, %v2275_v15 }
 0xb2c   :  { %v2142_v34 = vmul.f32 %v2141_v42, %v3835_v16  ;;  %v2145_v43 = vmul.f32 %v2138_v8, %v3839_v57  ;;  %v2274_v32 = vsel %vm636_vm14, %v2110_v33, %v2230_v30 }
 0xb2d   :  { %v2280_v18 = vsel %vm636_vm14, %v2144_v29, %v2244_v10  ;;  %v2163_v47 = vpop.permute.xlu1 %2162  ;;  %3015 = vmatprep.subr.bf16.mxu0 %v3014_v54 }
 0xb2e   :  { %v2278_v59 = vsel %vm636_vm14, %v2142_v34, %v2242_v7  ;;  %v2165_v62 = vpop.permute.xlu0 %2164  ;;  %v2281_v35 = vsel %vm636_vm14, %v2145_v43, %v2245_v14  ;;  %v3024_v51 = vpack.c.bf16 %v2280_v18, %v2276_v58 }
 0xb2f   :  { %v3016_v22 = vpack.c.bf16 %v2278_v59, %v2274_v32  ;;  %v3022_v16 = vpack.c.bf16 %v2281_v35, %v2277_v11  ;;  %v2172_v9 = vsel %vm1447_vm9, %v2163_v47, %v2165_v62 }
 0xb30   :  { %v2174_v10 = vmul.f32 %v2172_v9, %v3882_v55 }
 0xb31   :  { %v2167_v57 = vpop.permute.xlu1 %2166  ;;  %3017 = vmatpush1.bf16.msra.mxu0 %v3016_v22  ;;  %3023 = vmatprep.subr.bf16.mxu1 %v3022_v16 }
 0xb32   :  { %3025 = vmatpush1.bf16.msra.mxu1 %v3024_v51  ;;  %v2169_v4 = vpop.permute.xlu0 %2168  ;;  %v2171_v13 = vsel %vm1447_vm9, %v2165_v62, %v2167_v57  ;;  %v2254_v29 = vrot.slane %v2174_v10, 4 }
 0xb33   :  { %v2170_v25 = vsel %vm1447_vm9, %v2167_v57, %v2169_v4  ;;  %v2173_v26 = vsel %vm1447_vm9, %v2169_v4, %v2163_v47  ;;  %v2175_v38 = vmul.f32 %v2171_v13, %v3888_v0 }
 0xb34   :  { %v2176_v53 = vmul.f32 %v2170_v25, %v3892_v1  ;;  %v2177_v19 = vmul.f32 %v2173_v26, %v3896_v21  ;;  %v2282_v32 = vsel %vm636_vm14, %v4219_v31, %v2254_v29 }
 0xb35   :  { %v2195_v40 = vpop.permute.xlu1 %2194  ;;  %v2255_v8 = vrot.slane %v2175_v38, 4 }
 0xb36   :  { %v2197_v41 = vpop.permute.xlu0 %2196  ;;  %v2256_v42 = vrot.slane %v2176_v53, 4  ;;  %v2257_v7 = vrot.slane %v2177_v19, 4 }
 0xb37   :  { %v2204_v23 = vsel %vm1513_vm12, %v2195_v40, %v2197_v41  ;;  %v2283_v62 = vsel %vm636_vm14, %v4221_v3, %v2255_v8 }
 0xb38   :  { %v2206_v56 = vmul.f32 %v2204_v23, %v3924_v17  ;;  %v2284_v59 = vsel %vm636_vm14, %v4227_v45, %v2256_v42 }
 0xb39   :  { %v2199_v30 = vpop.permute.xlu1 %2198 }
 0xb3a   :  { %v2201_v60 = vpop.permute.xlu0 %2200  ;;  %v2203_v37 = vsel %vm1513_vm12, %v2197_v41, %v2199_v30  ;;  %v2266_v21 = vrot.slane %v2206_v56, 4 }
 0xb3b   :  { %v2202_v20 = vsel %vm1513_vm12, %v2199_v30, %v2201_v60  ;;  %v2205_v15 = vsel %vm1513_vm12, %v2201_v60, %v2195_v40  ;;  %v2207_v2 = vmul.f32 %v2203_v37, %v3936_v49 }
 0xb3c   :  { %v2208_v28 = vmul.f32 %v2202_v20, %v3946_v50  ;;  %v2209_v0 = vmul.f32 %v2205_v15, %v3950_v52 }
 0xb3d   :  { %v2179_v33 = vpop.permute.xlu1 %2178  ;;  %v2267_v14 = vrot.slane %v2207_v2, 4 }
 0xb3e   :  { %v2181_v63 = vpop.permute.xlu0 %2180  ;;  %v2268_v34 = vrot.slane %v2208_v28, 4  ;;  %v2269_v52 = vrot.slane %v2209_v0, 4 }
 0xb3f   :  { %v2188_v55 = vsel %vm1480_vm10, %v2179_v33, %v2181_v63 }
 0xb40   :  { %v2190_v1 = vmul.f32 %v2188_v55, %v3916_v61 }
 0xb41   :  { %v2183_v54 = vpop.permute.xlu1 %2182 }
 0xb42   :  { %v2187_v17 = vsel %vm1480_vm10, %v2181_v63, %v2183_v54  ;;  %v2185_v49 = vpop.permute.xlu0 %2184  ;;  %v2286_v36 = vsel %vm636_vm14, %v2190_v1, %v2266_v21 }
 0xb43   :  { %v2191_v50 = vmul.f32 %v2187_v17, %v3920_v12  ;;  %v2186_v43 = vsel %vm1480_vm10, %v2183_v54, %v2185_v49  ;;  %v2189_v61 = vsel %vm1480_vm10, %v2185_v49, %v2179_v33  ;;  %v3020_v16 = vpack.c.bf16 %v2286_v36, %v2282_v32 }
 0xb44   :  { %v2192_v18 = vmul.f32 %v2186_v43, %v3930_v48  ;;  %v2193_v47 = vmul.f32 %v2189_v61, %v3942_v27  ;;  %v2285_v48 = vsel %vm636_vm14, %v4229_v24, %v2257_v7 }
 0xb45   :  { %v2211_v12 = vpop.permute.xlu1 %2210  ;;  %v2287_v11 = vsel %vm636_vm14, %v2191_v50, %v2267_v14 }
 0xb46   :  { %v2288_v35 = vsel %vm636_vm14, %v2192_v18, %v2268_v34  ;;  %v2213_v58 = vpop.permute.xlu0 %2212  ;;  %v3018_v22 = vpack.c.bf16 %v2287_v11, %v2283_v62  ;;  %v2289_v27 = vsel %vm636_vm14, %v2193_v47, %v2269_v52 }
 0xb47   :  { %v2220_v31 = vsel %vm1546_vm13, %v2211_v12, %v2213_v58  ;;  %v3026_v45 = vpack.c.bf16 %v2289_v27, %v2285_v48  ;;  %v3028_v51 = vpack.c.bf16 %v2288_v35, %v2284_v59 }
 0xb48   :  { %3019 = vmatprep.subr.bf16.mxu0 %v3018_v22  ;;  %v2222_v3 = vmul.f32 %v3974_v39, %v2220_v31  ;;  %v2294_v39 = vld [vmem:[#allocation15] sm:$0xff] }
 0xb49   :  { %v2215_v57 = vpop.permute.xlu1 %2214  ;;  %3021 = vmatpush1.bf16.msra.mxu0 %v3020_v16  ;;  %3027 = vmatprep.subr.bf16.mxu1 %v3026_v45 }
 0xb4a   :  { %v2219_v4 = vsel %vm1546_vm13, %v2213_v58, %v2215_v57  ;;  %3029 = vmatpush1.bf16.msra.mxu1 %v3028_v51  ;;  %v2217_v40 = vpop.permute.xlu0 %2216  ;;  %v2290_v60 = vsel %vm636_vm14, %v2222_v3, 1.0 }
 0xb4b   :  { %v2223_v24 = vmul.f32 %v3981_v44, %v2219_v4  ;;  %v2218_v41 = vsel %vm1546_vm13, %v2215_v57, %v2217_v40  ;;  %v2221_v30 = vsel %vm1546_vm13, %v2217_v40, %v2211_v12 }
 0xb4c   :  { %v2224_v9 = vmul.f32 %v3986_v6, %v2218_v41  ;;  %v2225_v13 = vmul.f32 %v3991_v46, %v2221_v30 }
 0xb4d   :  { %v2291_v25 = vsel %vm636_vm14, %v2223_v24, 1.0 }
 0xb4e   :  { %v2292_v26 = vsel %vm636_vm14, %v2224_v9, 1.0  ;;  %2509 = vmatprep.subr.msk.mxu0 %vm647_vm15, %v2291_v25  ;;  %v2293_v44 = vsel %vm636_vm14, %v2225_v13, 1.0 }
 0xb4f   :  { %2510 = vmatpush1.msk.msra.mxu0 %vm647_vm15, %v2290_v60  ;;  %2512 = vmatprep.subr.msk.mxu1 %vm647_vm15, %v2293_v44 }
 0xb50   :  { %2513 = vmatpush1.msk.msra.mxu1 %vm647_vm15, %v2292_v26  ;;  %2511 = vmatmul.mubr.msk.f32.vlgmr.msra.gmra.mrb[14].mxu0 %vm1927_vm2, %v2294_v39 }
 0xb51   :  { %2514 = vmatmul.mubr.msk.f32.vlgmr.msra.gmra.mrb[10].mxu1 %vm1927_vm2, %v2294_v39 }
 0xc23   :  { %v2376_v5 = vpop.f32.mrb[14].mxu0 }
 0xc24   :  { %2452 = vst [vmem:[#allocation16] sm:$0xff] %v2376_v5  ;;  %v2447_v6 = vpop.f32.mrb[10].mxu1  ;;  %v2378_v46 = vpop.f32.mrb[15].mxu0 }
 0xc25   :  { %2454 = vst [vmem:[#allocation16 + $0x10] sm:$0xff] %v2447_v6  ;;  %2453 = vst [vmem:[#allocation16 + $0x8] sm:$0xff] %v2378_v46  ;;  %v2449_v23 = vpop.f32.mrb[11].mxu1 }
 0xc26   :  { %2455 = vst [vmem:[#allocation16 + $0x18] sm:$0xff] %v2449_v23 }
 0xc27   :  { %3246 = shalt.err (!%p3243_p9)
}
 0xc28   :  { %s4458_s10 = sld [smem:[#allocation24_spill]] }
 0xc2e   :  { %s3247_s4 = scalar_lea.hbm %s4458_s10, 512 }
 0xc2f   :  { %p3248_p10 = scmp.ne.s32.totalorder %s4458_s10, %s3247_s4  ;;  %p3251_p11 = scmp.lt.u32.totalorder %s3247_s4, %s4458_s10 }
 0xc31   :  { %p3253_p12 = pnand %p3251_p11, %p3248_p10 }
 0xc33   :  { %3256 = shalt.err (!%p3253_p12)
}
 0xc34   :  { %2465 = dma.vmem_to_hbm [thread:$0]  %s2463_s5, 512, %s4458_s10, [#allocation4]  }
 0xc35   :  { %3267 = dma.done.wait [#allocation4], 512  }
 0xc36   :  { %3268 = vsyncadd [#allocation4], 4294966784 }
 0xc37   :  { %2469 = vsyncpa [#allocation3], 1 }
 0xc38   :  { %2470 = vsyncpa [#allocation8], 1 }
 0xc39   :  { %2471 = vsyncpa [#allocation11], 1 }
 0xc3a   :  { %2472 = vsyncpa [#allocation14], 1 }
 0xc3b   :  { %2473 = vsyncpa [#allocation4], 1 }
 0xc3c   :  { %2474 = vsyncpa [#allocation5], 1 }

</bundles_post_ra>
